<compile_context>
chip_gen: v5e
topology: v5e:2x2
jax: 0.10.0
libtpu: 0.0.40
codegen_flags: <defaults>
</compile_context>

<pallas_src>
import math

import jax
import jax.numpy as jnp
from jax.experimental import pallas as pl
from jax.experimental.pallas import tpu as pltpu

# Small, module-consistent configuration.
EMBED_DIM = 32
HIDDEN_DIM = 32
VOCAB_SIZE = 50
LABEL_SIZE = 8
SEQ_LEN = 8

LANE = 128                      # vreg lane width == 4*HIDDEN_DIM == padded label width
B_BLK = 8                       # sentences per grid step (one full sublane group)
assert 4 * HIDDEN_DIM == LANE

# torch LSTM gate order is (i, f, g, o); kernel uses (i, f, o, g) so the three
# sigmoid gates form one contiguous slice.
GATE_PERM = (0, 1, 3, 2)


def lstm_classifier_kernel(ids_ref, pf32_ref, pbf16_ref, out_ref, x_scratch):
    """One batch-block of the whole hot path.

    ids_ref   : (Bp*T,)    int32 SMEM  token ids (scalar prefetch), row-major (b, t)
    pf32_ref  : (V+1, 128) f32   VMEM  [fused emb@W_ih+b table (V,4H) ; padded b_out (1,128)]
    pbf16_ref : (2H, 128)  bf16  VMEM  [W_hh (H,4H) ; zero-padded W_out (H,128)]
    out_ref   : (B_BLK,128)f32   VMEM  log-probabilities (pad lanes garbage, sliced off outside)
    x_scratch : (B_BLK*T, 128) f32 VMEM gathered per-step gate pre-activations
    """
    H = HIDDEN_DIM
    T = SEQ_LEN
    V = VOCAB_SIZE
    b0 = pl.program_id(0) * B_BLK

    # --- Lane-dense gather from the precomputed fused (emb@W_ih + b) table. ---
    for t in range(T):
        for bb in range(B_BLK):
            tok = ids_ref[(b0 + bb) * T + t]
            tok = jnp.minimum(jnp.maximum(tok, 0), V - 1)   # no VMEM OOB checks -> clamp
            r = t * B_BLK + bb
            x_scratch[r:r + 1, :] = pf32_ref[pl.ds(tok, 1), :]

    w_hh = pbf16_ref[0:H, :]                                 # (H, 4H) bf16

    h = jnp.zeros((B_BLK, H), jnp.float32)
    c = jnp.zeros((B_BLK, H), jnp.float32)

    # --- Fully unrolled recurrence (T is a compile-time constant). ---
    for t in range(T):
        x_t = x_scratch[t * B_BLK:(t + 1) * B_BLK, :]        # (B_BLK, 4H) f32
        gates = x_t + jnp.dot(h.astype(jnp.bfloat16), w_hh,
                              preferred_element_type=jnp.float32)
        sig = jax.nn.sigmoid(gates[:, :3 * H])               # (i, f, o)
        g = jnp.tanh(gates[:, 3 * H:])                       # (g)
        i_g = sig[:, :H]
        f_g = sig[:, H:2 * H]
        o_g = sig[:, 2 * H:]
        c = f_g * c + i_g * g                                # f32 cell state
        h = o_g * jnp.tanh(c)

    # --- Lane-padded classifier head + numerically stable log_softmax. ---
    w_out = pbf16_ref[H:2 * H, :]                            # (H, 128) bf16, cols >= L are 0
    b_out = pf32_ref[V:V + 1, :]                             # (1, 128) f32, cols >= L are -1e30
    y = jnp.dot(h.astype(jnp.bfloat16), w_out,
                preferred_element_type=jnp.float32) + b_out  # (B_BLK, 128)
    m = jnp.max(y, axis=-1, keepdims=True)
    s = y - m
    out_ref[...] = s - jnp.log(jnp.sum(jnp.exp(s), axis=-1, keepdims=True))


def init_params(key):
    """Deterministic synthetic init mirroring the nn.Module parameter shapes
    (torch layout: weight_ih (4H,E), weight_hh (4H,H), gate order i,f,g,o)."""
    ks = jax.random.split(key, 7)
    bound = 1.0 / math.sqrt(HIDDEN_DIM)
    emb = jax.random.normal(ks[0], (VOCAB_SIZE, EMBED_DIM), jnp.float32)
    w_ih = jax.random.uniform(ks[1], (4 * HIDDEN_DIM, EMBED_DIM), jnp.float32,
                              -bound, bound)
    w_hh = jax.random.uniform(ks[2], (4 * HIDDEN_DIM, HIDDEN_DIM), jnp.float32,
                              -bound, bound)
    b_ih = jax.random.uniform(ks[3], (4 * HIDDEN_DIM,), jnp.float32, -bound, bound)
    b_hh = jax.random.uniform(ks[4], (4 * HIDDEN_DIM,), jnp.float32, -bound, bound)
    w_out = jax.random.uniform(ks[5], (LABEL_SIZE, HIDDEN_DIM), jnp.float32,
                               -bound, bound)
    b_out = jax.random.uniform(ks[6], (LABEL_SIZE,), jnp.float32, -bound, bound)
    return dict(emb=emb, w_ih=w_ih, w_hh=w_hh, b_ih=b_ih, b_hh=b_hh,
                w_out=w_out, b_out=b_out)


def pack_params(p):
    """Repack torch-layout params into the fused kernel layout (host-side)."""
    H = HIDDEN_DIM
    perm = jnp.array(GATE_PERM)

    def reorder(a):  # split leading 4H into (4, H, ...), permute gates, re-flatten
        parts = a.reshape((4, H) + a.shape[1:])
        return jnp.take(parts, perm, axis=0).reshape((4 * H,) + a.shape[1:])

    w_ih = reorder(p["w_ih"]).T                               # (E, 4H) f32
    bias = (reorder(p["b_ih"]) + reorder(p["b_hh"]))[None, :]  # (1, 4H) f32
    # Fold embedding lookup + input projection + bias at pack time (f32).
    fused = p["emb"] @ w_ih + bias                            # (V, 4H) f32

    w_hh = reorder(p["w_hh"]).T.astype(jnp.bfloat16)          # (H, 4H) bf16
    w_out_pad = (jnp.zeros((H, LANE), jnp.float32)
                 .at[:, :LABEL_SIZE].set(p["w_out"].T)
                 .astype(jnp.bfloat16))                       # (H, 128) bf16
    b_out_pad = (jnp.full((1, LANE), -1e30, jnp.float32)
                 .at[0, :LABEL_SIZE].set(p["b_out"]))         # (1, 128) f32

    slab_f32 = jnp.concatenate([fused, b_out_pad], axis=0)    # (V+1, 128) f32
    slab_bf16 = jnp.concatenate([w_hh, w_out_pad], axis=0)    # (2H, 128) bf16
    return dict(slab_f32=slab_f32, slab_bf16=slab_bf16)


@jax.jit
def recurrent_classifier_forward_batched(sentences, packed):
    """sentences: (B, T) int32 token ids -> (B, LABEL_SIZE) log-probs."""
    B, T = sentences.shape
    assert T == SEQ_LEN
    Bp = -(-B // B_BLK) * B_BLK                               # pad batch to B_BLK multiple
    ids = jnp.zeros((Bp, T), jnp.int32).at[:B].set(sentences.astype(jnp.int32))
    ids_flat = ids.reshape(-1)

    grid_spec = pltpu.PrefetchScalarGridSpec(
        num_scalar_prefetch=1,
        grid=(Bp // B_BLK,),
        in_specs=[
            pl.BlockSpec((VOCAB_SIZE + 1, LANE), lambda b, ids: (0, 0)),
            pl.BlockSpec((2 * HIDDEN_DIM, LANE), lambda b, ids: (0, 0)),
        ],
        out_specs=pl.BlockSpec((B_BLK, LANE), lambda b, ids: (b, 0)),
        scratch_shapes=[pltpu.VMEM((B_BLK * SEQ_LEN, LANE), jnp.float32)],
    )
    out = pl.pallas_call(
        lstm_classifier_kernel,
        out_shape=jax.ShapeDtypeStruct((Bp, LANE), jnp.float32),
        grid_spec=grid_spec,
        compiler_params=pltpu.CompilerParams(
            dimension_semantics=("parallel",)),               # v7x: shard blocks over 2 TCs
    )(ids_flat, packed["slab_f32"], packed["slab_bf16"])
    return out[:B, :LABEL_SIZE]


def recurrent_classifier_forward(sentence, packed):
    """Module-semantics entry point: (T,) int32 -> (1, LABEL_SIZE) log-probs."""
    return recurrent_classifier_forward_batched(sentence[None, :], packed)


@jax.jit
def reference_forward_batched(sentences, packed):
    """Pure-JAX reference mirroring the kernel math (same f32 fused table,
    same bf16 casts at the MXU operand boundaries)."""
    H = HIDDEN_DIM
    fused = packed["slab_f32"][:VOCAB_SIZE]                   # (V, 4H) f32
    b_out = packed["slab_f32"][VOCAB_SIZE, :LABEL_SIZE]       # (L,)
    w_hh = packed["slab_bf16"][:H]                            # (H, 4H) bf16
    w_out = packed["slab_bf16"][H:, :LABEL_SIZE]              # (H, L) bf16

    ids = jnp.clip(sentences, 0, VOCAB_SIZE - 1)
    x_proj = jnp.take(fused, ids, axis=0)                     # (B, T, 4H) f32
    B = sentences.shape[0]
    h = jnp.zeros((B, H), jnp.float32)
    c = jnp.zeros((B, H), jnp.float32)
    for t in range(SEQ_LEN):
        gates = x_proj[:, t, :] + jnp.dot(h.astype(jnp.bfloat16), w_hh,
                                          preferred_element_type=jnp.float32)
        sig = jax.nn.sigmoid(gates[:, :3 * H])
        g = jnp.tanh(gates[:, 3 * H:])
        i_g, f_g, o_g = sig[:, :H], sig[:, H:2 * H], sig[:, 2 * H:]
        c = f_g * c + i_g * g
        h = o_g * jnp.tanh(c)
    y = jnp.dot(h.astype(jnp.bfloat16), w_out,
                preferred_element_type=jnp.float32) + b_out
    return jax.nn.log_softmax(y, axis=-1)


if __name__ == "__main__":
    key = jax.random.PRNGKey(0)
    pkey, skey = jax.random.split(key)
    params = init_params(pkey)
    packed = pack_params(params)

    B = 16
    sentences = jax.random.randint(skey, (B, SEQ_LEN), 0, VOCAB_SIZE, dtype=jnp.int32)

    log_probs = recurrent_classifier_forward_batched(sentences, packed)
    jax.block_until_ready(log_probs)

    assert log_probs.shape == (B, LABEL_SIZE)
    # log_softmax sanity: probabilities sum to 1 per sentence.
    assert jnp.allclose(jnp.sum(jnp.exp(log_probs), axis=-1), 1.0, atol=1e-4)
    # Matches a pure-JAX implementation of the same fused math.
    ref = reference_forward_batched(sentences, packed)
    assert jnp.allclose(log_probs, ref, atol=1e-2, rtol=1e-2)

    # Single-sentence path (exact module semantics: one (T,) sentence in, (1, L) out).
    single = recurrent_classifier_forward(sentences[0], packed)
    jax.block_until_ready(single)
    assert single.shape == (1, LABEL_SIZE)
    assert jnp.allclose(single, ref[0:1], atol=1e-2, rtol=1e-2)

    print("KERNEL_OK")
</pallas_src>

<mosaic_0001>
module attributes {stable_mosaic.version = 11 : i64} {
  func.func @lstm_classifier_kernel(%arg0: i32, %arg1: memref<128xi32, #tpu.memory_space<smem>>, %arg2: memref<51x128xf32, #tpu.memory_space<vmem>>, %arg3: memref<64x128xbf16, #tpu.memory_space<vmem>>, %arg4: memref<8x128xf32, #tpu.memory_space<vmem>>, %arg5: memref<64x128xf32, #tpu.memory_space<vmem>>) attributes {dimension_semantics = [#tpu.dimension_semantics<parallel>], iteration_bounds = array<i64: 2>, scalar_prefetch = 1 : i64, scratch_operands = 1 : i64, tpu.core_type = #tpu.core_type<tc>, window_params = [{pipeline_mode = #tpu.pipeline_mode<synchronous>, transform_indices = @transform_0, window_bounds = array<i64: 51, 128>}, {pipeline_mode = #tpu.pipeline_mode<synchronous>, transform_indices = @transform_1, window_bounds = array<i64: 64, 128>}, {transform_indices = @transform_2, window_bounds = array<i64: 8, 128>}]} {
    %c8_i32 = arith.constant 8 : i32
    %0 = arith.muli %arg0, %c8_i32 : i32
    %c0_i32 = arith.constant 0 : i32
    %1 = arith.addi %0, %c0_i32 : i32
    %c8_i32_0 = arith.constant 8 : i32
    %2 = arith.muli %1, %c8_i32_0 : i32
    %c0_i32_1 = arith.constant 0 : i32
    %3 = arith.addi %2, %c0_i32_1 : i32
    %4 = arith.index_cast %3 : i32 to index
    %5 = memref.load %arg1[%4] : memref<128xi32, #tpu.memory_space<smem>>
    %c0_i32_2 = arith.constant 0 : i32
    %6 = arith.maxsi %5, %c0_i32_2 : i32
    %c49_i32 = arith.constant 49 : i32
    %7 = arith.minsi %6, %c49_i32 : i32
    %8 = arith.index_cast %7 : i32 to index
    %c0 = arith.constant 0 : index
    %9 = vector.load %arg2[%8, %c0] : memref<51x128xf32, #tpu.memory_space<vmem>>, vector<1x128xf32>
    %c0_3 = arith.constant 0 : index
    %c0_4 = arith.constant 0 : index
    %10 = vector.load %arg5[%c0_3, %c0_4] : memref<64x128xf32, #tpu.memory_space<vmem>>, vector<1x128xf32>
    tpu.vector_store %arg5[%c0_3, %c0_4], %9 {strides = array<i32>} : memref<64x128xf32, #tpu.memory_space<vmem>>, vector<1x128xf32>,
    %c1_i32 = arith.constant 1 : i32
    %11 = arith.addi %0, %c1_i32 : i32
    %c8_i32_5 = arith.constant 8 : i32
    %12 = arith.muli %11, %c8_i32_5 : i32
    %c0_i32_6 = arith.constant 0 : i32
    %13 = arith.addi %12, %c0_i32_6 : i32
    %14 = arith.index_cast %13 : i32 to index
    %15 = memref.load %arg1[%14] : memref<128xi32, #tpu.memory_space<smem>>
    %c0_i32_7 = arith.constant 0 : i32
    %16 = arith.maxsi %15, %c0_i32_7 : i32
    %c49_i32_8 = arith.constant 49 : i32
    %17 = arith.minsi %16, %c49_i32_8 : i32
    %18 = arith.index_cast %17 : i32 to index
    %c0_9 = arith.constant 0 : index
    %19 = vector.load %arg2[%18, %c0_9] : memref<51x128xf32, #tpu.memory_space<vmem>>, vector<1x128xf32>
    %c1 = arith.constant 1 : index
    %c0_10 = arith.constant 0 : index
    %20 = vector.load %arg5[%c1, %c0_10] : memref<64x128xf32, #tpu.memory_space<vmem>>, vector<1x128xf32>
    tpu.vector_store %arg5[%c1, %c0_10], %19 {strides = array<i32>} : memref<64x128xf32, #tpu.memory_space<vmem>>, vector<1x128xf32>,
    %c2_i32 = arith.constant 2 : i32
    %21 = arith.addi %0, %c2_i32 : i32
    %c8_i32_11 = arith.constant 8 : i32
    %22 = arith.muli %21, %c8_i32_11 : i32
    %c0_i32_12 = arith.constant 0 : i32
    %23 = arith.addi %22, %c0_i32_12 : i32
    %24 = arith.index_cast %23 : i32 to index
    %25 = memref.load %arg1[%24] : memref<128xi32, #tpu.memory_space<smem>>
    %c0_i32_13 = arith.constant 0 : i32
    %26 = arith.maxsi %25, %c0_i32_13 : i32
    %c49_i32_14 = arith.constant 49 : i32
    %27 = arith.minsi %26, %c49_i32_14 : i32
    %28 = arith.index_cast %27 : i32 to index
    %c0_15 = arith.constant 0 : index
    %29 = vector.load %arg2[%28, %c0_15] : memref<51x128xf32, #tpu.memory_space<vmem>>, vector<1x128xf32>
    %c2 = arith.constant 2 : index
    %c0_16 = arith.constant 0 : index
    %30 = vector.load %arg5[%c2, %c0_16] : memref<64x128xf32, #tpu.memory_space<vmem>>, vector<1x128xf32>
    tpu.vector_store %arg5[%c2, %c0_16], %29 {strides = array<i32>} : memref<64x128xf32, #tpu.memory_space<vmem>>, vector<1x128xf32>,
    %c3_i32 = arith.constant 3 : i32
    %31 = arith.addi %0, %c3_i32 : i32
    %c8_i32_17 = arith.constant 8 : i32
    %32 = arith.muli %31, %c8_i32_17 : i32
    %c0_i32_18 = arith.constant 0 : i32
    %33 = arith.addi %32, %c0_i32_18 : i32
    %34 = arith.index_cast %33 : i32 to index
    %35 = memref.load %arg1[%34] : memref<128xi32, #tpu.memory_space<smem>>
    %c0_i32_19 = arith.constant 0 : i32
    %36 = arith.maxsi %35, %c0_i32_19 : i32
    %c49_i32_20 = arith.constant 49 : i32
    %37 = arith.minsi %36, %c49_i32_20 : i32
    %38 = arith.index_cast %37 : i32 to index
    %c0_21 = arith.constant 0 : index
    %39 = vector.load %arg2[%38, %c0_21] : memref<51x128xf32, #tpu.memory_space<vmem>>, vector<1x128xf32>
    %c3 = arith.constant 3 : index
    %c0_22 = arith.constant 0 : index
    %40 = vector.load %arg5[%c3, %c0_22] : memref<64x128xf32, #tpu.memory_space<vmem>>, vector<1x128xf32>
    tpu.vector_store %arg5[%c3, %c0_22], %39 {strides = array<i32>} : memref<64x128xf32, #tpu.memory_space<vmem>>, vector<1x128xf32>,
    %c4_i32 = arith.constant 4 : i32
    %41 = arith.addi %0, %c4_i32 : i32
    %c8_i32_23 = arith.constant 8 : i32
    %42 = arith.muli %41, %c8_i32_23 : i32
    %c0_i32_24 = arith.constant 0 : i32
    %43 = arith.addi %42, %c0_i32_24 : i32
    %44 = arith.index_cast %43 : i32 to index
    %45 = memref.load %arg1[%44] : memref<128xi32, #tpu.memory_space<smem>>
    %c0_i32_25 = arith.constant 0 : i32
    %46 = arith.maxsi %45, %c0_i32_25 : i32
    %c49_i32_26 = arith.constant 49 : i32
    %47 = arith.minsi %46, %c49_i32_26 : i32
    %48 = arith.index_cast %47 : i32 to index
    %c0_27 = arith.constant 0 : index
    %49 = vector.load %arg2[%48, %c0_27] : memref<51x128xf32, #tpu.memory_space<vmem>>, vector<1x128xf32>
    %c4 = arith.constant 4 : index
    %c0_28 = arith.constant 0 : index
    %50 = vector.load %arg5[%c4, %c0_28] : memref<64x128xf32, #tpu.memory_space<vmem>>, vector<1x128xf32>
    tpu.vector_store %arg5[%c4, %c0_28], %49 {strides = array<i32>} : memref<64x128xf32, #tpu.memory_space<vmem>>, vector<1x128xf32>,
    %c5_i32 = arith.constant 5 : i32
    %51 = arith.addi %0, %c5_i32 : i32
    %c8_i32_29 = arith.constant 8 : i32
    %52 = arith.muli %51, %c8_i32_29 : i32
    %c0_i32_30 = arith.constant 0 : i32
    %53 = arith.addi %52, %c0_i32_30 : i32
    %54 = arith.index_cast %53 : i32 to index
    %55 = memref.load %arg1[%54] : memref<128xi32, #tpu.memory_space<smem>>
    %c0_i32_31 = arith.constant 0 : i32
    %56 = arith.maxsi %55, %c0_i32_31 : i32
    %c49_i32_32 = arith.constant 49 : i32
    %57 = arith.minsi %56, %c49_i32_32 : i32
    %58 = arith.index_cast %57 : i32 to index
    %c0_33 = arith.constant 0 : index
    %59 = vector.load %arg2[%58, %c0_33] : memref<51x128xf32, #tpu.memory_space<vmem>>, vector<1x128xf32>
    %c5 = arith.constant 5 : index
    %c0_34 = arith.constant 0 : index
    %60 = vector.load %arg5[%c5, %c0_34] : memref<64x128xf32, #tpu.memory_space<vmem>>, vector<1x128xf32>
    tpu.vector_store %arg5[%c5, %c0_34], %59 {strides = array<i32>} : memref<64x128xf32, #tpu.memory_space<vmem>>, vector<1x128xf32>,
    %c6_i32 = arith.constant 6 : i32
    %61 = arith.addi %0, %c6_i32 : i32
    %c8_i32_35 = arith.constant 8 : i32
    %62 = arith.muli %61, %c8_i32_35 : i32
    %c0_i32_36 = arith.constant 0 : i32
    %63 = arith.addi %62, %c0_i32_36 : i32
    %64 = arith.index_cast %63 : i32 to index
    %65 = memref.load %arg1[%64] : memref<128xi32, #tpu.memory_space<smem>>
    %c0_i32_37 = arith.constant 0 : i32
    %66 = arith.maxsi %65, %c0_i32_37 : i32
    %c49_i32_38 = arith.constant 49 : i32
    %67 = arith.minsi %66, %c49_i32_38 : i32
    %68 = arith.index_cast %67 : i32 to index
    %c0_39 = arith.constant 0 : index
    %69 = vector.load %arg2[%68, %c0_39] : memref<51x128xf32, #tpu.memory_space<vmem>>, vector<1x128xf32>
    %c6 = arith.constant 6 : index
    %c0_40 = arith.constant 0 : index
    %70 = vector.load %arg5[%c6, %c0_40] : memref<64x128xf32, #tpu.memory_space<vmem>>, vector<1x128xf32>
    tpu.vector_store %arg5[%c6, %c0_40], %69 {strides = array<i32>} : memref<64x128xf32, #tpu.memory_space<vmem>>, vector<1x128xf32>,
    %c7_i32 = arith.constant 7 : i32
    %71 = arith.addi %0, %c7_i32 : i32
    %c8_i32_41 = arith.constant 8 : i32
    %72 = arith.muli %71, %c8_i32_41 : i32
    %c0_i32_42 = arith.constant 0 : i32
    %73 = arith.addi %72, %c0_i32_42 : i32
    %74 = arith.index_cast %73 : i32 to index
    %75 = memref.load %arg1[%74] : memref<128xi32, #tpu.memory_space<smem>>
    %c0_i32_43 = arith.constant 0 : i32
    %76 = arith.maxsi %75, %c0_i32_43 : i32
    %c49_i32_44 = arith.constant 49 : i32
    %77 = arith.minsi %76, %c49_i32_44 : i32
    %78 = arith.index_cast %77 : i32 to index
    %c0_45 = arith.constant 0 : index
    %79 = vector.load %arg2[%78, %c0_45] : memref<51x128xf32, #tpu.memory_space<vmem>>, vector<1x128xf32>
    %c7 = arith.constant 7 : index
    %c0_46 = arith.constant 0 : index
    %80 = vector.load %arg5[%c7, %c0_46] : memref<64x128xf32, #tpu.memory_space<vmem>>, vector<1x128xf32>
    tpu.vector_store %arg5[%c7, %c0_46], %79 {strides = array<i32>} : memref<64x128xf32, #tpu.memory_space<vmem>>, vector<1x128xf32>,
    %c0_i32_47 = arith.constant 0 : i32
    %81 = arith.addi %0, %c0_i32_47 : i32
    %c8_i32_48 = arith.constant 8 : i32
    %82 = arith.muli %81, %c8_i32_48 : i32
    %c1_i32_49 = arith.constant 1 : i32
    %83 = arith.addi %82, %c1_i32_49 : i32
    %84 = arith.index_cast %83 : i32 to index
    %85 = memref.load %arg1[%84] : memref<128xi32, #tpu.memory_space<smem>>
    %c0_i32_50 = arith.constant 0 : i32
    %86 = arith.maxsi %85, %c0_i32_50 : i32
    %c49_i32_51 = arith.constant 49 : i32
    %87 = arith.minsi %86, %c49_i32_51 : i32
    %88 = arith.index_cast %87 : i32 to index
    %c0_52 = arith.constant 0 : index
    %89 = vector.load %arg2[%88, %c0_52] : memref<51x128xf32, #tpu.memory_space<vmem>>, vector<1x128xf32>
    %c8 = arith.constant 8 : index
    %c0_53 = arith.constant 0 : index
    %90 = vector.load %arg5[%c8, %c0_53] : memref<64x128xf32, #tpu.memory_space<vmem>>, vector<1x128xf32>
    tpu.vector_store %arg5[%c8, %c0_53], %89 {strides = array<i32>} : memref<64x128xf32, #tpu.memory_space<vmem>>, vector<1x128xf32>,
    %c1_i32_54 = arith.constant 1 : i32
    %91 = arith.addi %0, %c1_i32_54 : i32
    %c8_i32_55 = arith.constant 8 : i32
    %92 = arith.muli %91, %c8_i32_55 : i32
    %c1_i32_56 = arith.constant 1 : i32
    %93 = arith.addi %92, %c1_i32_56 : i32
    %94 = arith.index_cast %93 : i32 to index
    %95 = memref.load %arg1[%94] : memref<128xi32, #tpu.memory_space<smem>>
    %c0_i32_57 = arith.constant 0 : i32
    %96 = arith.maxsi %95, %c0_i32_57 : i32
    %c49_i32_58 = arith.constant 49 : i32
    %97 = arith.minsi %96, %c49_i32_58 : i32
    %98 = arith.index_cast %97 : i32 to index
    %c0_59 = arith.constant 0 : index
    %99 = vector.load %arg2[%98, %c0_59] : memref<51x128xf32, #tpu.memory_space<vmem>>, vector<1x128xf32>
    %c9 = arith.constant 9 : index
    %c0_60 = arith.constant 0 : index
    %100 = vector.load %arg5[%c9, %c0_60] : memref<64x128xf32, #tpu.memory_space<vmem>>, vector<1x128xf32>
    tpu.vector_store %arg5[%c9, %c0_60], %99 {strides = array<i32>} : memref<64x128xf32, #tpu.memory_space<vmem>>, vector<1x128xf32>,
    %c2_i32_61 = arith.constant 2 : i32
    %101 = arith.addi %0, %c2_i32_61 : i32
    %c8_i32_62 = arith.constant 8 : i32
    %102 = arith.muli %101, %c8_i32_62 : i32
    %c1_i32_63 = arith.constant 1 : i32
    %103 = arith.addi %102, %c1_i32_63 : i32
    %104 = arith.index_cast %103 : i32 to index
    %105 = memref.load %arg1[%104] : memref<128xi32, #tpu.memory_space<smem>>
    %c0_i32_64 = arith.constant 0 : i32
    %106 = arith.maxsi %105, %c0_i32_64 : i32
    %c49_i32_65 = arith.constant 49 : i32
    %107 = arith.minsi %106, %c49_i32_65 : i32
    %108 = arith.index_cast %107 : i32 to index
    %c0_66 = arith.constant 0 : index
    %109 = vector.load %arg2[%108, %c0_66] : memref<51x128xf32, #tpu.memory_space<vmem>>, vector<1x128xf32>
    %c10 = arith.constant 10 : index
    %c0_67 = arith.constant 0 : index
    %110 = vector.load %arg5[%c10, %c0_67] : memref<64x128xf32, #tpu.memory_space<vmem>>, vector<1x128xf32>
    tpu.vector_store %arg5[%c10, %c0_67], %109 {strides = array<i32>} : memref<64x128xf32, #tpu.memory_space<vmem>>, vector<1x128xf32>,
    %c3_i32_68 = arith.constant 3 : i32
    %111 = arith.addi %0, %c3_i32_68 : i32
    %c8_i32_69 = arith.constant 8 : i32
    %112 = arith.muli %111, %c8_i32_69 : i32
    %c1_i32_70 = arith.constant 1 : i32
    %113 = arith.addi %112, %c1_i32_70 : i32
    %114 = arith.index_cast %113 : i32 to index
    %115 = memref.load %arg1[%114] : memref<128xi32, #tpu.memory_space<smem>>
    %c0_i32_71 = arith.constant 0 : i32
    %116 = arith.maxsi %115, %c0_i32_71 : i32
    %c49_i32_72 = arith.constant 49 : i32
    %117 = arith.minsi %116, %c49_i32_72 : i32
    %118 = arith.index_cast %117 : i32 to index
    %c0_73 = arith.constant 0 : index
    %119 = vector.load %arg2[%118, %c0_73] : memref<51x128xf32, #tpu.memory_space<vmem>>, vector<1x128xf32>
    %c11 = arith.constant 11 : index
    %c0_74 = arith.constant 0 : index
    %120 = vector.load %arg5[%c11, %c0_74] : memref<64x128xf32, #tpu.memory_space<vmem>>, vector<1x128xf32>
    tpu.vector_store %arg5[%c11, %c0_74], %119 {strides = array<i32>} : memref<64x128xf32, #tpu.memory_space<vmem>>, vector<1x128xf32>,
    %c4_i32_75 = arith.constant 4 : i32
    %121 = arith.addi %0, %c4_i32_75 : i32
    %c8_i32_76 = arith.constant 8 : i32
    %122 = arith.muli %121, %c8_i32_76 : i32
    %c1_i32_77 = arith.constant 1 : i32
    %123 = arith.addi %122, %c1_i32_77 : i32
    %124 = arith.index_cast %123 : i32 to index
    %125 = memref.load %arg1[%124] : memref<128xi32, #tpu.memory_space<smem>>
    %c0_i32_78 = arith.constant 0 : i32
    %126 = arith.maxsi %125, %c0_i32_78 : i32
    %c49_i32_79 = arith.constant 49 : i32
    %127 = arith.minsi %126, %c49_i32_79 : i32
    %128 = arith.index_cast %127 : i32 to index
    %c0_80 = arith.constant 0 : index
    %129 = vector.load %arg2[%128, %c0_80] : memref<51x128xf32, #tpu.memory_space<vmem>>, vector<1x128xf32>
    %c12 = arith.constant 12 : index
    %c0_81 = arith.constant 0 : index
    %130 = vector.load %arg5[%c12, %c0_81] : memref<64x128xf32, #tpu.memory_space<vmem>>, vector<1x128xf32>
    tpu.vector_store %arg5[%c12, %c0_81], %129 {strides = array<i32>} : memref<64x128xf32, #tpu.memory_space<vmem>>, vector<1x128xf32>,
    %c5_i32_82 = arith.constant 5 : i32
    %131 = arith.addi %0, %c5_i32_82 : i32
    %c8_i32_83 = arith.constant 8 : i32
    %132 = arith.muli %131, %c8_i32_83 : i32
    %c1_i32_84 = arith.constant 1 : i32
    %133 = arith.addi %132, %c1_i32_84 : i32
    %134 = arith.index_cast %133 : i32 to index
    %135 = memref.load %arg1[%134] : memref<128xi32, #tpu.memory_space<smem>>
    %c0_i32_85 = arith.constant 0 : i32
    %136 = arith.maxsi %135, %c0_i32_85 : i32
    %c49_i32_86 = arith.constant 49 : i32
    %137 = arith.minsi %136, %c49_i32_86 : i32
    %138 = arith.index_cast %137 : i32 to index
    %c0_87 = arith.constant 0 : index
    %139 = vector.load %arg2[%138, %c0_87] : memref<51x128xf32, #tpu.memory_space<vmem>>, vector<1x128xf32>
    %c13 = arith.constant 13 : index
    %c0_88 = arith.constant 0 : index
    %140 = vector.load %arg5[%c13, %c0_88] : memref<64x128xf32, #tpu.memory_space<vmem>>, vector<1x128xf32>
    tpu.vector_store %arg5[%c13, %c0_88], %139 {strides = array<i32>} : memref<64x128xf32, #tpu.memory_space<vmem>>, vector<1x128xf32>,
    %c6_i32_89 = arith.constant 6 : i32
    %141 = arith.addi %0, %c6_i32_89 : i32
    %c8_i32_90 = arith.constant 8 : i32
    %142 = arith.muli %141, %c8_i32_90 : i32
    %c1_i32_91 = arith.constant 1 : i32
    %143 = arith.addi %142, %c1_i32_91 : i32
    %144 = arith.index_cast %143 : i32 to index
    %145 = memref.load %arg1[%144] : memref<128xi32, #tpu.memory_space<smem>>
    %c0_i32_92 = arith.constant 0 : i32
    %146 = arith.maxsi %145, %c0_i32_92 : i32
    %c49_i32_93 = arith.constant 49 : i32
    %147 = arith.minsi %146, %c49_i32_93 : i32
    %148 = arith.index_cast %147 : i32 to index
    %c0_94 = arith.constant 0 : index
    %149 = vector.load %arg2[%148, %c0_94] : memref<51x128xf32, #tpu.memory_space<vmem>>, vector<1x128xf32>
    %c14 = arith.constant 14 : index
    %c0_95 = arith.constant 0 : index
    %150 = vector.load %arg5[%c14, %c0_95] : memref<64x128xf32, #tpu.memory_space<vmem>>, vector<1x128xf32>
    tpu.vector_store %arg5[%c14, %c0_95], %149 {strides = array<i32>} : memref<64x128xf32, #tpu.memory_space<vmem>>, vector<1x128xf32>,
    %c7_i32_96 = arith.constant 7 : i32
    %151 = arith.addi %0, %c7_i32_96 : i32
    %c8_i32_97 = arith.constant 8 : i32
    %152 = arith.muli %151, %c8_i32_97 : i32
    %c1_i32_98 = arith.constant 1 : i32
    %153 = arith.addi %152, %c1_i32_98 : i32
    %154 = arith.index_cast %153 : i32 to index
    %155 = memref.load %arg1[%154] : memref<128xi32, #tpu.memory_space<smem>>
    %c0_i32_99 = arith.constant 0 : i32
    %156 = arith.maxsi %155, %c0_i32_99 : i32
    %c49_i32_100 = arith.constant 49 : i32
    %157 = arith.minsi %156, %c49_i32_100 : i32
    %158 = arith.index_cast %157 : i32 to index
    %c0_101 = arith.constant 0 : index
    %159 = vector.load %arg2[%158, %c0_101] : memref<51x128xf32, #tpu.memory_space<vmem>>, vector<1x128xf32>
    %c15 = arith.constant 15 : index
    %c0_102 = arith.constant 0 : index
    %160 = vector.load %arg5[%c15, %c0_102] : memref<64x128xf32, #tpu.memory_space<vmem>>, vector<1x128xf32>
    tpu.vector_store %arg5[%c15, %c0_102], %159 {strides = array<i32>} : memref<64x128xf32, #tpu.memory_space<vmem>>, vector<1x128xf32>,
    %c0_i32_103 = arith.constant 0 : i32
    %161 = arith.addi %0, %c0_i32_103 : i32
    %c8_i32_104 = arith.constant 8 : i32
    %162 = arith.muli %161, %c8_i32_104 : i32
    %c2_i32_105 = arith.constant 2 : i32
    %163 = arith.addi %162, %c2_i32_105 : i32
    %164 = arith.index_cast %163 : i32 to index
    %165 = memref.load %arg1[%164] : memref<128xi32, #tpu.memory_space<smem>>
    %c0_i32_106 = arith.constant 0 : i32
    %166 = arith.maxsi %165, %c0_i32_106 : i32
    %c49_i32_107 = arith.constant 49 : i32
    %167 = arith.minsi %166, %c49_i32_107 : i32
    %168 = arith.index_cast %167 : i32 to index
    %c0_108 = arith.constant 0 : index
    %169 = vector.load %arg2[%168, %c0_108] : memref<51x128xf32, #tpu.memory_space<vmem>>, vector<1x128xf32>
    %c16 = arith.constant 16 : index
    %c0_109 = arith.constant 0 : index
    %170 = vector.load %arg5[%c16, %c0_109] : memref<64x128xf32, #tpu.memory_space<vmem>>, vector<1x128xf32>
    tpu.vector_store %arg5[%c16, %c0_109], %169 {strides = array<i32>} : memref<64x128xf32, #tpu.memory_space<vmem>>, vector<1x128xf32>,
    %c1_i32_110 = arith.constant 1 : i32
    %171 = arith.addi %0, %c1_i32_110 : i32
    %c8_i32_111 = arith.constant 8 : i32
    %172 = arith.muli %171, %c8_i32_111 : i32
    %c2_i32_112 = arith.constant 2 : i32
    %173 = arith.addi %172, %c2_i32_112 : i32
    %174 = arith.index_cast %173 : i32 to index
    %175 = memref.load %arg1[%174] : memref<128xi32, #tpu.memory_space<smem>>
    %c0_i32_113 = arith.constant 0 : i32
    %176 = arith.maxsi %175, %c0_i32_113 : i32
    %c49_i32_114 = arith.constant 49 : i32
    %177 = arith.minsi %176, %c49_i32_114 : i32
    %178 = arith.index_cast %177 : i32 to index
    %c0_115 = arith.constant 0 : index
    %179 = vector.load %arg2[%178, %c0_115] : memref<51x128xf32, #tpu.memory_space<vmem>>, vector<1x128xf32>
    %c17 = arith.constant 17 : index
    %c0_116 = arith.constant 0 : index
    %180 = vector.load %arg5[%c17, %c0_116] : memref<64x128xf32, #tpu.memory_space<vmem>>, vector<1x128xf32>
    tpu.vector_store %arg5[%c17, %c0_116], %179 {strides = array<i32>} : memref<64x128xf32, #tpu.memory_space<vmem>>, vector<1x128xf32>,
    %c2_i32_117 = arith.constant 2 : i32
    %181 = arith.addi %0, %c2_i32_117 : i32
    %c8_i32_118 = arith.constant 8 : i32
    %182 = arith.muli %181, %c8_i32_118 : i32
    %c2_i32_119 = arith.constant 2 : i32
    %183 = arith.addi %182, %c2_i32_119 : i32
    %184 = arith.index_cast %183 : i32 to index
    %185 = memref.load %arg1[%184] : memref<128xi32, #tpu.memory_space<smem>>
    %c0_i32_120 = arith.constant 0 : i32
    %186 = arith.maxsi %185, %c0_i32_120 : i32
    %c49_i32_121 = arith.constant 49 : i32
    %187 = arith.minsi %186, %c49_i32_121 : i32
    %188 = arith.index_cast %187 : i32 to index
    %c0_122 = arith.constant 0 : index
    %189 = vector.load %arg2[%188, %c0_122] : memref<51x128xf32, #tpu.memory_space<vmem>>, vector<1x128xf32>
    %c18 = arith.constant 18 : index
    %c0_123 = arith.constant 0 : index
    %190 = vector.load %arg5[%c18, %c0_123] : memref<64x128xf32, #tpu.memory_space<vmem>>, vector<1x128xf32>
    tpu.vector_store %arg5[%c18, %c0_123], %189 {strides = array<i32>} : memref<64x128xf32, #tpu.memory_space<vmem>>, vector<1x128xf32>,
    %c3_i32_124 = arith.constant 3 : i32
    %191 = arith.addi %0, %c3_i32_124 : i32
    %c8_i32_125 = arith.constant 8 : i32
    %192 = arith.muli %191, %c8_i32_125 : i32
    %c2_i32_126 = arith.constant 2 : i32
    %193 = arith.addi %192, %c2_i32_126 : i32
    %194 = arith.index_cast %193 : i32 to index
    %195 = memref.load %arg1[%194] : memref<128xi32, #tpu.memory_space<smem>>
    %c0_i32_127 = arith.constant 0 : i32
    %196 = arith.maxsi %195, %c0_i32_127 : i32
    %c49_i32_128 = arith.constant 49 : i32
    %197 = arith.minsi %196, %c49_i32_128 : i32
    %198 = arith.index_cast %197 : i32 to index
    %c0_129 = arith.constant 0 : index
    %199 = vector.load %arg2[%198, %c0_129] : memref<51x128xf32, #tpu.memory_space<vmem>>, vector<1x128xf32>
    %c19 = arith.constant 19 : index
    %c0_130 = arith.constant 0 : index
    %200 = vector.load %arg5[%c19, %c0_130] : memref<64x128xf32, #tpu.memory_space<vmem>>, vector<1x128xf32>
    tpu.vector_store %arg5[%c19, %c0_130], %199 {strides = array<i32>} : memref<64x128xf32, #tpu.memory_space<vmem>>, vector<1x128xf32>,
    %c4_i32_131 = arith.constant 4 : i32
    %201 = arith.addi %0, %c4_i32_131 : i32
    %c8_i32_132 = arith.constant 8 : i32
    %202 = arith.muli %201, %c8_i32_132 : i32
    %c2_i32_133 = arith.constant 2 : i32
    %203 = arith.addi %202, %c2_i32_133 : i32
    %204 = arith.index_cast %203 : i32 to index
    %205 = memref.load %arg1[%204] : memref<128xi32, #tpu.memory_space<smem>>
    %c0_i32_134 = arith.constant 0 : i32
    %206 = arith.maxsi %205, %c0_i32_134 : i32
    %c49_i32_135 = arith.constant 49 : i32
    %207 = arith.minsi %206, %c49_i32_135 : i32
    %208 = arith.index_cast %207 : i32 to index
    %c0_136 = arith.constant 0 : index
    %209 = vector.load %arg2[%208, %c0_136] : memref<51x128xf32, #tpu.memory_space<vmem>>, vector<1x128xf32>
    %c20 = arith.constant 20 : index
    %c0_137 = arith.constant 0 : index
    %210 = vector.load %arg5[%c20, %c0_137] : memref<64x128xf32, #tpu.memory_space<vmem>>, vector<1x128xf32>
    tpu.vector_store %arg5[%c20, %c0_137], %209 {strides = array<i32>} : memref<64x128xf32, #tpu.memory_space<vmem>>, vector<1x128xf32>,
    %c5_i32_138 = arith.constant 5 : i32
    %211 = arith.addi %0, %c5_i32_138 : i32
    %c8_i32_139 = arith.constant 8 : i32
    %212 = arith.muli %211, %c8_i32_139 : i32
    %c2_i32_140 = arith.constant 2 : i32
    %213 = arith.addi %212, %c2_i32_140 : i32
    %214 = arith.index_cast %213 : i32 to index
    %215 = memref.load %arg1[%214] : memref<128xi32, #tpu.memory_space<smem>>
    %c0_i32_141 = arith.constant 0 : i32
    %216 = arith.maxsi %215, %c0_i32_141 : i32
    %c49_i32_142 = arith.constant 49 : i32
    %217 = arith.minsi %216, %c49_i32_142 : i32
    %218 = arith.index_cast %217 : i32 to index
    %c0_143 = arith.constant 0 : index
    %219 = vector.load %arg2[%218, %c0_143] : memref<51x128xf32, #tpu.memory_space<vmem>>, vector<1x128xf32>
    %c21 = arith.constant 21 : index
    %c0_144 = arith.constant 0 : index
    %220 = vector.load %arg5[%c21, %c0_144] : memref<64x128xf32, #tpu.memory_space<vmem>>, vector<1x128xf32>
    tpu.vector_store %arg5[%c21, %c0_144], %219 {strides = array<i32>} : memref<64x128xf32, #tpu.memory_space<vmem>>, vector<1x128xf32>,
    %c6_i32_145 = arith.constant 6 : i32
    %221 = arith.addi %0, %c6_i32_145 : i32
    %c8_i32_146 = arith.constant 8 : i32
    %222 = arith.muli %221, %c8_i32_146 : i32
    %c2_i32_147 = arith.constant 2 : i32
    %223 = arith.addi %222, %c2_i32_147 : i32
    %224 = arith.index_cast %223 : i32 to index
    %225 = memref.load %arg1[%224] : memref<128xi32, #tpu.memory_space<smem>>
    %c0_i32_148 = arith.constant 0 : i32
    %226 = arith.maxsi %225, %c0_i32_148 : i32
    %c49_i32_149 = arith.constant 49 : i32
    %227 = arith.minsi %226, %c49_i32_149 : i32
    %228 = arith.index_cast %227 : i32 to index
    %c0_150 = arith.constant 0 : index
    %229 = vector.load %arg2[%228, %c0_150] : memref<51x128xf32, #tpu.memory_space<vmem>>, vector<1x128xf32>
    %c22 = arith.constant 22 : index
    %c0_151 = arith.constant 0 : index
    %230 = vector.load %arg5[%c22, %c0_151] : memref<64x128xf32, #tpu.memory_space<vmem>>, vector<1x128xf32>
    tpu.vector_store %arg5[%c22, %c0_151], %229 {strides = array<i32>} : memref<64x128xf32, #tpu.memory_space<vmem>>, vector<1x128xf32>,
    %c7_i32_152 = arith.constant 7 : i32
    %231 = arith.addi %0, %c7_i32_152 : i32
    %c8_i32_153 = arith.constant 8 : i32
    %232 = arith.muli %231, %c8_i32_153 : i32
    %c2_i32_154 = arith.constant 2 : i32
    %233 = arith.addi %232, %c2_i32_154 : i32
    %234 = arith.index_cast %233 : i32 to index
    %235 = memref.load %arg1[%234] : memref<128xi32, #tpu.memory_space<smem>>
    %c0_i32_155 = arith.constant 0 : i32
    %236 = arith.maxsi %235, %c0_i32_155 : i32
    %c49_i32_156 = arith.constant 49 : i32
    %237 = arith.minsi %236, %c49_i32_156 : i32
    %238 = arith.index_cast %237 : i32 to index
    %c0_157 = arith.constant 0 : index
    %239 = vector.load %arg2[%238, %c0_157] : memref<51x128xf32, #tpu.memory_space<vmem>>, vector<1x128xf32>
    %c23 = arith.constant 23 : index
    %c0_158 = arith.constant 0 : index
    %240 = vector.load %arg5[%c23, %c0_158] : memref<64x128xf32, #tpu.memory_space<vmem>>, vector<1x128xf32>
    tpu.vector_store %arg5[%c23, %c0_158], %239 {strides = array<i32>} : memref<64x128xf32, #tpu.memory_space<vmem>>, vector<1x128xf32>,
    %c0_i32_159 = arith.constant 0 : i32
    %241 = arith.addi %0, %c0_i32_159 : i32
    %c8_i32_160 = arith.constant 8 : i32
    %242 = arith.muli %241, %c8_i32_160 : i32
    %c3_i32_161 = arith.constant 3 : i32
    %243 = arith.addi %242, %c3_i32_161 : i32
    %244 = arith.index_cast %243 : i32 to index
    %245 = memref.load %arg1[%244] : memref<128xi32, #tpu.memory_space<smem>>
    %c0_i32_162 = arith.constant 0 : i32
    %246 = arith.maxsi %245, %c0_i32_162 : i32
    %c49_i32_163 = arith.constant 49 : i32
    %247 = arith.minsi %246, %c49_i32_163 : i32
    %248 = arith.index_cast %247 : i32 to index
    %c0_164 = arith.constant 0 : index
    %249 = vector.load %arg2[%248, %c0_164] : memref<51x128xf32, #tpu.memory_space<vmem>>, vector<1x128xf32>
    %c24 = arith.constant 24 : index
    %c0_165 = arith.constant 0 : index
    %250 = vector.load %arg5[%c24, %c0_165] : memref<64x128xf32, #tpu.memory_space<vmem>>, vector<1x128xf32>
    tpu.vector_store %arg5[%c24, %c0_165], %249 {strides = array<i32>} : memref<64x128xf32, #tpu.memory_space<vmem>>, vector<1x128xf32>,
    %c1_i32_166 = arith.constant 1 : i32
    %251 = arith.addi %0, %c1_i32_166 : i32
    %c8_i32_167 = arith.constant 8 : i32
    %252 = arith.muli %251, %c8_i32_167 : i32
    %c3_i32_168 = arith.constant 3 : i32
    %253 = arith.addi %252, %c3_i32_168 : i32
    %254 = arith.index_cast %253 : i32 to index
    %255 = memref.load %arg1[%254] : memref<128xi32, #tpu.memory_space<smem>>
    %c0_i32_169 = arith.constant 0 : i32
    %256 = arith.maxsi %255, %c0_i32_169 : i32
    %c49_i32_170 = arith.constant 49 : i32
    %257 = arith.minsi %256, %c49_i32_170 : i32
    %258 = arith.index_cast %257 : i32 to index
    %c0_171 = arith.constant 0 : index
    %259 = vector.load %arg2[%258, %c0_171] : memref<51x128xf32, #tpu.memory_space<vmem>>, vector<1x128xf32>
    %c25 = arith.constant 25 : index
    %c0_172 = arith.constant 0 : index
    %260 = vector.load %arg5[%c25, %c0_172] : memref<64x128xf32, #tpu.memory_space<vmem>>, vector<1x128xf32>
    tpu.vector_store %arg5[%c25, %c0_172], %259 {strides = array<i32>} : memref<64x128xf32, #tpu.memory_space<vmem>>, vector<1x128xf32>,
    %c2_i32_173 = arith.constant 2 : i32
    %261 = arith.addi %0, %c2_i32_173 : i32
    %c8_i32_174 = arith.constant 8 : i32
    %262 = arith.muli %261, %c8_i32_174 : i32
    %c3_i32_175 = arith.constant 3 : i32
    %263 = arith.addi %262, %c3_i32_175 : i32
    %264 = arith.index_cast %263 : i32 to index
    %265 = memref.load %arg1[%264] : memref<128xi32, #tpu.memory_space<smem>>
    %c0_i32_176 = arith.constant 0 : i32
    %266 = arith.maxsi %265, %c0_i32_176 : i32
    %c49_i32_177 = arith.constant 49 : i32
    %267 = arith.minsi %266, %c49_i32_177 : i32
    %268 = arith.index_cast %267 : i32 to index
    %c0_178 = arith.constant 0 : index
    %269 = vector.load %arg2[%268, %c0_178] : memref<51x128xf32, #tpu.memory_space<vmem>>, vector<1x128xf32>
    %c26 = arith.constant 26 : index
    %c0_179 = arith.constant 0 : index
    %270 = vector.load %arg5[%c26, %c0_179] : memref<64x128xf32, #tpu.memory_space<vmem>>, vector<1x128xf32>
    tpu.vector_store %arg5[%c26, %c0_179], %269 {strides = array<i32>} : memref<64x128xf32, #tpu.memory_space<vmem>>, vector<1x128xf32>,
    %c3_i32_180 = arith.constant 3 : i32
    %271 = arith.addi %0, %c3_i32_180 : i32
    %c8_i32_181 = arith.constant 8 : i32
    %272 = arith.muli %271, %c8_i32_181 : i32
    %c3_i32_182 = arith.constant 3 : i32
    %273 = arith.addi %272, %c3_i32_182 : i32
    %274 = arith.index_cast %273 : i32 to index
    %275 = memref.load %arg1[%274] : memref<128xi32, #tpu.memory_space<smem>>
    %c0_i32_183 = arith.constant 0 : i32
    %276 = arith.maxsi %275, %c0_i32_183 : i32
    %c49_i32_184 = arith.constant 49 : i32
    %277 = arith.minsi %276, %c49_i32_184 : i32
    %278 = arith.index_cast %277 : i32 to index
    %c0_185 = arith.constant 0 : index
    %279 = vector.load %arg2[%278, %c0_185] : memref<51x128xf32, #tpu.memory_space<vmem>>, vector<1x128xf32>
    %c27 = arith.constant 27 : index
    %c0_186 = arith.constant 0 : index
    %280 = vector.load %arg5[%c27, %c0_186] : memref<64x128xf32, #tpu.memory_space<vmem>>, vector<1x128xf32>
    tpu.vector_store %arg5[%c27, %c0_186], %279 {strides = array<i32>} : memref<64x128xf32, #tpu.memory_space<vmem>>, vector<1x128xf32>,
    %c4_i32_187 = arith.constant 4 : i32
    %281 = arith.addi %0, %c4_i32_187 : i32
    %c8_i32_188 = arith.constant 8 : i32
    %282 = arith.muli %281, %c8_i32_188 : i32
    %c3_i32_189 = arith.constant 3 : i32
    %283 = arith.addi %282, %c3_i32_189 : i32
    %284 = arith.index_cast %283 : i32 to index
    %285 = memref.load %arg1[%284] : memref<128xi32, #tpu.memory_space<smem>>
    %c0_i32_190 = arith.constant 0 : i32
    %286 = arith.maxsi %285, %c0_i32_190 : i32
    %c49_i32_191 = arith.constant 49 : i32
    %287 = arith.minsi %286, %c49_i32_191 : i32
    %288 = arith.index_cast %287 : i32 to index
    %c0_192 = arith.constant 0 : index
    %289 = vector.load %arg2[%288, %c0_192] : memref<51x128xf32, #tpu.memory_space<vmem>>, vector<1x128xf32>
    %c28 = arith.constant 28 : index
    %c0_193 = arith.constant 0 : index
    %290 = vector.load %arg5[%c28, %c0_193] : memref<64x128xf32, #tpu.memory_space<vmem>>, vector<1x128xf32>
    tpu.vector_store %arg5[%c28, %c0_193], %289 {strides = array<i32>} : memref<64x128xf32, #tpu.memory_space<vmem>>, vector<1x128xf32>,
    %c5_i32_194 = arith.constant 5 : i32
    %291 = arith.addi %0, %c5_i32_194 : i32
    %c8_i32_195 = arith.constant 8 : i32
    %292 = arith.muli %291, %c8_i32_195 : i32
    %c3_i32_196 = arith.constant 3 : i32
    %293 = arith.addi %292, %c3_i32_196 : i32
    %294 = arith.index_cast %293 : i32 to index
    %295 = memref.load %arg1[%294] : memref<128xi32, #tpu.memory_space<smem>>
    %c0_i32_197 = arith.constant 0 : i32
    %296 = arith.maxsi %295, %c0_i32_197 : i32
    %c49_i32_198 = arith.constant 49 : i32
    %297 = arith.minsi %296, %c49_i32_198 : i32
    %298 = arith.index_cast %297 : i32 to index
    %c0_199 = arith.constant 0 : index
    %299 = vector.load %arg2[%298, %c0_199] : memref<51x128xf32, #tpu.memory_space<vmem>>, vector<1x128xf32>
    %c29 = arith.constant 29 : index
    %c0_200 = arith.constant 0 : index
    %300 = vector.load %arg5[%c29, %c0_200] : memref<64x128xf32, #tpu.memory_space<vmem>>, vector<1x128xf32>
    tpu.vector_store %arg5[%c29, %c0_200], %299 {strides = array<i32>} : memref<64x128xf32, #tpu.memory_space<vmem>>, vector<1x128xf32>,
    %c6_i32_201 = arith.constant 6 : i32
    %301 = arith.addi %0, %c6_i32_201 : i32
    %c8_i32_202 = arith.constant 8 : i32
    %302 = arith.muli %301, %c8_i32_202 : i32
    %c3_i32_203 = arith.constant 3 : i32
    %303 = arith.addi %302, %c3_i32_203 : i32
    %304 = arith.index_cast %303 : i32 to index
    %305 = memref.load %arg1[%304] : memref<128xi32, #tpu.memory_space<smem>>
    %c0_i32_204 = arith.constant 0 : i32
    %306 = arith.maxsi %305, %c0_i32_204 : i32
    %c49_i32_205 = arith.constant 49 : i32
    %307 = arith.minsi %306, %c49_i32_205 : i32
    %308 = arith.index_cast %307 : i32 to index
    %c0_206 = arith.constant 0 : index
    %309 = vector.load %arg2[%308, %c0_206] : memref<51x128xf32, #tpu.memory_space<vmem>>, vector<1x128xf32>
    %c30 = arith.constant 30 : index
    %c0_207 = arith.constant 0 : index
    %310 = vector.load %arg5[%c30, %c0_207] : memref<64x128xf32, #tpu.memory_space<vmem>>, vector<1x128xf32>
    tpu.vector_store %arg5[%c30, %c0_207], %309 {strides = array<i32>} : memref<64x128xf32, #tpu.memory_space<vmem>>, vector<1x128xf32>,
    %c7_i32_208 = arith.constant 7 : i32
    %311 = arith.addi %0, %c7_i32_208 : i32
    %c8_i32_209 = arith.constant 8 : i32
    %312 = arith.muli %311, %c8_i32_209 : i32
    %c3_i32_210 = arith.constant 3 : i32
    %313 = arith.addi %312, %c3_i32_210 : i32
    %314 = arith.index_cast %313 : i32 to index
    %315 = memref.load %arg1[%314] : memref<128xi32, #tpu.memory_space<smem>>
    %c0_i32_211 = arith.constant 0 : i32
    %316 = arith.maxsi %315, %c0_i32_211 : i32
    %c49_i32_212 = arith.constant 49 : i32
    %317 = arith.minsi %316, %c49_i32_212 : i32
    %318 = arith.index_cast %317 : i32 to index
    %c0_213 = arith.constant 0 : index
    %319 = vector.load %arg2[%318, %c0_213] : memref<51x128xf32, #tpu.memory_space<vmem>>, vector<1x128xf32>
    %c31 = arith.constant 31 : index
    %c0_214 = arith.constant 0 : index
    %320 = vector.load %arg5[%c31, %c0_214] : memref<64x128xf32, #tpu.memory_space<vmem>>, vector<1x128xf32>
    tpu.vector_store %arg5[%c31, %c0_214], %319 {strides = array<i32>} : memref<64x128xf32, #tpu.memory_space<vmem>>, vector<1x128xf32>,
    %c0_i32_215 = arith.constant 0 : i32
    %321 = arith.addi %0, %c0_i32_215 : i32
    %c8_i32_216 = arith.constant 8 : i32
    %322 = arith.muli %321, %c8_i32_216 : i32
    %c4_i32_217 = arith.constant 4 : i32
    %323 = arith.addi %322, %c4_i32_217 : i32
    %324 = arith.index_cast %323 : i32 to index
    %325 = memref.load %arg1[%324] : memref<128xi32, #tpu.memory_space<smem>>
    %c0_i32_218 = arith.constant 0 : i32
    %326 = arith.maxsi %325, %c0_i32_218 : i32
    %c49_i32_219 = arith.constant 49 : i32
    %327 = arith.minsi %326, %c49_i32_219 : i32
    %328 = arith.index_cast %327 : i32 to index
    %c0_220 = arith.constant 0 : index
    %329 = vector.load %arg2[%328, %c0_220] : memref<51x128xf32, #tpu.memory_space<vmem>>, vector<1x128xf32>
    %c32 = arith.constant 32 : index
    %c0_221 = arith.constant 0 : index
    %330 = vector.load %arg5[%c32, %c0_221] : memref<64x128xf32, #tpu.memory_space<vmem>>, vector<1x128xf32>
    tpu.vector_store %arg5[%c32, %c0_221], %329 {strides = array<i32>} : memref<64x128xf32, #tpu.memory_space<vmem>>, vector<1x128xf32>,
    %c1_i32_222 = arith.constant 1 : i32
    %331 = arith.addi %0, %c1_i32_222 : i32
    %c8_i32_223 = arith.constant 8 : i32
    %332 = arith.muli %331, %c8_i32_223 : i32
    %c4_i32_224 = arith.constant 4 : i32
    %333 = arith.addi %332, %c4_i32_224 : i32
    %334 = arith.index_cast %333 : i32 to index
    %335 = memref.load %arg1[%334] : memref<128xi32, #tpu.memory_space<smem>>
    %c0_i32_225 = arith.constant 0 : i32
    %336 = arith.maxsi %335, %c0_i32_225 : i32
    %c49_i32_226 = arith.constant 49 : i32
    %337 = arith.minsi %336, %c49_i32_226 : i32
    %338 = arith.index_cast %337 : i32 to index
    %c0_227 = arith.constant 0 : index
    %339 = vector.load %arg2[%338, %c0_227] : memref<51x128xf32, #tpu.memory_space<vmem>>, vector<1x128xf32>
    %c33 = arith.constant 33 : index
    %c0_228 = arith.constant 0 : index
    %340 = vector.load %arg5[%c33, %c0_228] : memref<64x128xf32, #tpu.memory_space<vmem>>, vector<1x128xf32>
    tpu.vector_store %arg5[%c33, %c0_228], %339 {strides = array<i32>} : memref<64x128xf32, #tpu.memory_space<vmem>>, vector<1x128xf32>,
    %c2_i32_229 = arith.constant 2 : i32
    %341 = arith.addi %0, %c2_i32_229 : i32
    %c8_i32_230 = arith.constant 8 : i32
    %342 = arith.muli %341, %c8_i32_230 : i32
    %c4_i32_231 = arith.constant 4 : i32
    %343 = arith.addi %342, %c4_i32_231 : i32
    %344 = arith.index_cast %343 : i32 to index
    %345 = memref.load %arg1[%344] : memref<128xi32, #tpu.memory_space<smem>>
    %c0_i32_232 = arith.constant 0 : i32
    %346 = arith.maxsi %345, %c0_i32_232 : i32
    %c49_i32_233 = arith.constant 49 : i32
    %347 = arith.minsi %346, %c49_i32_233 : i32
    %348 = arith.index_cast %347 : i32 to index
    %c0_234 = arith.constant 0 : index
    %349 = vector.load %arg2[%348, %c0_234] : memref<51x128xf32, #tpu.memory_space<vmem>>, vector<1x128xf32>
    %c34 = arith.constant 34 : index
    %c0_235 = arith.constant 0 : index
    %350 = vector.load %arg5[%c34, %c0_235] : memref<64x128xf32, #tpu.memory_space<vmem>>, vector<1x128xf32>
    tpu.vector_store %arg5[%c34, %c0_235], %349 {strides = array<i32>} : memref<64x128xf32, #tpu.memory_space<vmem>>, vector<1x128xf32>,
    %c3_i32_236 = arith.constant 3 : i32
    %351 = arith.addi %0, %c3_i32_236 : i32
    %c8_i32_237 = arith.constant 8 : i32
    %352 = arith.muli %351, %c8_i32_237 : i32
    %c4_i32_238 = arith.constant 4 : i32
    %353 = arith.addi %352, %c4_i32_238 : i32
    %354 = arith.index_cast %353 : i32 to index
    %355 = memref.load %arg1[%354] : memref<128xi32, #tpu.memory_space<smem>>
    %c0_i32_239 = arith.constant 0 : i32
    %356 = arith.maxsi %355, %c0_i32_239 : i32
    %c49_i32_240 = arith.constant 49 : i32
    %357 = arith.minsi %356, %c49_i32_240 : i32
    %358 = arith.index_cast %357 : i32 to index
    %c0_241 = arith.constant 0 : index
    %359 = vector.load %arg2[%358, %c0_241] : memref<51x128xf32, #tpu.memory_space<vmem>>, vector<1x128xf32>
    %c35 = arith.constant 35 : index
    %c0_242 = arith.constant 0 : index
    %360 = vector.load %arg5[%c35, %c0_242] : memref<64x128xf32, #tpu.memory_space<vmem>>, vector<1x128xf32>
    tpu.vector_store %arg5[%c35, %c0_242], %359 {strides = array<i32>} : memref<64x128xf32, #tpu.memory_space<vmem>>, vector<1x128xf32>,
    %c4_i32_243 = arith.constant 4 : i32
    %361 = arith.addi %0, %c4_i32_243 : i32
    %c8_i32_244 = arith.constant 8 : i32
    %362 = arith.muli %361, %c8_i32_244 : i32
    %c4_i32_245 = arith.constant 4 : i32
    %363 = arith.addi %362, %c4_i32_245 : i32
    %364 = arith.index_cast %363 : i32 to index
    %365 = memref.load %arg1[%364] : memref<128xi32, #tpu.memory_space<smem>>
    %c0_i32_246 = arith.constant 0 : i32
    %366 = arith.maxsi %365, %c0_i32_246 : i32
    %c49_i32_247 = arith.constant 49 : i32
    %367 = arith.minsi %366, %c49_i32_247 : i32
    %368 = arith.index_cast %367 : i32 to index
    %c0_248 = arith.constant 0 : index
    %369 = vector.load %arg2[%368, %c0_248] : memref<51x128xf32, #tpu.memory_space<vmem>>, vector<1x128xf32>
    %c36 = arith.constant 36 : index
    %c0_249 = arith.constant 0 : index
    %370 = vector.load %arg5[%c36, %c0_249] : memref<64x128xf32, #tpu.memory_space<vmem>>, vector<1x128xf32>
    tpu.vector_store %arg5[%c36, %c0_249], %369 {strides = array<i32>} : memref<64x128xf32, #tpu.memory_space<vmem>>, vector<1x128xf32>,
    %c5_i32_250 = arith.constant 5 : i32
    %371 = arith.addi %0, %c5_i32_250 : i32
    %c8_i32_251 = arith.constant 8 : i32
    %372 = arith.muli %371, %c8_i32_251 : i32
    %c4_i32_252 = arith.constant 4 : i32
    %373 = arith.addi %372, %c4_i32_252 : i32
    %374 = arith.index_cast %373 : i32 to index
    %375 = memref.load %arg1[%374] : memref<128xi32, #tpu.memory_space<smem>>
    %c0_i32_253 = arith.constant 0 : i32
    %376 = arith.maxsi %375, %c0_i32_253 : i32
    %c49_i32_254 = arith.constant 49 : i32
    %377 = arith.minsi %376, %c49_i32_254 : i32
    %378 = arith.index_cast %377 : i32 to index
    %c0_255 = arith.constant 0 : index
    %379 = vector.load %arg2[%378, %c0_255] : memref<51x128xf32, #tpu.memory_space<vmem>>, vector<1x128xf32>
    %c37 = arith.constant 37 : index
    %c0_256 = arith.constant 0 : index
    %380 = vector.load %arg5[%c37, %c0_256] : memref<64x128xf32, #tpu.memory_space<vmem>>, vector<1x128xf32>
    tpu.vector_store %arg5[%c37, %c0_256], %379 {strides = array<i32>} : memref<64x128xf32, #tpu.memory_space<vmem>>, vector<1x128xf32>,
    %c6_i32_257 = arith.constant 6 : i32
    %381 = arith.addi %0, %c6_i32_257 : i32
    %c8_i32_258 = arith.constant 8 : i32
    %382 = arith.muli %381, %c8_i32_258 : i32
    %c4_i32_259 = arith.constant 4 : i32
    %383 = arith.addi %382, %c4_i32_259 : i32
    %384 = arith.index_cast %383 : i32 to index
    %385 = memref.load %arg1[%384] : memref<128xi32, #tpu.memory_space<smem>>
    %c0_i32_260 = arith.constant 0 : i32
    %386 = arith.maxsi %385, %c0_i32_260 : i32
    %c49_i32_261 = arith.constant 49 : i32
    %387 = arith.minsi %386, %c49_i32_261 : i32
    %388 = arith.index_cast %387 : i32 to index
    %c0_262 = arith.constant 0 : index
    %389 = vector.load %arg2[%388, %c0_262] : memref<51x128xf32, #tpu.memory_space<vmem>>, vector<1x128xf32>
    %c38 = arith.constant 38 : index
    %c0_263 = arith.constant 0 : index
    %390 = vector.load %arg5[%c38, %c0_263] : memref<64x128xf32, #tpu.memory_space<vmem>>, vector<1x128xf32>
    tpu.vector_store %arg5[%c38, %c0_263], %389 {strides = array<i32>} : memref<64x128xf32, #tpu.memory_space<vmem>>, vector<1x128xf32>,
    %c7_i32_264 = arith.constant 7 : i32
    %391 = arith.addi %0, %c7_i32_264 : i32
    %c8_i32_265 = arith.constant 8 : i32
    %392 = arith.muli %391, %c8_i32_265 : i32
    %c4_i32_266 = arith.constant 4 : i32
    %393 = arith.addi %392, %c4_i32_266 : i32
    %394 = arith.index_cast %393 : i32 to index
    %395 = memref.load %arg1[%394] : memref<128xi32, #tpu.memory_space<smem>>
    %c0_i32_267 = arith.constant 0 : i32
    %396 = arith.maxsi %395, %c0_i32_267 : i32
    %c49_i32_268 = arith.constant 49 : i32
    %397 = arith.minsi %396, %c49_i32_268 : i32
    %398 = arith.index_cast %397 : i32 to index
    %c0_269 = arith.constant 0 : index
    %399 = vector.load %arg2[%398, %c0_269] : memref<51x128xf32, #tpu.memory_space<vmem>>, vector<1x128xf32>
    %c39 = arith.constant 39 : index
    %c0_270 = arith.constant 0 : index
    %400 = vector.load %arg5[%c39, %c0_270] : memref<64x128xf32, #tpu.memory_space<vmem>>, vector<1x128xf32>
    tpu.vector_store %arg5[%c39, %c0_270], %399 {strides = array<i32>} : memref<64x128xf32, #tpu.memory_space<vmem>>, vector<1x128xf32>,
    %c0_i32_271 = arith.constant 0 : i32
    %401 = arith.addi %0, %c0_i32_271 : i32
    %c8_i32_272 = arith.constant 8 : i32
    %402 = arith.muli %401, %c8_i32_272 : i32
    %c5_i32_273 = arith.constant 5 : i32
    %403 = arith.addi %402, %c5_i32_273 : i32
    %404 = arith.index_cast %403 : i32 to index
    %405 = memref.load %arg1[%404] : memref<128xi32, #tpu.memory_space<smem>>
    %c0_i32_274 = arith.constant 0 : i32
    %406 = arith.maxsi %405, %c0_i32_274 : i32
    %c49_i32_275 = arith.constant 49 : i32
    %407 = arith.minsi %406, %c49_i32_275 : i32
    %408 = arith.index_cast %407 : i32 to index
    %c0_276 = arith.constant 0 : index
    %409 = vector.load %arg2[%408, %c0_276] : memref<51x128xf32, #tpu.memory_space<vmem>>, vector<1x128xf32>
    %c40 = arith.constant 40 : index
    %c0_277 = arith.constant 0 : index
    %410 = vector.load %arg5[%c40, %c0_277] : memref<64x128xf32, #tpu.memory_space<vmem>>, vector<1x128xf32>
    tpu.vector_store %arg5[%c40, %c0_277], %409 {strides = array<i32>} : memref<64x128xf32, #tpu.memory_space<vmem>>, vector<1x128xf32>,
    %c1_i32_278 = arith.constant 1 : i32
    %411 = arith.addi %0, %c1_i32_278 : i32
    %c8_i32_279 = arith.constant 8 : i32
    %412 = arith.muli %411, %c8_i32_279 : i32
    %c5_i32_280 = arith.constant 5 : i32
    %413 = arith.addi %412, %c5_i32_280 : i32
    %414 = arith.index_cast %413 : i32 to index
    %415 = memref.load %arg1[%414] : memref<128xi32, #tpu.memory_space<smem>>
    %c0_i32_281 = arith.constant 0 : i32
    %416 = arith.maxsi %415, %c0_i32_281 : i32
    %c49_i32_282 = arith.constant 49 : i32
    %417 = arith.minsi %416, %c49_i32_282 : i32
    %418 = arith.index_cast %417 : i32 to index
    %c0_283 = arith.constant 0 : index
    %419 = vector.load %arg2[%418, %c0_283] : memref<51x128xf32, #tpu.memory_space<vmem>>, vector<1x128xf32>
    %c41 = arith.constant 41 : index
    %c0_284 = arith.constant 0 : index
    %420 = vector.load %arg5[%c41, %c0_284] : memref<64x128xf32, #tpu.memory_space<vmem>>, vector<1x128xf32>
    tpu.vector_store %arg5[%c41, %c0_284], %419 {strides = array<i32>} : memref<64x128xf32, #tpu.memory_space<vmem>>, vector<1x128xf32>,
    %c2_i32_285 = arith.constant 2 : i32
    %421 = arith.addi %0, %c2_i32_285 : i32
    %c8_i32_286 = arith.constant 8 : i32
    %422 = arith.muli %421, %c8_i32_286 : i32
    %c5_i32_287 = arith.constant 5 : i32
    %423 = arith.addi %422, %c5_i32_287 : i32
    %424 = arith.index_cast %423 : i32 to index
    %425 = memref.load %arg1[%424] : memref<128xi32, #tpu.memory_space<smem>>
    %c0_i32_288 = arith.constant 0 : i32
    %426 = arith.maxsi %425, %c0_i32_288 : i32
    %c49_i32_289 = arith.constant 49 : i32
    %427 = arith.minsi %426, %c49_i32_289 : i32
    %428 = arith.index_cast %427 : i32 to index
    %c0_290 = arith.constant 0 : index
    %429 = vector.load %arg2[%428, %c0_290] : memref<51x128xf32, #tpu.memory_space<vmem>>, vector<1x128xf32>
    %c42 = arith.constant 42 : index
    %c0_291 = arith.constant 0 : index
    %430 = vector.load %arg5[%c42, %c0_291] : memref<64x128xf32, #tpu.memory_space<vmem>>, vector<1x128xf32>
    tpu.vector_store %arg5[%c42, %c0_291], %429 {strides = array<i32>} : memref<64x128xf32, #tpu.memory_space<vmem>>, vector<1x128xf32>,
    %c3_i32_292 = arith.constant 3 : i32
    %431 = arith.addi %0, %c3_i32_292 : i32
    %c8_i32_293 = arith.constant 8 : i32
    %432 = arith.muli %431, %c8_i32_293 : i32
    %c5_i32_294 = arith.constant 5 : i32
    %433 = arith.addi %432, %c5_i32_294 : i32
    %434 = arith.index_cast %433 : i32 to index
    %435 = memref.load %arg1[%434] : memref<128xi32, #tpu.memory_space<smem>>
    %c0_i32_295 = arith.constant 0 : i32
    %436 = arith.maxsi %435, %c0_i32_295 : i32
    %c49_i32_296 = arith.constant 49 : i32
    %437 = arith.minsi %436, %c49_i32_296 : i32
    %438 = arith.index_cast %437 : i32 to index
    %c0_297 = arith.constant 0 : index
    %439 = vector.load %arg2[%438, %c0_297] : memref<51x128xf32, #tpu.memory_space<vmem>>, vector<1x128xf32>
    %c43 = arith.constant 43 : index
    %c0_298 = arith.constant 0 : index
    %440 = vector.load %arg5[%c43, %c0_298] : memref<64x128xf32, #tpu.memory_space<vmem>>, vector<1x128xf32>
    tpu.vector_store %arg5[%c43, %c0_298], %439 {strides = array<i32>} : memref<64x128xf32, #tpu.memory_space<vmem>>, vector<1x128xf32>,
    %c4_i32_299 = arith.constant 4 : i32
    %441 = arith.addi %0, %c4_i32_299 : i32
    %c8_i32_300 = arith.constant 8 : i32
    %442 = arith.muli %441, %c8_i32_300 : i32
    %c5_i32_301 = arith.constant 5 : i32
    %443 = arith.addi %442, %c5_i32_301 : i32
    %444 = arith.index_cast %443 : i32 to index
    %445 = memref.load %arg1[%444] : memref<128xi32, #tpu.memory_space<smem>>
    %c0_i32_302 = arith.constant 0 : i32
    %446 = arith.maxsi %445, %c0_i32_302 : i32
    %c49_i32_303 = arith.constant 49 : i32
    %447 = arith.minsi %446, %c49_i32_303 : i32
    %448 = arith.index_cast %447 : i32 to index
    %c0_304 = arith.constant 0 : index
    %449 = vector.load %arg2[%448, %c0_304] : memref<51x128xf32, #tpu.memory_space<vmem>>, vector<1x128xf32>
    %c44 = arith.constant 44 : index
    %c0_305 = arith.constant 0 : index
    %450 = vector.load %arg5[%c44, %c0_305] : memref<64x128xf32, #tpu.memory_space<vmem>>, vector<1x128xf32>
    tpu.vector_store %arg5[%c44, %c0_305], %449 {strides = array<i32>} : memref<64x128xf32, #tpu.memory_space<vmem>>, vector<1x128xf32>,
    %c5_i32_306 = arith.constant 5 : i32
    %451 = arith.addi %0, %c5_i32_306 : i32
    %c8_i32_307 = arith.constant 8 : i32
    %452 = arith.muli %451, %c8_i32_307 : i32
    %c5_i32_308 = arith.constant 5 : i32
    %453 = arith.addi %452, %c5_i32_308 : i32
    %454 = arith.index_cast %453 : i32 to index
    %455 = memref.load %arg1[%454] : memref<128xi32, #tpu.memory_space<smem>>
    %c0_i32_309 = arith.constant 0 : i32
    %456 = arith.maxsi %455, %c0_i32_309 : i32
    %c49_i32_310 = arith.constant 49 : i32
    %457 = arith.minsi %456, %c49_i32_310 : i32
    %458 = arith.index_cast %457 : i32 to index
    %c0_311 = arith.constant 0 : index
    %459 = vector.load %arg2[%458, %c0_311] : memref<51x128xf32, #tpu.memory_space<vmem>>, vector<1x128xf32>
    %c45 = arith.constant 45 : index
    %c0_312 = arith.constant 0 : index
    %460 = vector.load %arg5[%c45, %c0_312] : memref<64x128xf32, #tpu.memory_space<vmem>>, vector<1x128xf32>
    tpu.vector_store %arg5[%c45, %c0_312], %459 {strides = array<i32>} : memref<64x128xf32, #tpu.memory_space<vmem>>, vector<1x128xf32>,
    %c6_i32_313 = arith.constant 6 : i32
    %461 = arith.addi %0, %c6_i32_313 : i32
    %c8_i32_314 = arith.constant 8 : i32
    %462 = arith.muli %461, %c8_i32_314 : i32
    %c5_i32_315 = arith.constant 5 : i32
    %463 = arith.addi %462, %c5_i32_315 : i32
    %464 = arith.index_cast %463 : i32 to index
    %465 = memref.load %arg1[%464] : memref<128xi32, #tpu.memory_space<smem>>
    %c0_i32_316 = arith.constant 0 : i32
    %466 = arith.maxsi %465, %c0_i32_316 : i32
    %c49_i32_317 = arith.constant 49 : i32
    %467 = arith.minsi %466, %c49_i32_317 : i32
    %468 = arith.index_cast %467 : i32 to index
    %c0_318 = arith.constant 0 : index
    %469 = vector.load %arg2[%468, %c0_318] : memref<51x128xf32, #tpu.memory_space<vmem>>, vector<1x128xf32>
    %c46 = arith.constant 46 : index
    %c0_319 = arith.constant 0 : index
    %470 = vector.load %arg5[%c46, %c0_319] : memref<64x128xf32, #tpu.memory_space<vmem>>, vector<1x128xf32>
    tpu.vector_store %arg5[%c46, %c0_319], %469 {strides = array<i32>} : memref<64x128xf32, #tpu.memory_space<vmem>>, vector<1x128xf32>,
    %c7_i32_320 = arith.constant 7 : i32
    %471 = arith.addi %0, %c7_i32_320 : i32
    %c8_i32_321 = arith.constant 8 : i32
    %472 = arith.muli %471, %c8_i32_321 : i32
    %c5_i32_322 = arith.constant 5 : i32
    %473 = arith.addi %472, %c5_i32_322 : i32
    %474 = arith.index_cast %473 : i32 to index
    %475 = memref.load %arg1[%474] : memref<128xi32, #tpu.memory_space<smem>>
    %c0_i32_323 = arith.constant 0 : i32
    %476 = arith.maxsi %475, %c0_i32_323 : i32
    %c49_i32_324 = arith.constant 49 : i32
    %477 = arith.minsi %476, %c49_i32_324 : i32
    %478 = arith.index_cast %477 : i32 to index
    %c0_325 = arith.constant 0 : index
    %479 = vector.load %arg2[%478, %c0_325] : memref<51x128xf32, #tpu.memory_space<vmem>>, vector<1x128xf32>
    %c47 = arith.constant 47 : index
    %c0_326 = arith.constant 0 : index
    %480 = vector.load %arg5[%c47, %c0_326] : memref<64x128xf32, #tpu.memory_space<vmem>>, vector<1x128xf32>
    tpu.vector_store %arg5[%c47, %c0_326], %479 {strides = array<i32>} : memref<64x128xf32, #tpu.memory_space<vmem>>, vector<1x128xf32>,
    %c0_i32_327 = arith.constant 0 : i32
    %481 = arith.addi %0, %c0_i32_327 : i32
    %c8_i32_328 = arith.constant 8 : i32
    %482 = arith.muli %481, %c8_i32_328 : i32
    %c6_i32_329 = arith.constant 6 : i32
    %483 = arith.addi %482, %c6_i32_329 : i32
    %484 = arith.index_cast %483 : i32 to index
    %485 = memref.load %arg1[%484] : memref<128xi32, #tpu.memory_space<smem>>
    %c0_i32_330 = arith.constant 0 : i32
    %486 = arith.maxsi %485, %c0_i32_330 : i32
    %c49_i32_331 = arith.constant 49 : i32
    %487 = arith.minsi %486, %c49_i32_331 : i32
    %488 = arith.index_cast %487 : i32 to index
    %c0_332 = arith.constant 0 : index
    %489 = vector.load %arg2[%488, %c0_332] : memref<51x128xf32, #tpu.memory_space<vmem>>, vector<1x128xf32>
    %c48 = arith.constant 48 : index
    %c0_333 = arith.constant 0 : index
    %490 = vector.load %arg5[%c48, %c0_333] : memref<64x128xf32, #tpu.memory_space<vmem>>, vector<1x128xf32>
    tpu.vector_store %arg5[%c48, %c0_333], %489 {strides = array<i32>} : memref<64x128xf32, #tpu.memory_space<vmem>>, vector<1x128xf32>,
    %c1_i32_334 = arith.constant 1 : i32
    %491 = arith.addi %0, %c1_i32_334 : i32
    %c8_i32_335 = arith.constant 8 : i32
    %492 = arith.muli %491, %c8_i32_335 : i32
    %c6_i32_336 = arith.constant 6 : i32
    %493 = arith.addi %492, %c6_i32_336 : i32
    %494 = arith.index_cast %493 : i32 to index
    %495 = memref.load %arg1[%494] : memref<128xi32, #tpu.memory_space<smem>>
    %c0_i32_337 = arith.constant 0 : i32
    %496 = arith.maxsi %495, %c0_i32_337 : i32
    %c49_i32_338 = arith.constant 49 : i32
    %497 = arith.minsi %496, %c49_i32_338 : i32
    %498 = arith.index_cast %497 : i32 to index
    %c0_339 = arith.constant 0 : index
    %499 = vector.load %arg2[%498, %c0_339] : memref<51x128xf32, #tpu.memory_space<vmem>>, vector<1x128xf32>
    %c49 = arith.constant 49 : index
    %c0_340 = arith.constant 0 : index
    %500 = vector.load %arg5[%c49, %c0_340] : memref<64x128xf32, #tpu.memory_space<vmem>>, vector<1x128xf32>
    tpu.vector_store %arg5[%c49, %c0_340], %499 {strides = array<i32>} : memref<64x128xf32, #tpu.memory_space<vmem>>, vector<1x128xf32>,
    %c2_i32_341 = arith.constant 2 : i32
    %501 = arith.addi %0, %c2_i32_341 : i32
    %c8_i32_342 = arith.constant 8 : i32
    %502 = arith.muli %501, %c8_i32_342 : i32
    %c6_i32_343 = arith.constant 6 : i32
    %503 = arith.addi %502, %c6_i32_343 : i32
    %504 = arith.index_cast %503 : i32 to index
    %505 = memref.load %arg1[%504] : memref<128xi32, #tpu.memory_space<smem>>
    %c0_i32_344 = arith.constant 0 : i32
    %506 = arith.maxsi %505, %c0_i32_344 : i32
    %c49_i32_345 = arith.constant 49 : i32
    %507 = arith.minsi %506, %c49_i32_345 : i32
    %508 = arith.index_cast %507 : i32 to index
    %c0_346 = arith.constant 0 : index
    %509 = vector.load %arg2[%508, %c0_346] : memref<51x128xf32, #tpu.memory_space<vmem>>, vector<1x128xf32>
    %c50 = arith.constant 50 : index
    %c0_347 = arith.constant 0 : index
    %510 = vector.load %arg5[%c50, %c0_347] : memref<64x128xf32, #tpu.memory_space<vmem>>, vector<1x128xf32>
    tpu.vector_store %arg5[%c50, %c0_347], %509 {strides = array<i32>} : memref<64x128xf32, #tpu.memory_space<vmem>>, vector<1x128xf32>,
    %c3_i32_348 = arith.constant 3 : i32
    %511 = arith.addi %0, %c3_i32_348 : i32
    %c8_i32_349 = arith.constant 8 : i32
    %512 = arith.muli %511, %c8_i32_349 : i32
    %c6_i32_350 = arith.constant 6 : i32
    %513 = arith.addi %512, %c6_i32_350 : i32
    %514 = arith.index_cast %513 : i32 to index
    %515 = memref.load %arg1[%514] : memref<128xi32, #tpu.memory_space<smem>>
    %c0_i32_351 = arith.constant 0 : i32
    %516 = arith.maxsi %515, %c0_i32_351 : i32
    %c49_i32_352 = arith.constant 49 : i32
    %517 = arith.minsi %516, %c49_i32_352 : i32
    %518 = arith.index_cast %517 : i32 to index
    %c0_353 = arith.constant 0 : index
    %519 = vector.load %arg2[%518, %c0_353] : memref<51x128xf32, #tpu.memory_space<vmem>>, vector<1x128xf32>
    %c51 = arith.constant 51 : index
    %c0_354 = arith.constant 0 : index
    %520 = vector.load %arg5[%c51, %c0_354] : memref<64x128xf32, #tpu.memory_space<vmem>>, vector<1x128xf32>
    tpu.vector_store %arg5[%c51, %c0_354], %519 {strides = array<i32>} : memref<64x128xf32, #tpu.memory_space<vmem>>, vector<1x128xf32>,
    %c4_i32_355 = arith.constant 4 : i32
    %521 = arith.addi %0, %c4_i32_355 : i32
    %c8_i32_356 = arith.constant 8 : i32
    %522 = arith.muli %521, %c8_i32_356 : i32
    %c6_i32_357 = arith.constant 6 : i32
    %523 = arith.addi %522, %c6_i32_357 : i32
    %524 = arith.index_cast %523 : i32 to index
    %525 = memref.load %arg1[%524] : memref<128xi32, #tpu.memory_space<smem>>
    %c0_i32_358 = arith.constant 0 : i32
    %526 = arith.maxsi %525, %c0_i32_358 : i32
    %c49_i32_359 = arith.constant 49 : i32
    %527 = arith.minsi %526, %c49_i32_359 : i32
    %528 = arith.index_cast %527 : i32 to index
    %c0_360 = arith.constant 0 : index
    %529 = vector.load %arg2[%528, %c0_360] : memref<51x128xf32, #tpu.memory_space<vmem>>, vector<1x128xf32>
    %c52 = arith.constant 52 : index
    %c0_361 = arith.constant 0 : index
    %530 = vector.load %arg5[%c52, %c0_361] : memref<64x128xf32, #tpu.memory_space<vmem>>, vector<1x128xf32>
    tpu.vector_store %arg5[%c52, %c0_361], %529 {strides = array<i32>} : memref<64x128xf32, #tpu.memory_space<vmem>>, vector<1x128xf32>,
    %c5_i32_362 = arith.constant 5 : i32
    %531 = arith.addi %0, %c5_i32_362 : i32
    %c8_i32_363 = arith.constant 8 : i32
    %532 = arith.muli %531, %c8_i32_363 : i32
    %c6_i32_364 = arith.constant 6 : i32
    %533 = arith.addi %532, %c6_i32_364 : i32
    %534 = arith.index_cast %533 : i32 to index
    %535 = memref.load %arg1[%534] : memref<128xi32, #tpu.memory_space<smem>>
    %c0_i32_365 = arith.constant 0 : i32
    %536 = arith.maxsi %535, %c0_i32_365 : i32
    %c49_i32_366 = arith.constant 49 : i32
    %537 = arith.minsi %536, %c49_i32_366 : i32
    %538 = arith.index_cast %537 : i32 to index
    %c0_367 = arith.constant 0 : index
    %539 = vector.load %arg2[%538, %c0_367] : memref<51x128xf32, #tpu.memory_space<vmem>>, vector<1x128xf32>
    %c53 = arith.constant 53 : index
    %c0_368 = arith.constant 0 : index
    %540 = vector.load %arg5[%c53, %c0_368] : memref<64x128xf32, #tpu.memory_space<vmem>>, vector<1x128xf32>
    tpu.vector_store %arg5[%c53, %c0_368], %539 {strides = array<i32>} : memref<64x128xf32, #tpu.memory_space<vmem>>, vector<1x128xf32>,
    %c6_i32_369 = arith.constant 6 : i32
    %541 = arith.addi %0, %c6_i32_369 : i32
    %c8_i32_370 = arith.constant 8 : i32
    %542 = arith.muli %541, %c8_i32_370 : i32
    %c6_i32_371 = arith.constant 6 : i32
    %543 = arith.addi %542, %c6_i32_371 : i32
    %544 = arith.index_cast %543 : i32 to index
    %545 = memref.load %arg1[%544] : memref<128xi32, #tpu.memory_space<smem>>
    %c0_i32_372 = arith.constant 0 : i32
    %546 = arith.maxsi %545, %c0_i32_372 : i32
    %c49_i32_373 = arith.constant 49 : i32
    %547 = arith.minsi %546, %c49_i32_373 : i32
    %548 = arith.index_cast %547 : i32 to index
    %c0_374 = arith.constant 0 : index
    %549 = vector.load %arg2[%548, %c0_374] : memref<51x128xf32, #tpu.memory_space<vmem>>, vector<1x128xf32>
    %c54 = arith.constant 54 : index
    %c0_375 = arith.constant 0 : index
    %550 = vector.load %arg5[%c54, %c0_375] : memref<64x128xf32, #tpu.memory_space<vmem>>, vector<1x128xf32>
    tpu.vector_store %arg5[%c54, %c0_375], %549 {strides = array<i32>} : memref<64x128xf32, #tpu.memory_space<vmem>>, vector<1x128xf32>,
    %c7_i32_376 = arith.constant 7 : i32
    %551 = arith.addi %0, %c7_i32_376 : i32
    %c8_i32_377 = arith.constant 8 : i32
    %552 = arith.muli %551, %c8_i32_377 : i32
    %c6_i32_378 = arith.constant 6 : i32
    %553 = arith.addi %552, %c6_i32_378 : i32
    %554 = arith.index_cast %553 : i32 to index
    %555 = memref.load %arg1[%554] : memref<128xi32, #tpu.memory_space<smem>>
    %c0_i32_379 = arith.constant 0 : i32
    %556 = arith.maxsi %555, %c0_i32_379 : i32
    %c49_i32_380 = arith.constant 49 : i32
    %557 = arith.minsi %556, %c49_i32_380 : i32
    %558 = arith.index_cast %557 : i32 to index
    %c0_381 = arith.constant 0 : index
    %559 = vector.load %arg2[%558, %c0_381] : memref<51x128xf32, #tpu.memory_space<vmem>>, vector<1x128xf32>
    %c55 = arith.constant 55 : index
    %c0_382 = arith.constant 0 : index
    %560 = vector.load %arg5[%c55, %c0_382] : memref<64x128xf32, #tpu.memory_space<vmem>>, vector<1x128xf32>
    tpu.vector_store %arg5[%c55, %c0_382], %559 {strides = array<i32>} : memref<64x128xf32, #tpu.memory_space<vmem>>, vector<1x128xf32>,
    %c0_i32_383 = arith.constant 0 : i32
    %561 = arith.addi %0, %c0_i32_383 : i32
    %c8_i32_384 = arith.constant 8 : i32
    %562 = arith.muli %561, %c8_i32_384 : i32
    %c7_i32_385 = arith.constant 7 : i32
    %563 = arith.addi %562, %c7_i32_385 : i32
    %564 = arith.index_cast %563 : i32 to index
    %565 = memref.load %arg1[%564] : memref<128xi32, #tpu.memory_space<smem>>
    %c0_i32_386 = arith.constant 0 : i32
    %566 = arith.maxsi %565, %c0_i32_386 : i32
    %c49_i32_387 = arith.constant 49 : i32
    %567 = arith.minsi %566, %c49_i32_387 : i32
    %568 = arith.index_cast %567 : i32 to index
    %c0_388 = arith.constant 0 : index
    %569 = vector.load %arg2[%568, %c0_388] : memref<51x128xf32, #tpu.memory_space<vmem>>, vector<1x128xf32>
    %c56 = arith.constant 56 : index
    %c0_389 = arith.constant 0 : index
    %570 = vector.load %arg5[%c56, %c0_389] : memref<64x128xf32, #tpu.memory_space<vmem>>, vector<1x128xf32>
    tpu.vector_store %arg5[%c56, %c0_389], %569 {strides = array<i32>} : memref<64x128xf32, #tpu.memory_space<vmem>>, vector<1x128xf32>,
    %c1_i32_390 = arith.constant 1 : i32
    %571 = arith.addi %0, %c1_i32_390 : i32
    %c8_i32_391 = arith.constant 8 : i32
    %572 = arith.muli %571, %c8_i32_391 : i32
    %c7_i32_392 = arith.constant 7 : i32
    %573 = arith.addi %572, %c7_i32_392 : i32
    %574 = arith.index_cast %573 : i32 to index
    %575 = memref.load %arg1[%574] : memref<128xi32, #tpu.memory_space<smem>>
    %c0_i32_393 = arith.constant 0 : i32
    %576 = arith.maxsi %575, %c0_i32_393 : i32
    %c49_i32_394 = arith.constant 49 : i32
    %577 = arith.minsi %576, %c49_i32_394 : i32
    %578 = arith.index_cast %577 : i32 to index
    %c0_395 = arith.constant 0 : index
    %579 = vector.load %arg2[%578, %c0_395] : memref<51x128xf32, #tpu.memory_space<vmem>>, vector<1x128xf32>
    %c57 = arith.constant 57 : index
    %c0_396 = arith.constant 0 : index
    %580 = vector.load %arg5[%c57, %c0_396] : memref<64x128xf32, #tpu.memory_space<vmem>>, vector<1x128xf32>
    tpu.vector_store %arg5[%c57, %c0_396], %579 {strides = array<i32>} : memref<64x128xf32, #tpu.memory_space<vmem>>, vector<1x128xf32>,
    %c2_i32_397 = arith.constant 2 : i32
    %581 = arith.addi %0, %c2_i32_397 : i32
    %c8_i32_398 = arith.constant 8 : i32
    %582 = arith.muli %581, %c8_i32_398 : i32
    %c7_i32_399 = arith.constant 7 : i32
    %583 = arith.addi %582, %c7_i32_399 : i32
    %584 = arith.index_cast %583 : i32 to index
    %585 = memref.load %arg1[%584] : memref<128xi32, #tpu.memory_space<smem>>
    %c0_i32_400 = arith.constant 0 : i32
    %586 = arith.maxsi %585, %c0_i32_400 : i32
    %c49_i32_401 = arith.constant 49 : i32
    %587 = arith.minsi %586, %c49_i32_401 : i32
    %588 = arith.index_cast %587 : i32 to index
    %c0_402 = arith.constant 0 : index
    %589 = vector.load %arg2[%588, %c0_402] : memref<51x128xf32, #tpu.memory_space<vmem>>, vector<1x128xf32>
    %c58 = arith.constant 58 : index
    %c0_403 = arith.constant 0 : index
    %590 = vector.load %arg5[%c58, %c0_403] : memref<64x128xf32, #tpu.memory_space<vmem>>, vector<1x128xf32>
    tpu.vector_store %arg5[%c58, %c0_403], %589 {strides = array<i32>} : memref<64x128xf32, #tpu.memory_space<vmem>>, vector<1x128xf32>,
    %c3_i32_404 = arith.constant 3 : i32
    %591 = arith.addi %0, %c3_i32_404 : i32
    %c8_i32_405 = arith.constant 8 : i32
    %592 = arith.muli %591, %c8_i32_405 : i32
    %c7_i32_406 = arith.constant 7 : i32
    %593 = arith.addi %592, %c7_i32_406 : i32
    %594 = arith.index_cast %593 : i32 to index
    %595 = memref.load %arg1[%594] : memref<128xi32, #tpu.memory_space<smem>>
    %c0_i32_407 = arith.constant 0 : i32
    %596 = arith.maxsi %595, %c0_i32_407 : i32
    %c49_i32_408 = arith.constant 49 : i32
    %597 = arith.minsi %596, %c49_i32_408 : i32
    %598 = arith.index_cast %597 : i32 to index
    %c0_409 = arith.constant 0 : index
    %599 = vector.load %arg2[%598, %c0_409] : memref<51x128xf32, #tpu.memory_space<vmem>>, vector<1x128xf32>
    %c59 = arith.constant 59 : index
    %c0_410 = arith.constant 0 : index
    %600 = vector.load %arg5[%c59, %c0_410] : memref<64x128xf32, #tpu.memory_space<vmem>>, vector<1x128xf32>
    tpu.vector_store %arg5[%c59, %c0_410], %599 {strides = array<i32>} : memref<64x128xf32, #tpu.memory_space<vmem>>, vector<1x128xf32>,
    %c4_i32_411 = arith.constant 4 : i32
    %601 = arith.addi %0, %c4_i32_411 : i32
    %c8_i32_412 = arith.constant 8 : i32
    %602 = arith.muli %601, %c8_i32_412 : i32
    %c7_i32_413 = arith.constant 7 : i32
    %603 = arith.addi %602, %c7_i32_413 : i32
    %604 = arith.index_cast %603 : i32 to index
    %605 = memref.load %arg1[%604] : memref<128xi32, #tpu.memory_space<smem>>
    %c0_i32_414 = arith.constant 0 : i32
    %606 = arith.maxsi %605, %c0_i32_414 : i32
    %c49_i32_415 = arith.constant 49 : i32
    %607 = arith.minsi %606, %c49_i32_415 : i32
    %608 = arith.index_cast %607 : i32 to index
    %c0_416 = arith.constant 0 : index
    %609 = vector.load %arg2[%608, %c0_416] : memref<51x128xf32, #tpu.memory_space<vmem>>, vector<1x128xf32>
    %c60 = arith.constant 60 : index
    %c0_417 = arith.constant 0 : index
    %610 = vector.load %arg5[%c60, %c0_417] : memref<64x128xf32, #tpu.memory_space<vmem>>, vector<1x128xf32>
    tpu.vector_store %arg5[%c60, %c0_417], %609 {strides = array<i32>} : memref<64x128xf32, #tpu.memory_space<vmem>>, vector<1x128xf32>,
    %c5_i32_418 = arith.constant 5 : i32
    %611 = arith.addi %0, %c5_i32_418 : i32
    %c8_i32_419 = arith.constant 8 : i32
    %612 = arith.muli %611, %c8_i32_419 : i32
    %c7_i32_420 = arith.constant 7 : i32
    %613 = arith.addi %612, %c7_i32_420 : i32
    %614 = arith.index_cast %613 : i32 to index
    %615 = memref.load %arg1[%614] : memref<128xi32, #tpu.memory_space<smem>>
    %c0_i32_421 = arith.constant 0 : i32
    %616 = arith.maxsi %615, %c0_i32_421 : i32
    %c49_i32_422 = arith.constant 49 : i32
    %617 = arith.minsi %616, %c49_i32_422 : i32
    %618 = arith.index_cast %617 : i32 to index
    %c0_423 = arith.constant 0 : index
    %619 = vector.load %arg2[%618, %c0_423] : memref<51x128xf32, #tpu.memory_space<vmem>>, vector<1x128xf32>
    %c61 = arith.constant 61 : index
    %c0_424 = arith.constant 0 : index
    %620 = vector.load %arg5[%c61, %c0_424] : memref<64x128xf32, #tpu.memory_space<vmem>>, vector<1x128xf32>
    tpu.vector_store %arg5[%c61, %c0_424], %619 {strides = array<i32>} : memref<64x128xf32, #tpu.memory_space<vmem>>, vector<1x128xf32>,
    %c6_i32_425 = arith.constant 6 : i32
    %621 = arith.addi %0, %c6_i32_425 : i32
    %c8_i32_426 = arith.constant 8 : i32
    %622 = arith.muli %621, %c8_i32_426 : i32
    %c7_i32_427 = arith.constant 7 : i32
    %623 = arith.addi %622, %c7_i32_427 : i32
    %624 = arith.index_cast %623 : i32 to index
    %625 = memref.load %arg1[%624] : memref<128xi32, #tpu.memory_space<smem>>
    %c0_i32_428 = arith.constant 0 : i32
    %626 = arith.maxsi %625, %c0_i32_428 : i32
    %c49_i32_429 = arith.constant 49 : i32
    %627 = arith.minsi %626, %c49_i32_429 : i32
    %628 = arith.index_cast %627 : i32 to index
    %c0_430 = arith.constant 0 : index
    %629 = vector.load %arg2[%628, %c0_430] : memref<51x128xf32, #tpu.memory_space<vmem>>, vector<1x128xf32>
    %c62 = arith.constant 62 : index
    %c0_431 = arith.constant 0 : index
    %630 = vector.load %arg5[%c62, %c0_431] : memref<64x128xf32, #tpu.memory_space<vmem>>, vector<1x128xf32>
    tpu.vector_store %arg5[%c62, %c0_431], %629 {strides = array<i32>} : memref<64x128xf32, #tpu.memory_space<vmem>>, vector<1x128xf32>,
    %c7_i32_432 = arith.constant 7 : i32
    %631 = arith.addi %0, %c7_i32_432 : i32
    %c8_i32_433 = arith.constant 8 : i32
    %632 = arith.muli %631, %c8_i32_433 : i32
    %c7_i32_434 = arith.constant 7 : i32
    %633 = arith.addi %632, %c7_i32_434 : i32
    %634 = arith.index_cast %633 : i32 to index
    %635 = memref.load %arg1[%634] : memref<128xi32, #tpu.memory_space<smem>>
    %c0_i32_435 = arith.constant 0 : i32
    %636 = arith.maxsi %635, %c0_i32_435 : i32
    %c49_i32_436 = arith.constant 49 : i32
    %637 = arith.minsi %636, %c49_i32_436 : i32
    %638 = arith.index_cast %637 : i32 to index
    %c0_437 = arith.constant 0 : index
    %639 = vector.load %arg2[%638, %c0_437] : memref<51x128xf32, #tpu.memory_space<vmem>>, vector<1x128xf32>
    %c63 = arith.constant 63 : index
    %c0_438 = arith.constant 0 : index
    %640 = vector.load %arg5[%c63, %c0_438] : memref<64x128xf32, #tpu.memory_space<vmem>>, vector<1x128xf32>
    tpu.vector_store %arg5[%c63, %c0_438], %639 {strides = array<i32>} : memref<64x128xf32, #tpu.memory_space<vmem>>, vector<1x128xf32>,
    %c0_439 = arith.constant 0 : index
    %c0_440 = arith.constant 0 : index
    %641 = vector.load %arg3[%c0_439, %c0_440] : memref<64x128xbf16, #tpu.memory_space<vmem>>, vector<32x128xbf16>
    %cst = arith.constant 0.000000e+00 : f32
    %642 = vector.broadcast %cst : f32 to vector<8x32xf32>
    %cst_441 = arith.constant 0.000000e+00 : f32
    %643 = vector.broadcast %cst_441 : f32 to vector<8x32xf32>
    %c0_442 = arith.constant 0 : index
    %c0_443 = arith.constant 0 : index
    %644 = vector.load %arg5[%c0_442, %c0_443] : memref<64x128xf32, #tpu.memory_space<vmem>>, vector<8x128xf32>
    %645 = arith.truncf %642 : vector<8x32xf32> to vector<8x32xbf16>
    %cst_444 = arith.constant dense<0.000000e+00> : vector<8x128xf32>
    %646 = tpu.matmul %645, %641, %cst_444 {dimension_numbers = #tpu.dot_dimension_numbers<[1], [0], [0], [1], [0, 0, 1, 1], [], []>} : vector<8x32xbf16>, vector<32x128xbf16>, vector<8x128xf32> -> vector<8x128xf32>
    %647 = arith.addf %644, %646 : vector<8x128xf32>
    %648 = vector.extract_strided_slice %647 {offsets = [0, 0], sizes = [8, 96], strides = [1, 1]} : vector<8x128xf32> to vector<8x96xf32>
    %649 = arith.negf %648 : vector<8x96xf32>
    %650 = math.exp %649 : vector<8x96xf32>
    %cst_445 = arith.constant 1.000000e+00 : f32
    %651 = vector.broadcast %cst_445 : f32 to vector<8x96xf32>
    %652 = arith.addf %651, %650 : vector<8x96xf32>
    %653 = arith.divf %651, %652 : vector<8x96xf32>
    %654 = vector.extract_strided_slice %647 {offsets = [0, 96], sizes = [8, 32], strides = [1, 1]} : vector<8x128xf32> to vector<8x32xf32>
    %655 = math.tanh %654 : vector<8x32xf32>
    %656 = vector.extract_strided_slice %653 {offsets = [0, 0], sizes = [8, 32], strides = [1, 1]} : vector<8x96xf32> to vector<8x32xf32>
    %657 = vector.extract_strided_slice %653 {offsets = [0, 32], sizes = [8, 32], strides = [1, 1]} : vector<8x96xf32> to vector<8x32xf32>
    %658 = vector.extract_strided_slice %653 {offsets = [0, 64], sizes = [8, 32], strides = [1, 1]} : vector<8x96xf32> to vector<8x32xf32>
    %659 = arith.mulf %657, %643 : vector<8x32xf32>
    %660 = arith.mulf %656, %655 : vector<8x32xf32>
    %661 = arith.addf %659, %660 : vector<8x32xf32>
    %662 = math.tanh %661 : vector<8x32xf32>
    %663 = arith.mulf %658, %662 : vector<8x32xf32>
    %c8_446 = arith.constant 8 : index
    %c0_447 = arith.constant 0 : index
    %664 = vector.load %arg5[%c8_446, %c0_447] : memref<64x128xf32, #tpu.memory_space<vmem>>, vector<8x128xf32>
    %665 = arith.truncf %663 : vector<8x32xf32> to vector<8x32xbf16>
    %cst_448 = arith.constant dense<0.000000e+00> : vector<8x128xf32>
    %666 = tpu.matmul %665, %641, %cst_448 {dimension_numbers = #tpu.dot_dimension_numbers<[1], [0], [0], [1], [0, 0, 1, 1], [], []>} : vector<8x32xbf16>, vector<32x128xbf16>, vector<8x128xf32> -> vector<8x128xf32>
    %667 = arith.addf %664, %666 : vector<8x128xf32>
    %668 = vector.extract_strided_slice %667 {offsets = [0, 0], sizes = [8, 96], strides = [1, 1]} : vector<8x128xf32> to vector<8x96xf32>
    %669 = arith.negf %668 : vector<8x96xf32>
    %670 = math.exp %669 : vector<8x96xf32>
    %cst_449 = arith.constant 1.000000e+00 : f32
    %671 = vector.broadcast %cst_449 : f32 to vector<8x96xf32>
    %672 = arith.addf %671, %670 : vector<8x96xf32>
    %673 = arith.divf %671, %672 : vector<8x96xf32>
    %674 = vector.extract_strided_slice %667 {offsets = [0, 96], sizes = [8, 32], strides = [1, 1]} : vector<8x128xf32> to vector<8x32xf32>
    %675 = math.tanh %674 : vector<8x32xf32>
    %676 = vector.extract_strided_slice %673 {offsets = [0, 0], sizes = [8, 32], strides = [1, 1]} : vector<8x96xf32> to vector<8x32xf32>
    %677 = vector.extract_strided_slice %673 {offsets = [0, 32], sizes = [8, 32], strides = [1, 1]} : vector<8x96xf32> to vector<8x32xf32>
    %678 = vector.extract_strided_slice %673 {offsets = [0, 64], sizes = [8, 32], strides = [1, 1]} : vector<8x96xf32> to vector<8x32xf32>
    %679 = arith.mulf %677, %661 : vector<8x32xf32>
    %680 = arith.mulf %676, %675 : vector<8x32xf32>
    %681 = arith.addf %679, %680 : vector<8x32xf32>
    %682 = math.tanh %681 : vector<8x32xf32>
    %683 = arith.mulf %678, %682 : vector<8x32xf32>
    %c16_450 = arith.constant 16 : index
    %c0_451 = arith.constant 0 : index
    %684 = vector.load %arg5[%c16_450, %c0_451] : memref<64x128xf32, #tpu.memory_space<vmem>>, vector<8x128xf32>
    %685 = arith.truncf %683 : vector<8x32xf32> to vector<8x32xbf16>
    %cst_452 = arith.constant dense<0.000000e+00> : vector<8x128xf32>
    %686 = tpu.matmul %685, %641, %cst_452 {dimension_numbers = #tpu.dot_dimension_numbers<[1], [0], [0], [1], [0, 0, 1, 1], [], []>} : vector<8x32xbf16>, vector<32x128xbf16>, vector<8x128xf32> -> vector<8x128xf32>
    %687 = arith.addf %684, %686 : vector<8x128xf32>
    %688 = vector.extract_strided_slice %687 {offsets = [0, 0], sizes = [8, 96], strides = [1, 1]} : vector<8x128xf32> to vector<8x96xf32>
    %689 = arith.negf %688 : vector<8x96xf32>
    %690 = math.exp %689 : vector<8x96xf32>
    %cst_453 = arith.constant 1.000000e+00 : f32
    %691 = vector.broadcast %cst_453 : f32 to vector<8x96xf32>
    %692 = arith.addf %691, %690 : vector<8x96xf32>
    %693 = arith.divf %691, %692 : vector<8x96xf32>
    %694 = vector.extract_strided_slice %687 {offsets = [0, 96], sizes = [8, 32], strides = [1, 1]} : vector<8x128xf32> to vector<8x32xf32>
    %695 = math.tanh %694 : vector<8x32xf32>
    %696 = vector.extract_strided_slice %693 {offsets = [0, 0], sizes = [8, 32], strides = [1, 1]} : vector<8x96xf32> to vector<8x32xf32>
    %697 = vector.extract_strided_slice %693 {offsets = [0, 32], sizes = [8, 32], strides = [1, 1]} : vector<8x96xf32> to vector<8x32xf32>
    %698 = vector.extract_strided_slice %693 {offsets = [0, 64], sizes = [8, 32], strides = [1, 1]} : vector<8x96xf32> to vector<8x32xf32>
    %699 = arith.mulf %697, %681 : vector<8x32xf32>
    %700 = arith.mulf %696, %695 : vector<8x32xf32>
    %701 = arith.addf %699, %700 : vector<8x32xf32>
    %702 = math.tanh %701 : vector<8x32xf32>
    %703 = arith.mulf %698, %702 : vector<8x32xf32>
    %c24_454 = arith.constant 24 : index
    %c0_455 = arith.constant 0 : index
    %704 = vector.load %arg5[%c24_454, %c0_455] : memref<64x128xf32, #tpu.memory_space<vmem>>, vector<8x128xf32>
    %705 = arith.truncf %703 : vector<8x32xf32> to vector<8x32xbf16>
    %cst_456 = arith.constant dense<0.000000e+00> : vector<8x128xf32>
    %706 = tpu.matmul %705, %641, %cst_456 {dimension_numbers = #tpu.dot_dimension_numbers<[1], [0], [0], [1], [0, 0, 1, 1], [], []>} : vector<8x32xbf16>, vector<32x128xbf16>, vector<8x128xf32> -> vector<8x128xf32>
    %707 = arith.addf %704, %706 : vector<8x128xf32>
    %708 = vector.extract_strided_slice %707 {offsets = [0, 0], sizes = [8, 96], strides = [1, 1]} : vector<8x128xf32> to vector<8x96xf32>
    %709 = arith.negf %708 : vector<8x96xf32>
    %710 = math.exp %709 : vector<8x96xf32>
    %cst_457 = arith.constant 1.000000e+00 : f32
    %711 = vector.broadcast %cst_457 : f32 to vector<8x96xf32>
    %712 = arith.addf %711, %710 : vector<8x96xf32>
    %713 = arith.divf %711, %712 : vector<8x96xf32>
    %714 = vector.extract_strided_slice %707 {offsets = [0, 96], sizes = [8, 32], strides = [1, 1]} : vector<8x128xf32> to vector<8x32xf32>
    %715 = math.tanh %714 : vector<8x32xf32>
    %716 = vector.extract_strided_slice %713 {offsets = [0, 0], sizes = [8, 32], strides = [1, 1]} : vector<8x96xf32> to vector<8x32xf32>
    %717 = vector.extract_strided_slice %713 {offsets = [0, 32], sizes = [8, 32], strides = [1, 1]} : vector<8x96xf32> to vector<8x32xf32>
    %718 = vector.extract_strided_slice %713 {offsets = [0, 64], sizes = [8, 32], strides = [1, 1]} : vector<8x96xf32> to vector<8x32xf32>
    %719 = arith.mulf %717, %701 : vector<8x32xf32>
    %720 = arith.mulf %716, %715 : vector<8x32xf32>
    %721 = arith.addf %719, %720 : vector<8x32xf32>
    %722 = math.tanh %721 : vector<8x32xf32>
    %723 = arith.mulf %718, %722 : vector<8x32xf32>
    %c32_458 = arith.constant 32 : index
    %c0_459 = arith.constant 0 : index
    %724 = vector.load %arg5[%c32_458, %c0_459] : memref<64x128xf32, #tpu.memory_space<vmem>>, vector<8x128xf32>
    %725 = arith.truncf %723 : vector<8x32xf32> to vector<8x32xbf16>
    %cst_460 = arith.constant dense<0.000000e+00> : vector<8x128xf32>
    %726 = tpu.matmul %725, %641, %cst_460 {dimension_numbers = #tpu.dot_dimension_numbers<[1], [0], [0], [1], [0, 0, 1, 1], [], []>} : vector<8x32xbf16>, vector<32x128xbf16>, vector<8x128xf32> -> vector<8x128xf32>
    %727 = arith.addf %724, %726 : vector<8x128xf32>
    %728 = vector.extract_strided_slice %727 {offsets = [0, 0], sizes = [8, 96], strides = [1, 1]} : vector<8x128xf32> to vector<8x96xf32>
    %729 = arith.negf %728 : vector<8x96xf32>
    %730 = math.exp %729 : vector<8x96xf32>
    %cst_461 = arith.constant 1.000000e+00 : f32
    %731 = vector.broadcast %cst_461 : f32 to vector<8x96xf32>
    %732 = arith.addf %731, %730 : vector<8x96xf32>
    %733 = arith.divf %731, %732 : vector<8x96xf32>
    %734 = vector.extract_strided_slice %727 {offsets = [0, 96], sizes = [8, 32], strides = [1, 1]} : vector<8x128xf32> to vector<8x32xf32>
    %735 = math.tanh %734 : vector<8x32xf32>
    %736 = vector.extract_strided_slice %733 {offsets = [0, 0], sizes = [8, 32], strides = [1, 1]} : vector<8x96xf32> to vector<8x32xf32>
    %737 = vector.extract_strided_slice %733 {offsets = [0, 32], sizes = [8, 32], strides = [1, 1]} : vector<8x96xf32> to vector<8x32xf32>
    %738 = vector.extract_strided_slice %733 {offsets = [0, 64], sizes = [8, 32], strides = [1, 1]} : vector<8x96xf32> to vector<8x32xf32>
    %739 = arith.mulf %737, %721 : vector<8x32xf32>
    %740 = arith.mulf %736, %735 : vector<8x32xf32>
    %741 = arith.addf %739, %740 : vector<8x32xf32>
    %742 = math.tanh %741 : vector<8x32xf32>
    %743 = arith.mulf %738, %742 : vector<8x32xf32>
    %c40_462 = arith.constant 40 : index
    %c0_463 = arith.constant 0 : index
    %744 = vector.load %arg5[%c40_462, %c0_463] : memref<64x128xf32, #tpu.memory_space<vmem>>, vector<8x128xf32>
    %745 = arith.truncf %743 : vector<8x32xf32> to vector<8x32xbf16>
    %cst_464 = arith.constant dense<0.000000e+00> : vector<8x128xf32>
    %746 = tpu.matmul %745, %641, %cst_464 {dimension_numbers = #tpu.dot_dimension_numbers<[1], [0], [0], [1], [0, 0, 1, 1], [], []>} : vector<8x32xbf16>, vector<32x128xbf16>, vector<8x128xf32> -> vector<8x128xf32>
    %747 = arith.addf %744, %746 : vector<8x128xf32>
    %748 = vector.extract_strided_slice %747 {offsets = [0, 0], sizes = [8, 96], strides = [1, 1]} : vector<8x128xf32> to vector<8x96xf32>
    %749 = arith.negf %748 : vector<8x96xf32>
    %750 = math.exp %749 : vector<8x96xf32>
    %cst_465 = arith.constant 1.000000e+00 : f32
    %751 = vector.broadcast %cst_465 : f32 to vector<8x96xf32>
    %752 = arith.addf %751, %750 : vector<8x96xf32>
    %753 = arith.divf %751, %752 : vector<8x96xf32>
    %754 = vector.extract_strided_slice %747 {offsets = [0, 96], sizes = [8, 32], strides = [1, 1]} : vector<8x128xf32> to vector<8x32xf32>
    %755 = math.tanh %754 : vector<8x32xf32>
    %756 = vector.extract_strided_slice %753 {offsets = [0, 0], sizes = [8, 32], strides = [1, 1]} : vector<8x96xf32> to vector<8x32xf32>
    %757 = vector.extract_strided_slice %753 {offsets = [0, 32], sizes = [8, 32], strides = [1, 1]} : vector<8x96xf32> to vector<8x32xf32>
    %758 = vector.extract_strided_slice %753 {offsets = [0, 64], sizes = [8, 32], strides = [1, 1]} : vector<8x96xf32> to vector<8x32xf32>
    %759 = arith.mulf %757, %741 : vector<8x32xf32>
    %760 = arith.mulf %756, %755 : vector<8x32xf32>
    %761 = arith.addf %759, %760 : vector<8x32xf32>
    %762 = math.tanh %761 : vector<8x32xf32>
    %763 = arith.mulf %758, %762 : vector<8x32xf32>
    %c48_466 = arith.constant 48 : index
    %c0_467 = arith.constant 0 : index
    %764 = vector.load %arg5[%c48_466, %c0_467] : memref<64x128xf32, #tpu.memory_space<vmem>>, vector<8x128xf32>
    %765 = arith.truncf %763 : vector<8x32xf32> to vector<8x32xbf16>
    %cst_468 = arith.constant dense<0.000000e+00> : vector<8x128xf32>
    %766 = tpu.matmul %765, %641, %cst_468 {dimension_numbers = #tpu.dot_dimension_numbers<[1], [0], [0], [1], [0, 0, 1, 1], [], []>} : vector<8x32xbf16>, vector<32x128xbf16>, vector<8x128xf32> -> vector<8x128xf32>
    %767 = arith.addf %764, %766 : vector<8x128xf32>
    %768 = vector.extract_strided_slice %767 {offsets = [0, 0], sizes = [8, 96], strides = [1, 1]} : vector<8x128xf32> to vector<8x96xf32>
    %769 = arith.negf %768 : vector<8x96xf32>
    %770 = math.exp %769 : vector<8x96xf32>
    %cst_469 = arith.constant 1.000000e+00 : f32
    %771 = vector.broadcast %cst_469 : f32 to vector<8x96xf32>
    %772 = arith.addf %771, %770 : vector<8x96xf32>
    %773 = arith.divf %771, %772 : vector<8x96xf32>
    %774 = vector.extract_strided_slice %767 {offsets = [0, 96], sizes = [8, 32], strides = [1, 1]} : vector<8x128xf32> to vector<8x32xf32>
    %775 = math.tanh %774 : vector<8x32xf32>
    %776 = vector.extract_strided_slice %773 {offsets = [0, 0], sizes = [8, 32], strides = [1, 1]} : vector<8x96xf32> to vector<8x32xf32>
    %777 = vector.extract_strided_slice %773 {offsets = [0, 32], sizes = [8, 32], strides = [1, 1]} : vector<8x96xf32> to vector<8x32xf32>
    %778 = vector.extract_strided_slice %773 {offsets = [0, 64], sizes = [8, 32], strides = [1, 1]} : vector<8x96xf32> to vector<8x32xf32>
    %779 = arith.mulf %777, %761 : vector<8x32xf32>
    %780 = arith.mulf %776, %775 : vector<8x32xf32>
    %781 = arith.addf %779, %780 : vector<8x32xf32>
    %782 = math.tanh %781 : vector<8x32xf32>
    %783 = arith.mulf %778, %782 : vector<8x32xf32>
    %c56_470 = arith.constant 56 : index
    %c0_471 = arith.constant 0 : index
    %784 = vector.load %arg5[%c56_470, %c0_471] : memref<64x128xf32, #tpu.memory_space<vmem>>, vector<8x128xf32>
    %785 = arith.truncf %783 : vector<8x32xf32> to vector<8x32xbf16>
    %cst_472 = arith.constant dense<0.000000e+00> : vector<8x128xf32>
    %786 = tpu.matmul %785, %641, %cst_472 {dimension_numbers = #tpu.dot_dimension_numbers<[1], [0], [0], [1], [0, 0, 1, 1], [], []>} : vector<8x32xbf16>, vector<32x128xbf16>, vector<8x128xf32> -> vector<8x128xf32>
    %787 = arith.addf %784, %786 : vector<8x128xf32>
    %788 = vector.extract_strided_slice %787 {offsets = [0, 0], sizes = [8, 96], strides = [1, 1]} : vector<8x128xf32> to vector<8x96xf32>
    %789 = arith.negf %788 : vector<8x96xf32>
    %790 = math.exp %789 : vector<8x96xf32>
    %cst_473 = arith.constant 1.000000e+00 : f32
    %791 = vector.broadcast %cst_473 : f32 to vector<8x96xf32>
    %792 = arith.addf %791, %790 : vector<8x96xf32>
    %793 = arith.divf %791, %792 : vector<8x96xf32>
    %794 = vector.extract_strided_slice %787 {offsets = [0, 96], sizes = [8, 32], strides = [1, 1]} : vector<8x128xf32> to vector<8x32xf32>
    %795 = math.tanh %794 : vector<8x32xf32>
    %796 = vector.extract_strided_slice %793 {offsets = [0, 0], sizes = [8, 32], strides = [1, 1]} : vector<8x96xf32> to vector<8x32xf32>
    %797 = vector.extract_strided_slice %793 {offsets = [0, 32], sizes = [8, 32], strides = [1, 1]} : vector<8x96xf32> to vector<8x32xf32>
    %798 = vector.extract_strided_slice %793 {offsets = [0, 64], sizes = [8, 32], strides = [1, 1]} : vector<8x96xf32> to vector<8x32xf32>
    %799 = arith.mulf %797, %781 : vector<8x32xf32>
    %800 = arith.mulf %796, %795 : vector<8x32xf32>
    %801 = arith.addf %799, %800 : vector<8x32xf32>
    %802 = math.tanh %801 : vector<8x32xf32>
    %803 = arith.mulf %798, %802 : vector<8x32xf32>
    %c32_474 = arith.constant 32 : index
    %c0_475 = arith.constant 0 : index
    %804 = vector.load %arg3[%c32_474, %c0_475] : memref<64x128xbf16, #tpu.memory_space<vmem>>, vector<32x128xbf16>
    %c50_476 = arith.constant 50 : index
    %c0_477 = arith.constant 0 : index
    %805 = vector.load %arg2[%c50_476, %c0_477] : memref<51x128xf32, #tpu.memory_space<vmem>>, vector<1x128xf32>
    %806 = arith.truncf %803 : vector<8x32xf32> to vector<8x32xbf16>
    %cst_478 = arith.constant dense<0.000000e+00> : vector<8x128xf32>
    %807 = tpu.matmul %806, %804, %cst_478 {dimension_numbers = #tpu.dot_dimension_numbers<[1], [0], [0], [1], [0, 0, 1, 1], [], []>} : vector<8x32xbf16>, vector<32x128xbf16>, vector<8x128xf32> -> vector<8x128xf32>
    %808 = vector.broadcast %805 : vector<1x128xf32> to vector<8x128xf32>
    %809 = arith.addf %807, %808 : vector<8x128xf32>
    %cst_479 = arith.constant dense<0xFF800000> : vector<8xf32>
    %810 = vector.multi_reduction <maximumf>, %809, %cst_479 [1] : vector<8x128xf32> to vector<8xf32>
    %811 = vector.shape_cast %810 : vector<8xf32> to vector<8x1xf32>
    %812 = vector.broadcast %811 : vector<8x1xf32> to vector<8x128xf32>
    %813 = arith.subf %809, %812 : vector<8x128xf32>
    %814 = math.exp %813 : vector<8x128xf32>
    %cst_480 = arith.constant dense<0.000000e+00> : vector<8xf32>
    %815 = vector.multi_reduction <add>, %814, %cst_480 [1] : vector<8x128xf32> to vector<8xf32>
    %816 = vector.shape_cast %815 : vector<8xf32> to vector<8x1xf32>
    %817 = math.log %816 : vector<8x1xf32>
    %818 = vector.broadcast %817 : vector<8x1xf32> to vector<8x128xf32>
    %819 = arith.subf %813, %818 : vector<8x128xf32>
    %c0_481 = arith.constant 0 : index
    %c0_482 = arith.constant 0 : index
    %820 = vector.load %arg4[%c0_481, %c0_482] : memref<8x128xf32, #tpu.memory_space<vmem>>, vector<8x128xf32>
    tpu.vector_store %arg4[%c0_481, %c0_482], %819 {strides = array<i32>} : memref<8x128xf32, #tpu.memory_space<vmem>>, vector<8x128xf32>,
    return
  }
  func.func @transform_0(%arg0: i32, %arg1: memref<128xi32, #tpu.memory_space<smem>>) -> (i32, i32) {
    %c0_i32 = arith.constant 0 : i32
    %c0_i32_0 = arith.constant 0 : i32
    %c0_i32_1 = arith.constant 0 : i32
    return %c0_i32, %c0_i32_0 : i32, i32
  }
  func.func @transform_1(%arg0: i32, %arg1: memref<128xi32, #tpu.memory_space<smem>>) -> (i32, i32) {
    %c0_i32 = arith.constant 0 : i32
    %c0_i32_0 = arith.constant 0 : i32
    %c0_i32_1 = arith.constant 0 : i32
    return %c0_i32, %c0_i32_0 : i32, i32
  }
  func.func @transform_2(%arg0: i32, %arg1: memref<128xi32, #tpu.memory_space<smem>>) -> (i32, i32) {
    %c0_i32 = arith.constant 0 : i32
    %c0_i32_0 = arith.constant 0 : i32
    return %arg0, %c0_i32 : i32, i32
  }
}

</mosaic_0001>

<bundles_post_ra>
// kernel: recurrent_classifier_forward_batched.1
= control target key start
LH: loop header
LB: loop body
LE: loop exit
PB: predicated region body
PF: predicated region fallthrough
CT: control target
= control target key end

     0   :  { %s2057_s15 = smov [#allocation4]   ;;  %s2341_s0 = inlined_call_operand.vmem [shape: s32[128], index: 0, kind: input, shape index: {}]   ;;  %s2342_s1 = inlined_call_operand.hbm [shape: f32[51,128], index: 1, kind: input, shape index: {}]   ;;  %s2343_s2 = inlined_call_operand.vmem [shape: bf16[64,128], index: 2, kind: input, shape index: {}]   ;;  %s2344_s3 = inlined_call_operand.vmem [shape: f32[16,128], index: 3, kind: output, shape index: {}]  }
   0x1   :  { %s9_s14 = sshll.u32 %s2341_s0, 4  ;;  %s10_s14 = int_to_ptr.vmem [resolvable:$true] %s9_s14 }
   0x2   :  { %12 = dma.vmem_to_smem %s10_s14, 16, %s2057_s15, [#allocation3] }
   0x3   :  { %2047 = dma.done.wait [#allocation3], 16 }
   0x4   :  { %2048 = vsyncadd [#allocation3], 4294967280 }
   0x5   :  { %15 = sfence }
   0x6   :  { %16 = vsyncpa [#allocation6], 0  ;;  %s2087_s16 = smov 0  }
   0x7 LB: > { %s106_s0 = sshll.u32 %s2342_s1, 4  ;;  %s2096_s19 = sadd.s32 4294967295, %s2055_s16   ;;  %s2055_s16 = sphi %s2087_s16, %s22_s16   ;;  %s107_s0 = int_to_ptr.hbm [resolvable:$true] %s106_s0 }
   0x8   : > { %p1386_p0 = scmp.ge.s32.totalorder %s2055_s16, 1  ;;  %p95_p1 = scmp.lt.s32.totalorder %s2055_s16, 3 }
   0x9   : > { %p1915_p2 = scmp.eq.s32.totalorder %s2096_s19, 0  ;;  %s2058_s20 = smov [#allocation5]  }
   0xa   : > { %p96_p3 = pnand %p1386_p0, %p95_p1  ;;  %s108_s21 = sshll.u32 %s2058_s20, 4  ;;  %s109_s21 = int_to_ptr.vmem [resolvable:$true] %s108_s21 }
   0xb   : > { %s2059_s22 = smov 128   ;;  %s2060_s23 = smov 8  }
   0xc   : > { %p1911_p4 = pneg %p96_p3  ;;  %127 = sbr.rel (%p96_p3) target bundleno = 5073 (0x13d1), region = 28 }
   0xe   : > { %p1912_p5 = pnand %p1915_p2, %p1911_p4 }
  0x10   : > { %1914 = dma.hbm_to_vmem [thread:$0]  (!%p1912_p5), %s107_s0, 896, %s109_s21, [#allocation6], %s2059_s22, %s2059_s22, %s2060_s23  }
  0x11   : > { %2050 = dma.done.wait (%p1915_p2), [#allocation6], 896  }
  0x12   : > { %2052 = vsyncadd (%p1915_p2), [#allocation6], 4294966400  ;;  %s2102_s24 = sshll.u32 %s2096_s19, 6  ;;  %v1897_v0 = vld [vmem:[%s2343_s2 + $0x8] sm:$0xff]  ;;  %v1896_v1 = vld [vmem:[%s2343_s2] sm:$0xff]  ;;  %v2061_v4 = vmov 0  }
  0x13   : > { %s151_s25 = sld [smem:[#allocation4 + %s2102_s24]]  ;;  %s2106_s26 = sadd.s32 8, %s2102_s24  ;;  %760 = vmatpush.bf16.msra.mxu0 %v1897_v0  ;;  %819 = vmatpush.bf16.msra.mxu1 %v1897_v0  ;;  %vm750_vm4 = vcmask 261120  }
  0x14   : > { %s161_s27 = sld [smem:[#allocation4 + %s2106_s26]]  ;;  %s2110_s28 = sadd.s32 16, %s2102_s24  ;;  %878 = vmatpush.bf16.msra.mxu2 %v1897_v0  ;;  %937 = vmatpush.bf16.msra.mxu3 %v1897_v0 }
  0x15   : > { %s2113_s29 = sld [smem:[#allocation4 + %s2110_s28]]  ;;  %s2116_s30 = sadd.s32 24, %s2102_s24 }
  0x16   : > { %s2119_s4 = sld [smem:[#allocation4 + %s2116_s30]]  ;;  %s2122_s5 = sadd.s32 32, %s2102_s24 }
  0x17   : > { %s2125_s6 = sld [smem:[#allocation4 + %s2122_s5]]  ;;  %s2128_s7 = sadd.s32 40, %s2102_s24  ;;  %761 = vmatpush.bf16.msra.mxu0 %v1896_v1  ;;  %820 = vmatpush.bf16.msra.mxu1 %v1896_v1 }
  0x18   : > { %s2131_s8 = sld [smem:[#allocation4 + %s2128_s7]]  ;;  %s2134_s9 = sadd.s32 48, %s2102_s24  ;;  %879 = vmatpush.bf16.msra.mxu2 %v1896_v1  ;;  %938 = vmatpush.bf16.msra.mxu3 %v1896_v1 }
  0x19   : > { %p152_p6 = scmp.gt.s32.totalorder %s151_s25, 0  ;;  %p1393_p7 = scmp.lt.s32.totalorder %s151_s25, 49 }
  0x1a   : > { %p162_p8 = scmp.gt.s32.totalorder %s161_s27, 0  ;;  %p1399_p9 = scmp.lt.s32.totalorder %s161_s27, 49  ;;  %762 = vmatmul.bf16.vlgmr.msra.gmra.mxu0 %v2061_v4 }
  0x1b   : > { %s2346_s25 = smov (!%p152_p6, %s151_s25), 0  ;;  %p172_p10 = scmp.gt.s32.totalorder %s2113_s29, 0  ;;  %996 = vmatpush.bf16.msrb.mxu0 %v1897_v0  ;;  %1055 = vmatpush.bf16.msrb.mxu1 %v1897_v0 }
  0x1c   : > { %s2348_s27 = smov (!%p162_p8, %s161_s27), 0  ;;  %s2350_s25 = smov (!%p1393_p7, %s2346_s25), 49  ;;  %1114 = vmatpush.bf16.msrb.mxu2 %v1897_v0  ;;  %1173 = vmatpush.bf16.msrb.mxu3 %v1897_v0 }
  0x1d   : > { %s2352_s27 = smov (!%p1399_p9, %s2348_s27), 49  ;;  %s156_s14 = scalar_lea.vmem [#allocation5], %s2350_s25 }
  0x1e   : > { %v157_v2 = vld [vmem:[%s156_s14] sm:$0x1]  ;;  %p1405_p11 = scmp.lt.s32.totalorder %s2113_s29, 49  ;;  %s166_s15 = scalar_lea.vmem [#allocation5], %s2352_s27 }
  0x1f   : > { %158 = vst [vmem:[#allocation2] sm:$0x1] %v157_v2  ;;  %v167_v3 = vld [vmem:[%s166_s15] sm:$0x1]  ;;  %s173_s17 = scalar_select %p172_p10, %s2113_s29, 0  ;;  %997 = vmatpush.bf16.msrb.mxu0 %v1896_v1  ;;  %1056 = vmatpush.bf16.msrb.mxu1 %v1896_v1 }
  0x20   : > { %168 = vst [vmem:[#allocation2 + $0x1] sm:$0x1] %v167_v3  ;;  %p182_p12 = scmp.gt.s32.totalorder %s2119_s4, 0  ;;  %p1411_p13 = scmp.lt.s32.totalorder %s2119_s4, 49  ;;  %1115 = vmatpush.bf16.msrb.mxu2 %v1896_v1  ;;  %1174 = vmatpush.bf16.msrb.mxu3 %v1896_v1 }
  0x21   : > { %s2354_s17 = smov (!%p1405_p11, %s173_s17), 49  ;;  %p192_p0 = scmp.gt.s32.totalorder %s2125_s6, 0 }
  0x22   : > { %s2356_s4 = smov (!%p182_p12, %s2119_s4), 0  ;;  %s176_s18 = scalar_lea.vmem [#allocation5], %s2354_s17 }
  0x23   : > { %v177_v5 = vld [vmem:[%s176_s18] sm:$0x1]  ;;  %s2358_s4 = smov (!%p1411_p13, %s2356_s4), 49  ;;  %p1417_p1 = scmp.lt.s32.totalorder %s2125_s6, 49 }
  0x24   : > { %178 = vst [vmem:[#allocation2 + $0x2] sm:$0x1] %v177_v5  ;;  %s193_s0 = scalar_select %p192_p0, %s2125_s6, 0 }
  0x25   : > { %s186_s20 = scalar_lea.vmem [#allocation5], %s2358_s4  ;;  %p202_p2 = scmp.gt.s32.totalorder %s2131_s8, 0 }
  0x26   : > { %v187_v6 = vld [vmem:[%s186_s20] sm:$0x1]  ;;  %p1423_p3 = scmp.lt.s32.totalorder %s2131_s8, 49  ;;  %s2360_s0 = smov (!%p1417_p1, %s193_s0), 49 }
  0x27   : > { %188 = vst [vmem:[#allocation2 + $0x3] sm:$0x1] %v187_v6  ;;  %s2362_s8 = smov (!%p202_p2, %s2131_s8), 0  ;;  %s211_s21 = sld [smem:[#allocation4 + %s2134_s9]] }
  0x28   : > { %s196_s22 = scalar_lea.vmem [#allocation5], %s2360_s0  ;;  %s2364_s8 = smov (!%p1423_p3, %s2362_s8), 49 }
  0x29   : > { %v197_v7 = vld [vmem:[%s196_s22] sm:$0x1]  ;;  %s2158_s23 = sadd.s32 56, %s2102_s24  ;;  %s206_s27 = scalar_lea.vmem [#allocation5], %s2364_s8 }
  0x2a   : > { %198 = vst [vmem:[#allocation2 + $0x4] sm:$0x1] %v197_v7  ;;  %s221_s25 = sld [smem:[#allocation4 + %s2158_s23]]  ;;  %v207_v8 = vld [vmem:[%s206_s27] sm:$0x1]  ;;  %s2062_s6 = smov 32  }
  0x2b   : > { %208 = vst [vmem:[#allocation2 + $0x5] sm:$0x1] %v207_v8  ;;  %s2063_s8 = smov 64   ;;  %s229_s10 = sadd.s32 1, %s2102_s24 }
  0x2c   : > { %s238_s11 = sadd.s32 1, %s2106_s26  ;;  %s230_s12 = sld [smem:[#allocation4 + %s229_s10]] }
  0x2d   : > { %p212_p4 = scmp.gt.s32.totalorder %s211_s21, 0  ;;  %p1429_p5 = scmp.lt.s32.totalorder %s211_s21, 49 }
  0x2e   : > { %s239_s13 = sld [smem:[#allocation4 + %s238_s11]]  ;;  %s247_s14 = sadd.s32 1, %s2110_s28 }
  0x2f   : > { %s2366_s21 = smov (!%p212_p4, %s211_s21), 0  ;;  %s256_s15 = sadd.s32 1, %s2116_s30 }
  0x30   : > { %p222_p6 = scmp.gt.s32.totalorder %s221_s25, 0  ;;  %p1435_p7 = scmp.lt.s32.totalorder %s221_s25, 49 }
  0x31   : > { %s2368_s21 = smov (!%p1429_p5, %s2366_s21), 49  ;;  %s248_s17 = sld [smem:[#allocation4 + %s247_s14]] }
  0x32   : > { %s2370_s25 = smov (!%p222_p6, %s221_s25), 0  ;;  %s216_s29 = scalar_lea.vmem [#allocation5], %s2368_s21 }
  0x33   : > { %v217_v9 = vld [vmem:[%s216_s29] sm:$0x1]  ;;  %s2372_s25 = smov (!%p1435_p7, %s2370_s25), 49  ;;  %p231_p8 = scmp.gt.s32.totalorder %s230_s12, 0 }
  0x34   : > { %218 = vst [vmem:[#allocation2 + $0x6] sm:$0x1] %v217_v9  ;;  %s226_s4 = scalar_lea.vmem [#allocation5], %s2372_s25  ;;  %p240_p9 = scmp.gt.s32.totalorder %s239_s13, 0 }
  0x35   : > { %v227_v10 = vld [vmem:[%s226_s4] sm:$0x1]  ;;  %s265_s18 = sadd.s32 1, %s2122_s5  ;;  %p1440_p10 = scmp.lt.s32.totalorder %s230_s12, 49 }
  0x36   : > { %228 = vst [vmem:[#allocation2 + $0x7] sm:$0x1] %v227_v10  ;;  %s257_s0 = sld [smem:[#allocation4 + %s256_s15]]  ;;  %s2374_s12 = smov (!%p231_p8, %s230_s12), 0 }
  0x37   : > { %p1445_p11 = scmp.lt.s32.totalorder %s239_s13, 49  ;;  %s266_s20 = sld [smem:[#allocation4 + %s265_s18]] }
  0x38   : > { %s2376_s13 = smov (!%p240_p9, %s239_s13), 0  ;;  %s274_s21 = sadd.s32 1, %s2128_s7 }
  0x39   : > { %s2378_s12 = smov (!%p1440_p10, %s2374_s12), 49  ;;  %p249_p12 = scmp.gt.s32.totalorder %s248_s17, 0 }
  0x3a   : > { %s283_s22 = sadd.s32 1, %s2134_s9  ;;  %s2380_s13 = smov (!%p1445_p11, %s2376_s13), 49 }
  0x3b   : > { %s275_s25 = sld [smem:[#allocation4 + %s274_s21]]  ;;  %p1450_p0 = scmp.lt.s32.totalorder %s248_s17, 49 }
  0x3c   : > { %p258_p13 = scmp.gt.s32.totalorder %s257_s0, 0  ;;  %s292_s27 = sadd.s32 1, %s2158_s23 }
  0x3d   : > { %v737_v11 = vld [vmem:[#allocation2] sm:$0xff]  ;;  %s2382_s17 = smov (!%p249_p12, %s248_s17), 0  ;;  %p267_p1 = scmp.gt.s32.totalorder %s266_s20, 0 }
  0x3e   : > { %s284_s29 = sld [smem:[#allocation4 + %s283_s22]]  ;;  %p1455_p2 = scmp.lt.s32.totalorder %s257_s0, 49 }
  0x3f   : > { %s259_s4 = scalar_select %p258_p13, %s257_s0, 0 }
  0x40   : > { %s293_s10 = sld [smem:[#allocation4 + %s292_s27]]  ;;  %s2384_s17 = smov (!%p1450_p0, %s2382_s17), 49 }
  0x41   : > { %s268_s11 = scalar_select %p267_p1, %s266_s20, 0 }
  0x42   : > { %p1460_p3 = scmp.lt.s32.totalorder %s266_s20, 49  ;;  %s2386_s4 = smov (!%p1455_p2, %s259_s4), 49 }
  0x43   : > { %p276_p4 = scmp.gt.s32.totalorder %s275_s25, 0  ;;  %p1465_p6 = scmp.lt.s32.totalorder %s275_s25, 49 }
  0x44   : > { %p285_p5 = scmp.gt.s32.totalorder %s284_s29, 0  ;;  %s2388_s11 = smov (!%p1460_p3, %s268_s11), 49 }
  0x45   : > { %s2390_s25 = smov (!%p276_p4, %s275_s25), 0  ;;  %p1470_p8 = scmp.lt.s32.totalorder %s284_s29, 49 }
  0x46   : > { %p294_p7 = scmp.gt.s32.totalorder %s293_s10, 0  ;;  %p1475_p9 = scmp.lt.s32.totalorder %s293_s10, 49 }
  0x47   : > { %s286_s14 = scalar_select %p285_p5, %s284_s29, 0 }
  0x48   : > { %s2392_s10 = smov (!%p294_p7, %s293_s10), 0  ;;  %s2394_s25 = smov (!%p1465_p6, %s2390_s25), 49 }
  0x49   : > { %s2396_s14 = smov (!%p1470_p8, %s286_s14), 49  ;;  %s2398_s10 = smov (!%p1475_p9, %s2392_s10), 49 }
  0x4a   : > { %s235_s15 = scalar_lea.vmem [#allocation5], %s2378_s12  ;;  %s244_s18 = scalar_lea.vmem [#allocation5], %s2380_s13 }
  0x4b   : > { %v236_v38 = vld [vmem:[%s235_s15] sm:$0x1]  ;;  %s253_s0 = scalar_lea.vmem [#allocation5], %s2384_s17  ;;  %s262_s20 = scalar_lea.vmem [#allocation5], %s2386_s4 }
  0x4c   : > { %v245_v39 = vld [vmem:[%s244_s18] sm:$0x1]  ;;  %237 = vst [vmem:[#allocation2 + $0x8] sm:$0x1] %v236_v38  ;;  %s271_s21 = scalar_lea.vmem [#allocation5], %s2388_s11  ;;  %s280_s22 = scalar_lea.vmem [#allocation5], %s2394_s25 }
  0x4d   : > { %v254_v40 = vld [vmem:[%s253_s0] sm:$0x1]  ;;  %246 = vst [vmem:[#allocation2 + $0x9] sm:$0x1] %v245_v39  ;;  %s289_s27 = scalar_lea.vmem [#allocation5], %s2396_s14  ;;  %s298_s29 = scalar_lea.vmem [#allocation5], %s2398_s10 }
  0x4e   : > { %v263_v41 = vld [vmem:[%s262_s20] sm:$0x1]  ;;  %255 = vst [vmem:[#allocation2 + $0xa] sm:$0x1] %v254_v40  ;;  %s301_s12 = sadd.s32 2, %s2102_s24  ;;  %s310_s13 = sadd.s32 2, %s2106_s26 }
  0x4f   : > { %v272_v42 = vld [vmem:[%s271_s21] sm:$0x1]  ;;  %264 = vst [vmem:[#allocation2 + $0xb] sm:$0x1] %v263_v41  ;;  %s302_s17 = sld [smem:[#allocation4 + %s301_s12]]  ;;  %s319_s4 = sadd.s32 2, %s2110_s28 }
  0x50   : > { %v281_v43 = vld [vmem:[%s280_s22] sm:$0x1]  ;;  %273 = vst [vmem:[#allocation2 + $0xc] sm:$0x1] %v272_v42  ;;  %s311_s25 = sld [smem:[#allocation4 + %s310_s13]]  ;;  %s328_s10 = sadd.s32 2, %s2116_s30 }
  0x51   : > { %v290_v44 = vld [vmem:[%s289_s27] sm:$0x1]  ;;  %282 = vst [vmem:[#allocation2 + $0xd] sm:$0x1] %v281_v43  ;;  %s320_s11 = sld [smem:[#allocation4 + %s319_s4]]  ;;  %s337_s14 = sadd.s32 2, %s2122_s5 }
  0x52   : > { %v299_v45 = vld [vmem:[%s298_s29] sm:$0x1]  ;;  %291 = vst [vmem:[#allocation2 + $0xe] sm:$0x1] %v290_v44  ;;  %s329_s15 = sld [smem:[#allocation4 + %s328_s10]]  ;;  %s346_s0 = sadd.s32 2, %s2128_s7 }
  0x53   : > { %300 = vst [vmem:[#allocation2 + $0xf] sm:$0x1] %v299_v45  ;;  %s338_s18 = sld [smem:[#allocation4 + %s337_s14]]  ;;  %s355_s20 = sadd.s32 2, %s2134_s9 }
  0x54   : > { %s347_s21 = sld [smem:[#allocation4 + %s346_s0]]  ;;  %s364_s22 = sadd.s32 2, %s2158_s23 }
  0x55   : > { %p303_p10 = scmp.gt.s32.totalorder %s302_s17, 0  ;;  %p1480_p12 = scmp.lt.s32.totalorder %s302_s17, 49 }
  0x56   : > { %p312_p11 = scmp.gt.s32.totalorder %s311_s25, 0  ;;  %p1485_p13 = scmp.lt.s32.totalorder %s311_s25, 49 }
  0x57   : > { %s2400_s17 = smov (!%p303_p10, %s302_s17), 0  ;;  %p321_p0 = scmp.gt.s32.totalorder %s320_s11, 0 }
  0x58   : > { %s2402_s25 = smov (!%p312_p11, %s311_s25), 0  ;;  %s2404_s17 = smov (!%p1480_p12, %s2400_s17), 49 }
  0x59   : > { %s2406_s25 = smov (!%p1485_p13, %s2402_s25), 49  ;;  %p330_p1 = scmp.gt.s32.totalorder %s329_s15, 0 }
  0x5a   : > { %v805_v47 = vld [vmem:[#allocation2 + $0x8] sm:$0xff]  ;;  %p1490_p2 = scmp.lt.s32.totalorder %s320_s11, 49  ;;  %s2408_s11 = smov (!%p321_p0, %s320_s11), 0 }
  0x5b   : > { %p339_p3 = scmp.gt.s32.totalorder %s338_s18, 0  ;;  %s356_s27 = sld [smem:[#allocation4 + %s355_s20]] }
  0x5c   : > { %s331_s29 = scalar_select %p330_p1, %s329_s15, 0 }
  0x5d   : > { %p1495_p4 = scmp.lt.s32.totalorder %s329_s15, 49  ;;  %s365_s12 = sld [smem:[#allocation4 + %s364_s22]] }
  0x5e   : > { %s2410_s11 = smov (!%p1490_p2, %s2408_s11), 49  ;;  %p1500_p5 = scmp.lt.s32.totalorder %s338_s18, 49 }
  0x5f   : > { %s340_s13 = scalar_select %p339_p3, %s338_s18, 0 }
  0x60   : > { %s2412_s29 = smov (!%p1495_p4, %s331_s29), 49  ;;  %p348_p6 = scmp.gt.s32.totalorder %s347_s21, 0 }
  0x61   : > { %p357_p7 = scmp.gt.s32.totalorder %s356_s27, 0  ;;  %s2414_s13 = smov (!%p1500_p5, %s340_s13), 49 }
  0x62   : > { %p1505_p8 = scmp.lt.s32.totalorder %s347_s21, 49  ;;  %s2416_s21 = smov (!%p348_p6, %s347_s21), 0 }
  0x63   : > { %p366_p9 = scmp.gt.s32.totalorder %s365_s12, 0  ;;  %p1510_p10 = scmp.lt.s32.totalorder %s356_s27, 49 }
  0x64   : > { %s358_s4 = scalar_select %p357_p7, %s356_s27, 0 }
  0x65   : > { %p1515_p11 = scmp.lt.s32.totalorder %s365_s12, 49  ;;  %s2418_s12 = smov (!%p366_p9, %s365_s12), 0 }
  0x66   : > { %s2420_s21 = smov (!%p1505_p8, %s2416_s21), 49  ;;  %s2422_s4 = smov (!%p1510_p10, %s358_s4), 49 }
  0x67   : > { %s2424_s12 = smov (!%p1515_p11, %s2418_s12), 49  ;;  %s307_s10 = scalar_lea.vmem [#allocation5], %s2404_s17 }
  0x68   : > { %v308_v10 = vld [vmem:[%s307_s10] sm:$0x1]  ;;  %s316_s14 = scalar_lea.vmem [#allocation5], %s2406_s25  ;;  %s325_s15 = scalar_lea.vmem [#allocation5], %s2410_s11 }
  0x69   : > { %309 = vst [vmem:[#allocation2 + $0x10] sm:$0x1] %v308_v10  ;;  %s334_s18 = scalar_lea.vmem [#allocation5], %s2412_s29  ;;  %s343_s0 = scalar_lea.vmem [#allocation5], %s2414_s13 }
  0x6a   : > { %s352_s20 = scalar_lea.vmem [#allocation5], %s2420_s21  ;;  %s361_s22 = scalar_lea.vmem [#allocation5], %s2422_s4 }
  0x6b   : > { %s370_s27 = scalar_lea.vmem [#allocation5], %s2424_s12  ;;  %s373_s17 = sadd.s32 3, %s2102_s24 }
  0x6c   : > { %s382_s25 = sadd.s32 3, %s2106_s26  ;;  %s374_s11 = sld [smem:[#allocation4 + %s373_s17]] }
  0x6d   : > { %s383_s21 = sld [smem:[#allocation4 + %s382_s25]]  ;;  %s391_s29 = sadd.s32 3, %s2110_s28 }
  0x6e   : > { %s400_s12 = sadd.s32 3, %s2116_s30  ;;  %s392_s13 = sld [smem:[#allocation4 + %s391_s29]] }
  0x6f   : > { %s409_s4 = sadd.s32 3, %s2122_s5  ;;  %s401_s10 = sld [smem:[#allocation4 + %s400_s12]] }
  0x72   : > { %p375_p12 = scmp.gt.s32.totalorder %s374_s11, 0  ;;  %p1520_p0 = scmp.lt.s32.totalorder %s374_s11, 49 }
  0x73   : > { %p384_p13 = scmp.gt.s32.totalorder %s383_s21, 0  ;;  %p1525_p1 = scmp.lt.s32.totalorder %s383_s21, 49 }
  0x74   : > { %s2426_s11 = smov (!%p375_p12, %s374_s11), 0  ;;  %p393_p2 = scmp.gt.s32.totalorder %s392_s13, 0 }
  0x75   : > { %s2428_s21 = smov (!%p384_p13, %s383_s21), 0  ;;  %s2430_s11 = smov (!%p1520_p0, %s2426_s11), 49 }
  0x76   : > { %s2432_s21 = smov (!%p1525_p1, %s2428_s21), 49  ;;  %p402_p3 = scmp.gt.s32.totalorder %s401_s10, 0 }
  0x77   : > { %p1530_p4 = scmp.lt.s32.totalorder %s392_s13, 49  ;;  %s2434_s13 = smov (!%p393_p2, %s392_s13), 0 }
  0x78   : > { %p1535_p6 = scmp.lt.s32.totalorder %s401_s10, 49  ;;  %s379_s12 = scalar_lea.vmem [#allocation5], %s2430_s11 }
  0x79   : > { %s2436_s13 = smov (!%p1530_p4, %s2434_s13), 49  ;;  %s445_s11 = sadd.s32 4, %s2102_s24 }
  0x97   : > { %v763_v12 = vpop.f32.mrf.mxu0 }
  0x98   : > { %v767_v13 = vadd.f32 %v763_v12, %v737_v11  ;;  %v317_v11 = vld [vmem:[%s316_s14] sm:$0x1]  ;;  %s410_s14 = sld [smem:[#allocation4 + %s409_s4]]  ;;  %s388_s4 = scalar_lea.vmem [#allocation5], %s2432_s21 }
  0x99   : > { %v326_v12 = vld [vmem:[%s325_s15] sm:$0x1]  ;;  %318 = vst [vmem:[#allocation2 + $0x11] sm:$0x1] %v317_v11  ;;  %s418_s15 = sadd.s32 3, %s2128_s7  ;;  %s454_s21 = sadd.s32 4, %s2106_s26 }
  0x9a   : > { %1933 = vtanh.f32 %v767_v13  ;;  %v1728_v16 = vmul.f32 -1.442695, %v767_v13  ;;  %v335_v13 = vld [vmem:[%s334_s18] sm:$0x1]  ;;  %327 = vst [vmem:[#allocation2 + $0x12] sm:$0x1] %v326_v12 }
  0x9b   : > { %336 = vst [vmem:[#allocation2 + $0x13] sm:$0x1] %v335_v13  ;;  %s427_s18 = sadd.s32 3, %s2134_s9 }
  0x9c   : > { %1935 = vpow2.f32 %v1728_v16  ;;  %v362_v16 = vld [vmem:[%s361_s22] sm:$0x1]  ;;  %s428_s22 = sld [smem:[#allocation4 + %s427_s18]] }
  0x9d   : > { %363 = vst [vmem:[#allocation2 + $0x16] sm:$0x1] %v362_v16 }
  0x9e   : > { %p411_p5 = scmp.gt.s32.totalorder %s410_s14, 0  ;;  %p1540_p7 = scmp.lt.s32.totalorder %s410_s14, 49 }
  0x9f   : > { %v765_v14 = vpop.f32.mrf.mxu0 }
  0xa0   : > { %v1934_v15 = vpop.eup %1933  ;;  %v344_v14 = vld [vmem:[%s343_s0] sm:$0x1]  ;;  %s419_s0 = sld [smem:[#allocation4 + %s418_s15]] }
  0xa1   : > { %790 = vrot.lane.b32.xlu0 %v1934_v15, %s2062_s6  ;;  %v353_v15 = vld [vmem:[%s352_s20] sm:$0x1]  ;;  %345 = vst [vmem:[#allocation2 + $0x14] sm:$0x1] %v344_v14  ;;  %s436_s20 = sadd.s32 3, %s2158_s23 }
  0xa2   : > { %v1936_v17 = vpop.eup %1935  ;;  %354 = vst [vmem:[#allocation2 + $0x15] sm:$0x1] %v353_v15  ;;  %s437_s17 = sld [smem:[#allocation4 + %s436_s20]]  ;;  %p429_p9 = scmp.gt.s32.totalorder %s428_s22, 0 }
  0xa3   : > { %v771_v18 = vadd.f32 1.0, %v1936_v17  ;;  %v371_v17 = vld [vmem:[%s370_s27] sm:$0x1]  ;;  %s403_s27 = scalar_select %p402_p3, %s401_s10, 0 }
  0xa4   : > { %372 = vst [vmem:[#allocation2 + $0x17] sm:$0x1] %v371_v17  ;;  %s412_s25 = scalar_select %p411_p5, %s410_s14, 0 }
  0xa5   : > { %1937 = vrcp.f32 %v771_v18  ;;  %v783_v24 = vand.u32 2147483648, %v771_v18  ;;  %vm777_vm1 = vweird.f32 %v771_v18  ;;  %v781_v25 = vand.u32 2147483647, %v771_v18  ;;  %s2438_s27 = smov (!%p1535_p6, %s403_s27), 49  ;;  %p1550_p12 = scmp.lt.s32.totalorder %s428_s22, 49 }
  0xa6   : > { %p420_p8 = scmp.gt.s32.totalorder %s419_s0, 0  ;;  %s2440_s25 = smov (!%p1540_p7, %s412_s25), 49 }
  0xa7   : > { %v784_v27 = vor.u32 1.1754944e-38, %v783_v24  ;;  %vm782_vm3 = vcmp.eq.f32.partialorder %v781_v25, 8.507059e+37  ;;  %p1545_p10 = scmp.lt.s32.totalorder %s419_s0, 49  ;;  %s397_s10 = scalar_lea.vmem [#allocation5], %s2436_s13 }
  0xa8   : > { %p438_p11 = scmp.gt.s32.totalorder %s437_s17, 0  ;;  %s2442_s0 = smov (!%p420_p8, %s419_s0), 0 }
  0xa9   : > { %s430_s29 = scalar_select %p429_p9, %s428_s22, 0 }
  0xaa   : > { %p1555_p13 = scmp.lt.s32.totalorder %s437_s17, 49  ;;  %s2444_s17 = smov (!%p438_p11, %s437_s17), 0 }
  0xab   : > { %v1938_v19 = vpop.eup %1937  ;;  %s2446_s0 = smov (!%p1545_p10, %s2442_s0), 49  ;;  %s2448_s29 = smov (!%p1550_p12, %s430_s29), 49 }
  0xac   : > { %v773_v20 = vmul.f32 %v1938_v19, %v771_v18  ;;  %vm778_vm0 = vweird.f32 %v1938_v19  ;;  %s2450_s17 = smov (!%p1555_p13, %s2444_s17), 49  ;;  %s406_s14 = scalar_lea.vmem [#allocation5], %s2438_s27 }
  0xad   : > { %vm779_vm2 = vmor %vm777_vm1, %vm778_vm0  ;;  %s415_s15 = scalar_lea.vmem [#allocation5], %s2440_s25  ;;  %s424_s18 = scalar_lea.vmem [#allocation5], %s2446_s0 }
  0xae   : > { %v774_v21 = vsub.f32 1.0, %v773_v20  ;;  %s433_s20 = scalar_lea.vmem [#allocation5], %s2448_s29  ;;  %s442_s22 = scalar_lea.vmem [#allocation5], %s2450_s17 }
  0xaf   : > { %s446_s13 = sld [smem:[#allocation4 + %s445_s11]]  ;;  %s463_s27 = sadd.s32 4, %s2110_s28 }
  0xb0   : > { %v775_v22 = vmul.f32 %v1938_v19, %v774_v21  ;;  %s455_s0 = sld [smem:[#allocation4 + %s454_s21]]  ;;  %s472_s17 = sadd.s32 4, %s2116_s30 }
  0xb1   : > { %s464_s25 = sld [smem:[#allocation4 + %s463_s27]]  ;;  %s481_s29 = sadd.s32 4, %s2122_s5 }
  0xb2   : > { %v776_v23 = vadd.f32 %v1938_v19, %v775_v22 }
  0xb4   : > { %v780_v26 = vsel %vm779_vm2, %v1938_v19, %v776_v23  ;;  %v864_v19 = vld [vmem:[#allocation2 + $0x10] sm:$0xff] }
  0xb5   : > { %v785_v29 = vsel %vm782_vm3, %v784_v27, %v780_v26  ;;  %p447_p0 = scmp.gt.s32.totalorder %s446_s13, 0  ;;  %p1560_p2 = scmp.lt.s32.totalorder %s446_s13, 49 }
  0xb6   : > { %v788_v31 = vmul.f32 0.0, %v785_v29  ;;  %p456_p1 = scmp.gt.s32.totalorder %s455_s0, 0  ;;  %p1565_p3 = scmp.lt.s32.totalorder %s455_s0, 49 }
  0xb7   : > { %s2452_s13 = smov (!%p447_p0, %s446_s13), 0  ;;  %p465_p4 = scmp.gt.s32.totalorder %s464_s25, 0 }
  0xb8   : > { %s2454_s0 = smov (!%p456_p1, %s455_s0), 0  ;;  %s2456_s13 = smov (!%p1560_p2, %s2452_s13), 49 }
  0xb9   : > { %s2458_s0 = smov (!%p1565_p3, %s2454_s0), 49  ;;  %p1570_p6 = scmp.lt.s32.totalorder %s464_s25, 49 }
  0xba   : > { %s2460_s25 = smov (!%p465_p4, %s464_s25), 0 }
  0xbb   : > { %s2462_s25 = smov (!%p1570_p6, %s2460_s25), 49 }
 0x113   : > { %v791_v28 = vpop.permute.xlu0 %790 }
 0x114   : > { %v793_v30 = vmul.f32 %v791_v28, %v785_v29 }
 0x116   : > { %795 = vrot.lane.b32.xlu0 %v793_v30, %s2062_s6 }
 0x188   : > { %v796_v32 = vpop.permute.xlu0 %795 }
 0x189   : > { %v2163_v33 = vadd.f32 %v796_v32, %v788_v31 }
 0x18b   : > { %1939 = vtanh.f32 %v2163_v33 }
 0x191   : > { %v1940_v34 = vpop.eup %1939 }
 0x192   : > { %801 = vrot.lane.b32.xlu1 %v1940_v34, %s2062_s6 }
 0x204   : > { %v802_v35 = vpop.permute.xlu1 %801 }
 0x205   : > { %v804_v36 = vmul.f32 %v802_v35, %v785_v29 }
 0x207   : > { %v806_v37 = vpack.c.bf16 %v804_v36, %v804_v36 }
 0x209   : > { %808 = vrot.lane.b32.xlu1 %v806_v37, %s2063_s8 }
 0x27b   : > { %v809_v46 = vpop.permute.xlu1 %808 }
 0x27c   : > { %1729 = vmatmul.msk.bf16.vlgmr.msra.gmra.mxu1 %vm750_vm4, %v809_v46  ;;  %v380_v46 = vld [vmem:[%s379_s12] sm:$0x1]  ;;  %s473_s12 = sld [smem:[#allocation4 + %s472_s17]]  ;;  %s451_s17 = scalar_lea.vmem [#allocation5], %s2456_s13 }
 0x27d   : > { %381 = vst [vmem:[#allocation2 + $0x18] sm:$0x1] %v380_v46  ;;  %s517_s13 = sadd.s32 5, %s2102_s24 }
 0x282   : > { %p474_p5 = scmp.gt.s32.totalorder %s473_s12, 0  ;;  %p1575_p8 = scmp.lt.s32.totalorder %s473_s12, 49 }
 0x2f9   : > { %v822_v48 = vpop.f32.mrf.mxu1 }
 0x2fa   : > { %v826_v49 = vadd.f32 %v822_v48, %v805_v47  ;;  %v389_v47 = vld [vmem:[%s388_s4] sm:$0x1]  ;;  %s482_s4 = sld [smem:[#allocation4 + %s481_s29]]  ;;  %s460_s29 = scalar_lea.vmem [#allocation5], %s2458_s0 }
 0x2fb   : > { %v398_v48 = vld [vmem:[%s397_s10] sm:$0x1]  ;;  %390 = vst [vmem:[#allocation2 + $0x19] sm:$0x1] %v389_v47  ;;  %s490_s10 = sadd.s32 4, %s2128_s7  ;;  %s526_s0 = sadd.s32 5, %s2106_s26 }
 0x2fc   : > { %1941 = vtanh.f32 %v826_v49  ;;  %v1730_v52 = vmul.f32 -1.442695, %v826_v49  ;;  %v407_v49 = vld [vmem:[%s406_s14] sm:$0x1]  ;;  %399 = vst [vmem:[#allocation2 + $0x1a] sm:$0x1] %v398_v48 }
 0x2fd   : > { %408 = vst [vmem:[#allocation2 + $0x1b] sm:$0x1] %v407_v49  ;;  %s499_s14 = sadd.s32 4, %s2134_s9 }
 0x2fe   : > { %1943 = vpow2.f32 %v1730_v52  ;;  %v434_v52 = vld [vmem:[%s433_s20] sm:$0x1]  ;;  %s500_s20 = sld [smem:[#allocation4 + %s499_s14]] }
 0x2ff   : > { %435 = vst [vmem:[#allocation2 + $0x1e] sm:$0x1] %v434_v52 }
 0x300   : > { %p483_p7 = scmp.gt.s32.totalorder %s482_s4, 0  ;;  %p1580_p9 = scmp.lt.s32.totalorder %s482_s4, 49 }
 0x301   : > { %v824_v50 = vpop.f32.mrf.mxu1 }
 0x302   : > { %v1942_v51 = vpop.eup %1941  ;;  %v416_v50 = vld [vmem:[%s415_s15] sm:$0x1]  ;;  %s491_s15 = sld [smem:[#allocation4 + %s490_s10]] }
 0x303   : > { %849 = vrot.lane.b32.xlu2 %v1942_v51, %s2062_s6  ;;  %v425_v51 = vld [vmem:[%s424_s18] sm:$0x1]  ;;  %417 = vst [vmem:[#allocation2 + $0x1c] sm:$0x1] %v416_v50  ;;  %s508_s18 = sadd.s32 4, %s2158_s23 }
 0x304   : > { %v1944_v53 = vpop.eup %1943  ;;  %426 = vst [vmem:[#allocation2 + $0x1d] sm:$0x1] %v425_v51  ;;  %s509_s11 = sld [smem:[#allocation4 + %s508_s18]]  ;;  %p501_p11 = scmp.gt.s32.totalorder %s500_s20, 0 }
 0x305   : > { %v830_v54 = vadd.f32 1.0, %v1944_v53  ;;  %v443_v53 = vld [vmem:[%s442_s22] sm:$0x1]  ;;  %s475_s22 = scalar_select %p474_p5, %s473_s12, 0 }
 0x306   : > { %444 = vst [vmem:[#allocation2 + $0x1f] sm:$0x1] %v443_v53  ;;  %s484_s21 = scalar_select %p483_p7, %s482_s4, 0 }
 0x307   : > { %1945 = vrcp.f32 %v830_v54  ;;  %v842_v60 = vand.u32 2147483648, %v830_v54  ;;  %vm836_vm6 = vweird.f32 %v830_v54  ;;  %v840_v61 = vand.u32 2147483647, %v830_v54  ;;  %s2464_s22 = smov (!%p1575_p8, %s475_s22), 49  ;;  %p1590_p0 = scmp.lt.s32.totalorder %s500_s20, 49 }
 0x308   : > { %p492_p10 = scmp.gt.s32.totalorder %s491_s15, 0  ;;  %s2466_s21 = smov (!%p1580_p9, %s484_s21), 49 }
 0x309   : > { %v843_v63 = vor.u32 1.1754944e-38, %v842_v60  ;;  %vm841_vm8 = vcmp.eq.f32.partialorder %v840_v61, 8.507059e+37  ;;  %p1585_p12 = scmp.lt.s32.totalorder %s491_s15, 49  ;;  %s469_s12 = scalar_lea.vmem [#allocation5], %s2462_s25 }
 0x30a   : > { %p510_p13 = scmp.gt.s32.totalorder %s509_s11, 0  ;;  %s2468_s15 = smov (!%p492_p10, %s491_s15), 0 }
 0x30b   : > { %s502_s27 = scalar_select %p501_p11, %s500_s20, 0 }
 0x30c   : > { %p1595_p1 = scmp.lt.s32.totalorder %s509_s11, 49  ;;  %s2470_s11 = smov (!%p510_p13, %s509_s11), 0 }
 0x30d   : > { %v1946_v55 = vpop.eup %1945  ;;  %s2472_s15 = smov (!%p1585_p12, %s2468_s15), 49  ;;  %s2474_s27 = smov (!%p1590_p0, %s502_s27), 49 }
 0x30e   : > { %v832_v56 = vmul.f32 %v1946_v55, %v830_v54  ;;  %vm837_vm5 = vweird.f32 %v1946_v55  ;;  %s2476_s11 = smov (!%p1595_p1, %s2470_s11), 49  ;;  %s478_s4 = scalar_lea.vmem [#allocation5], %s2464_s22 }
 0x30f   : > { %vm838_vm7 = vmor %vm836_vm6, %vm837_vm5  ;;  %s487_s10 = scalar_lea.vmem [#allocation5], %s2466_s21  ;;  %s496_s14 = scalar_lea.vmem [#allocation5], %s2472_s15 }
 0x310   : > { %v833_v57 = vsub.f32 1.0, %v832_v56  ;;  %s505_s18 = scalar_lea.vmem [#allocation5], %s2474_s27  ;;  %s514_s20 = scalar_lea.vmem [#allocation5], %s2476_s11 }
 0x311   : > { %s518_s25 = sld [smem:[#allocation4 + %s517_s13]]  ;;  %s535_s22 = sadd.s32 5, %s2110_s28 }
 0x312   : > { %v834_v58 = vmul.f32 %v1946_v55, %v833_v57  ;;  %s527_s15 = sld [smem:[#allocation4 + %s526_s0]]  ;;  %s544_s11 = sadd.s32 5, %s2116_s30 }
 0x313   : > { %s536_s21 = sld [smem:[#allocation4 + %s535_s22]]  ;;  %s553_s27 = sadd.s32 5, %s2122_s5 }
 0x314   : > { %v835_v59 = vadd.f32 %v1946_v55, %v834_v58 }
 0x316   : > { %v839_v62 = vsel %vm838_vm7, %v1946_v55, %v835_v59  ;;  %v923_v55 = vld [vmem:[#allocation2 + $0x18] sm:$0xff] }
 0x317   : > { %v844_v1 = vsel %vm841_vm8, %v843_v63, %v839_v62  ;;  %p519_p2 = scmp.gt.s32.totalorder %s518_s25, 0  ;;  %p1600_p4 = scmp.lt.s32.totalorder %s518_s25, 49 }
 0x318   : > { %v847_v3 = vmul.f32 %v844_v1, %v2163_v33  ;;  %p528_p3 = scmp.gt.s32.totalorder %s527_s15, 0  ;;  %p1605_p5 = scmp.lt.s32.totalorder %s527_s15, 49 }
 0x319   : > { %s2478_s25 = smov (!%p519_p2, %s518_s25), 0  ;;  %p537_p6 = scmp.gt.s32.totalorder %s536_s21, 0 }
 0x31a   : > { %s2480_s15 = smov (!%p528_p3, %s527_s15), 0  ;;  %s2482_s25 = smov (!%p1600_p4, %s2478_s25), 49 }
 0x31b   : > { %s2484_s15 = smov (!%p1605_p5, %s2480_s15), 49  ;;  %p1610_p8 = scmp.lt.s32.totalorder %s536_s21, 49 }
 0x31c   : > { %s2486_s21 = smov (!%p537_p6, %s536_s21), 0 }
 0x31d   : > { %s2488_s21 = smov (!%p1610_p8, %s2486_s21), 49 }
 0x35d   : > { %v850_v0 = vpop.permute.xlu2 %849 }
 0x35e   : > { %v852_v2 = vmul.f32 %v850_v0, %v844_v1 }
 0x360   : > { %854 = vrot.lane.b32.xlu2 %v852_v2, %s2062_s6 }
 0x3ba   : > { %v855_v4 = vpop.permute.xlu2 %854 }
 0x3bb   : > { %v2186_v5 = vadd.f32 %v855_v4, %v847_v3 }
 0x3bd   : > { %1947 = vtanh.f32 %v2186_v5 }
 0x3c3   : > { %v1948_v6 = vpop.eup %1947 }
 0x3c4   : > { %860 = vrot.lane.b32.xlu0 %v1948_v6, %s2062_s6 }
 0x436   : > { %v861_v7 = vpop.permute.xlu0 %860 }
 0x437   : > { %v863_v8 = vmul.f32 %v861_v7, %v844_v1 }
 0x439   : > { %v865_v9 = vpack.c.bf16 %v863_v8, %v863_v8 }
 0x43b   : > { %867 = vrot.lane.b32.xlu1 %v865_v9, %s2063_s8 }
 0x4ad   : > { %v868_v18 = vpop.permute.xlu1 %867 }
 0x4ae   : > { %1731 = vmatmul.msk.bf16.vlgmr.msra.gmra.mxu2 %vm750_vm4, %v868_v18  ;;  %v452_v18 = vld [vmem:[%s451_s17] sm:$0x1]  ;;  %s545_s17 = sld [smem:[#allocation4 + %s544_s11]]  ;;  %s523_s11 = scalar_lea.vmem [#allocation5], %s2482_s25 }
 0x4af   : > { %453 = vst [vmem:[#allocation2 + $0x20] sm:$0x1] %v452_v18  ;;  %s589_s25 = sadd.s32 6, %s2102_s24 }
 0x4b4   : > { %p546_p7 = scmp.gt.s32.totalorder %s545_s17, 0  ;;  %p1615_p10 = scmp.lt.s32.totalorder %s545_s17, 49 }
 0x531   : > { %v881_v20 = vpop.f32.mrf.mxu2 }
 0x532   : > { %v885_v21 = vadd.f32 %v881_v20, %v864_v19  ;;  %v461_v19 = vld [vmem:[%s460_s29] sm:$0x1]  ;;  %s554_s29 = sld [smem:[#allocation4 + %s553_s27]]  ;;  %s532_s27 = scalar_lea.vmem [#allocation5], %s2484_s15 }
 0x533   : > { %v470_v20 = vld [vmem:[%s469_s12] sm:$0x1]  ;;  %462 = vst [vmem:[#allocation2 + $0x21] sm:$0x1] %v461_v19  ;;  %s562_s12 = sadd.s32 5, %s2128_s7  ;;  %s598_s15 = sadd.s32 6, %s2106_s26 }
 0x534   : > { %1949 = vtanh.f32 %v885_v21  ;;  %v1732_v24 = vmul.f32 -1.442695, %v885_v21  ;;  %v479_v21 = vld [vmem:[%s478_s4] sm:$0x1]  ;;  %471 = vst [vmem:[#allocation2 + $0x22] sm:$0x1] %v470_v20 }
 0x535   : > { %480 = vst [vmem:[#allocation2 + $0x23] sm:$0x1] %v479_v21  ;;  %s571_s4 = sadd.s32 5, %s2134_s9 }
 0x536   : > { %1951 = vpow2.f32 %v1732_v24  ;;  %v506_v24 = vld [vmem:[%s505_s18] sm:$0x1]  ;;  %s572_s18 = sld [smem:[#allocation4 + %s571_s4]] }
 0x537   : > { %507 = vst [vmem:[#allocation2 + $0x26] sm:$0x1] %v506_v24 }
 0x538   : > { %p555_p9 = scmp.gt.s32.totalorder %s554_s29, 0  ;;  %p1620_p11 = scmp.lt.s32.totalorder %s554_s29, 49 }
 0x539   : > { %v883_v22 = vpop.f32.mrf.mxu2 }
 0x53a   : > { %v1950_v23 = vpop.eup %1949  ;;  %v488_v22 = vld [vmem:[%s487_s10] sm:$0x1]  ;;  %s563_s10 = sld [smem:[#allocation4 + %s562_s12]] }
 0x53b   : > { %908 = vrot.lane.b32.xlu2 %v1950_v23, %s2062_s6  ;;  %v497_v23 = vld [vmem:[%s496_s14] sm:$0x1]  ;;  %489 = vst [vmem:[#allocation2 + $0x24] sm:$0x1] %v488_v22  ;;  %s580_s14 = sadd.s32 5, %s2158_s23 }
 0x53c   : > { %v1952_v25 = vpop.eup %1951  ;;  %498 = vst [vmem:[#allocation2 + $0x25] sm:$0x1] %v497_v23  ;;  %s581_s13 = sld [smem:[#allocation4 + %s580_s14]]  ;;  %p573_p13 = scmp.gt.s32.totalorder %s572_s18, 0 }
 0x53d   : > { %v889_v26 = vadd.f32 1.0, %v1952_v25  ;;  %v515_v25 = vld [vmem:[%s514_s20] sm:$0x1]  ;;  %s547_s20 = scalar_select %p546_p7, %s545_s17, 0 }
 0x53e   : > { %516 = vst [vmem:[#allocation2 + $0x27] sm:$0x1] %v515_v25  ;;  %s556_s0 = scalar_select %p555_p9, %s554_s29, 0 }
 0x53f   : > { %1953 = vrcp.f32 %v889_v26  ;;  %v901_v32 = vand.u32 2147483648, %v889_v26  ;;  %vm895_vm10 = vweird.f32 %v889_v26  ;;  %v899_v33 = vand.u32 2147483647, %v889_v26  ;;  %s2490_s20 = smov (!%p1615_p10, %s547_s20), 49  ;;  %p1630_p2 = scmp.lt.s32.totalorder %s572_s18, 49 }
 0x540   : > { %p564_p12 = scmp.gt.s32.totalorder %s563_s10, 0  ;;  %s2492_s0 = smov (!%p1620_p11, %s556_s0), 49 }
 0x541   : > { %v902_v35 = vor.u32 1.1754944e-38, %v901_v32  ;;  %vm900_vm12 = vcmp.eq.f32.partialorder %v899_v33, 8.507059e+37  ;;  %p1625_p0 = scmp.lt.s32.totalorder %s563_s10, 49  ;;  %s541_s17 = scalar_lea.vmem [#allocation5], %s2488_s21 }
 0x542   : > { %p582_p1 = scmp.gt.s32.totalorder %s581_s13, 0  ;;  %s2494_s10 = smov (!%p564_p12, %s563_s10), 0 }
 0x543   : > { %s574_s22 = scalar_select %p573_p13, %s572_s18, 0 }
 0x544   : > { %p1635_p3 = scmp.lt.s32.totalorder %s581_s13, 49  ;;  %s2496_s13 = smov (!%p582_p1, %s581_s13), 0 }
 0x545   : > { %v1954_v27 = vpop.eup %1953  ;;  %s2498_s10 = smov (!%p1625_p0, %s2494_s10), 49  ;;  %s2500_s22 = smov (!%p1630_p2, %s574_s22), 49 }
 0x546   : > { %v891_v28 = vmul.f32 %v1954_v27, %v889_v26  ;;  %vm896_vm9 = vweird.f32 %v1954_v27  ;;  %s2502_s13 = smov (!%p1635_p3, %s2496_s13), 49  ;;  %s550_s29 = scalar_lea.vmem [#allocation5], %s2490_s20 }
 0x547   : > { %vm897_vm11 = vmor %vm895_vm10, %vm896_vm9  ;;  %s559_s12 = scalar_lea.vmem [#allocation5], %s2492_s0  ;;  %s568_s4 = scalar_lea.vmem [#allocation5], %s2498_s10 }
 0x548   : > { %v892_v29 = vsub.f32 1.0, %v891_v28  ;;  %s577_s14 = scalar_lea.vmem [#allocation5], %s2500_s22  ;;  %s586_s18 = scalar_lea.vmem [#allocation5], %s2502_s13 }
 0x549   : > { %s590_s21 = sld [smem:[#allocation4 + %s589_s25]]  ;;  %s607_s20 = sadd.s32 6, %s2110_s28 }
 0x54a   : > { %v893_v30 = vmul.f32 %v1954_v27, %v892_v29  ;;  %s599_s10 = sld [smem:[#allocation4 + %s598_s15]]  ;;  %s616_s13 = sadd.s32 6, %s2116_s30 }
 0x54b   : > { %s608_s0 = sld [smem:[#allocation4 + %s607_s20]]  ;;  %s625_s22 = sadd.s32 6, %s2122_s5 }
 0x54c   : > { %v894_v31 = vadd.f32 %v1954_v27, %v893_v30 }
 0x54e   : > { %v898_v34 = vsel %vm897_vm11, %v1954_v27, %v894_v31  ;;  %v982_v27 = vld [vmem:[#allocation2 + $0x20] sm:$0xff] }
 0x54f   : > { %v903_v37 = vsel %vm900_vm12, %v902_v35, %v898_v34  ;;  %p591_p4 = scmp.gt.s32.totalorder %s590_s21, 0  ;;  %p1640_p6 = scmp.lt.s32.totalorder %s590_s21, 49 }
 0x550   : > { %v906_v39 = vmul.f32 %v903_v37, %v2186_v5  ;;  %p600_p5 = scmp.gt.s32.totalorder %s599_s10, 0  ;;  %p1645_p7 = scmp.lt.s32.totalorder %s599_s10, 49 }
 0x551   : > { %s2504_s21 = smov (!%p591_p4, %s590_s21), 0  ;;  %p609_p8 = scmp.gt.s32.totalorder %s608_s0, 0 }
 0x552   : > { %s2506_s10 = smov (!%p600_p5, %s599_s10), 0  ;;  %s2508_s21 = smov (!%p1640_p6, %s2504_s21), 49 }
 0x553   : > { %s2510_s10 = smov (!%p1645_p7, %s2506_s10), 49  ;;  %p1650_p10 = scmp.lt.s32.totalorder %s608_s0, 49 }
 0x554   : > { %s2512_s0 = smov (!%p609_p8, %s608_s0), 0 }
 0x555   : > { %s2514_s0 = smov (!%p1650_p10, %s2512_s0), 49 }
 0x595   : > { %v909_v36 = vpop.permute.xlu2 %908 }
 0x596   : > { %v911_v38 = vmul.f32 %v909_v36, %v903_v37 }
 0x598   : > { %913 = vrot.lane.b32.xlu0 %v911_v38, %s2062_s6 }
 0x60a   : > { %v914_v40 = vpop.permute.xlu0 %913 }
 0x60b   : > { %v2209_v41 = vadd.f32 %v914_v40, %v906_v39 }
 0x60d   : > { %1955 = vtanh.f32 %v2209_v41 }
 0x613   : > { %v1956_v42 = vpop.eup %1955 }
 0x614   : > { %919 = vrot.lane.b32.xlu1 %v1956_v42, %s2062_s6 }
 0x686   : > { %v920_v43 = vpop.permute.xlu1 %919 }
 0x687   : > { %v922_v44 = vmul.f32 %v920_v43, %v903_v37 }
 0x689   : > { %v924_v45 = vpack.c.bf16 %v922_v44, %v922_v44 }
 0x68b   : > { %926 = vrot.lane.b32.xlu2 %v924_v45, %s2063_s8 }
 0x6e5   : > { %v927_v54 = vpop.permute.xlu2 %926 }
 0x6e6   : > { %1733 = vmatmul.msk.bf16.vlgmr.msra.gmra.mxu3 %vm750_vm4, %v927_v54  ;;  %v524_v54 = vld [vmem:[%s523_s11] sm:$0x1]  ;;  %s617_s11 = sld [smem:[#allocation4 + %s616_s13]]  ;;  %s595_s13 = scalar_lea.vmem [#allocation5], %s2508_s21 }
 0x6e7   : > { %525 = vst [vmem:[#allocation2 + $0x28] sm:$0x1] %v524_v54  ;;  %s661_s21 = sadd.s32 7, %s2102_s24  ;;  %s715_s24 = sadd.s32 7, %s2134_s9 }
 0x6ec   : > { %p618_p9 = scmp.gt.s32.totalorder %s617_s11, 0  ;;  %p1655_p12 = scmp.lt.s32.totalorder %s617_s11, 49 }
 0x769   : > { %v940_v56 = vpop.f32.mrf.mxu3 }
 0x76a   : > { %v944_v57 = vadd.f32 %v940_v56, %v923_v55  ;;  %v533_v55 = vld [vmem:[%s532_s27] sm:$0x1]  ;;  %s626_s27 = sld [smem:[#allocation4 + %s625_s22]]  ;;  %s604_s22 = scalar_lea.vmem [#allocation5], %s2510_s10 }
 0x76b   : > { %v542_v56 = vld [vmem:[%s541_s17] sm:$0x1]  ;;  %534 = vst [vmem:[#allocation2 + $0x29] sm:$0x1] %v533_v55  ;;  %s634_s17 = sadd.s32 6, %s2128_s7  ;;  %s670_s10 = sadd.s32 7, %s2106_s26 }
 0x76c   : > { %1957 = vtanh.f32 %v944_v57  ;;  %v1734_v60 = vmul.f32 -1.442695, %v944_v57  ;;  %v551_v57 = vld [vmem:[%s550_s29] sm:$0x1]  ;;  %543 = vst [vmem:[#allocation2 + $0x2a] sm:$0x1] %v542_v56 }
 0x76d   : > { %552 = vst [vmem:[#allocation2 + $0x2b] sm:$0x1] %v551_v57  ;;  %s643_s29 = sadd.s32 6, %s2134_s9 }
 0x76e   : > { %1959 = vpow2.f32 %v1734_v60  ;;  %v578_v60 = vld [vmem:[%s577_s14] sm:$0x1]  ;;  %s644_s14 = sld [smem:[#allocation4 + %s643_s29]] }
 0x76f   : > { %579 = vst [vmem:[#allocation2 + $0x2e] sm:$0x1] %v578_v60 }
 0x770   : > { %p627_p11 = scmp.gt.s32.totalorder %s626_s27, 0  ;;  %p1660_p13 = scmp.lt.s32.totalorder %s626_s27, 49 }
 0x771   : > { %v942_v58 = vpop.f32.mrf.mxu3 }
 0x772   : > { %v1958_v59 = vpop.eup %1957  ;;  %v560_v58 = vld [vmem:[%s559_s12] sm:$0x1]  ;;  %s635_s12 = sld [smem:[#allocation4 + %s634_s17]] }
 0x773   : > { %967 = vrot.lane.b32.xlu0 %v1958_v59, %s2062_s6  ;;  %v569_v59 = vld [vmem:[%s568_s4] sm:$0x1]  ;;  %561 = vst [vmem:[#allocation2 + $0x2c] sm:$0x1] %v560_v58  ;;  %s652_s4 = sadd.s32 6, %s2158_s23 }
 0x774   : > { %v1960_v61 = vpop.eup %1959  ;;  %570 = vst [vmem:[#allocation2 + $0x2d] sm:$0x1] %v569_v59  ;;  %s653_s25 = sld [smem:[#allocation4 + %s652_s4]]  ;;  %p645_p1 = scmp.gt.s32.totalorder %s644_s14, 0 }
 0x775   : > { %v948_v62 = vadd.f32 1.0, %v1960_v61  ;;  %v587_v61 = vld [vmem:[%s586_s18] sm:$0x1]  ;;  %s619_s18 = scalar_select %p618_p9, %s617_s11, 0 }
 0x776   : > { %588 = vst [vmem:[#allocation2 + $0x2f] sm:$0x1] %v587_v61  ;;  %s628_s15 = scalar_select %p627_p11, %s626_s27, 0 }
 0x777   : > { %1961 = vrcp.f32 %v948_v62  ;;  %v960_v4 = vand.u32 2147483648, %v948_v62  ;;  %vm954_vm14 = vweird.f32 %v948_v62  ;;  %v958_v5 = vand.u32 2147483647, %v948_v62  ;;  %s2516_s18 = smov (!%p1655_p12, %s619_s18), 49  ;;  %p1670_p4 = scmp.lt.s32.totalorder %s644_s14, 49 }
 0x778   : > { %p636_p0 = scmp.gt.s32.totalorder %s635_s12, 0  ;;  %s2518_s15 = smov (!%p1660_p13, %s628_s15), 49 }
 0x779   : > { %v961_v7 = vor.u32 1.1754944e-38, %v960_v4  ;;  %vm959_vm0 = vcmp.eq.f32.partialorder %v958_v5, 8.507059e+37  ;;  %p1665_p2 = scmp.lt.s32.totalorder %s635_s12, 49  ;;  %s613_s11 = scalar_lea.vmem [#allocation5], %s2514_s0 }
 0x77a   : > { %p654_p3 = scmp.gt.s32.totalorder %s653_s25, 0  ;;  %s2520_s12 = smov (!%p636_p0, %s635_s12), 0 }
 0x77b   : > { %s646_s20 = scalar_select %p645_p1, %s644_s14, 0 }
 0x77c   : > { %p1675_p5 = scmp.lt.s32.totalorder %s653_s25, 49  ;;  %s2522_s25 = smov (!%p654_p3, %s653_s25), 0 }
 0x77d   : > { %v1962_v63 = vpop.eup %1961  ;;  %s2524_s12 = smov (!%p1665_p2, %s2520_s12), 49  ;;  %s2526_s20 = smov (!%p1670_p4, %s646_s20), 49 }
 0x77e   : > { %v950_v0 = vmul.f32 %v1962_v63, %v948_v62  ;;  %vm955_vm13 = vweird.f32 %v1962_v63  ;;  %s2528_s25 = smov (!%p1675_p5, %s2522_s25), 49  ;;  %s622_s27 = scalar_lea.vmem [#allocation5], %s2516_s18 }
 0x77f   : > { %vm956_vm15 = vmor %vm954_vm14, %vm955_vm13  ;;  %s631_s17 = scalar_lea.vmem [#allocation5], %s2518_s15  ;;  %s640_s29 = scalar_lea.vmem [#allocation5], %s2524_s12 }
 0x780   : > { %v951_v1 = vsub.f32 1.0, %v950_v0  ;;  %s649_s4 = scalar_lea.vmem [#allocation5], %s2526_s20  ;;  %s658_s14 = scalar_lea.vmem [#allocation5], %s2528_s25 }
 0x781   : > { %s662_s0 = sld [smem:[#allocation4 + %s661_s21]]  ;;  %s679_s18 = sadd.s32 7, %s2110_s28 }
 0x782   : > { %v952_v2 = vmul.f32 %v1962_v63, %v951_v1  ;;  %s671_s12 = sld [smem:[#allocation4 + %s670_s10]]  ;;  %s688_s25 = sadd.s32 7, %s2116_s30 }
 0x783   : > { %s680_s15 = sld [smem:[#allocation4 + %s679_s18]]  ;;  %s697_s20 = sadd.s32 7, %s2122_s5 }
 0x784   : > { %v953_v3 = vadd.f32 %v1962_v63, %v952_v2  ;;  %s724_s28 = sadd.s32 7, %s2158_s23  ;;  %s716_s30 = sld [smem:[#allocation4 + %s715_s24]] }
 0x786   : > { %v957_v6 = vsel %vm956_vm15, %v1962_v63, %v953_v3  ;;  %v1041_v63 = vld [vmem:[#allocation2 + $0x28] sm:$0xff] }
 0x787   : > { %v962_v9 = vsel %vm959_vm0, %v961_v7, %v957_v6  ;;  %p663_p6 = scmp.gt.s32.totalorder %s662_s0, 0  ;;  %p1680_p8 = scmp.lt.s32.totalorder %s662_s0, 49 }
 0x788   : > { %v965_v11 = vmul.f32 %v962_v9, %v2209_v41  ;;  %p672_p7 = scmp.gt.s32.totalorder %s671_s12, 0  ;;  %p1685_p9 = scmp.lt.s32.totalorder %s671_s12, 49 }
 0x789   : > { %s2530_s0 = smov (!%p663_p6, %s662_s0), 0  ;;  %p681_p10 = scmp.gt.s32.totalorder %s680_s15, 0 }
 0x78a   : > { %s2532_s12 = smov (!%p672_p7, %s671_s12), 0  ;;  %s2534_s0 = smov (!%p1680_p8, %s2530_s0), 49 }
 0x78b   : > { %s2536_s12 = smov (!%p1685_p9, %s2532_s12), 49  ;;  %p1690_p12 = scmp.lt.s32.totalorder %s680_s15, 49 }
 0x78c   : > { %s2538_s15 = smov (!%p681_p10, %s680_s15), 0  ;;  %p717_p3 = scmp.gt.s32.totalorder %s716_s30, 0 }
 0x78d   : > { %s2540_s15 = smov (!%p1690_p12, %s2538_s15), 49  ;;  %p1710_p6 = scmp.lt.s32.totalorder %s716_s30, 49 }
 0x78e   : > { %s667_s9 = scalar_lea.vmem [#allocation5], %s2534_s0  ;;  %s676_s23 = scalar_lea.vmem [#allocation5], %s2536_s12 }
 0x78f   : > { %p144_p8 = scmp.lt.s32.totalorder %s2096_s19, 1 }
 0x791   : > { %s2556_s19 = smov (!%p144_p8, %s2096_s19), 1 }
 0x7e5   : > { %v968_v8 = vpop.permute.xlu0 %967 }
 0x7e6   : > { %v970_v10 = vmul.f32 %v968_v8, %v962_v9 }
 0x7e8   : > { %972 = vrot.lane.b32.xlu1 %v970_v10, %s2062_s6 }
 0x85a   : > { %v973_v12 = vpop.permute.xlu1 %972 }
 0x85b   : > { %v2232_v13 = vadd.f32 %v973_v12, %v965_v11 }
 0x85d   : > { %1963 = vtanh.f32 %v2232_v13 }
 0x863   : > { %v1964_v14 = vpop.eup %1963 }
 0x864   : > { %978 = vrot.lane.b32.xlu2 %v1964_v14, %s2062_s6 }
 0x8be   : > { %v979_v15 = vpop.permute.xlu2 %978 }
 0x8bf   : > { %v981_v16 = vmul.f32 %v979_v15, %v962_v9 }
 0x8c1   : > { %v983_v17 = vpack.c.bf16 %v981_v16, %v981_v16 }
 0x8c3   : > { %985 = vrot.lane.b32.xlu0 %v983_v17, %s2063_s8 }
 0x935   : > { %v986_v26 = vpop.permute.xlu0 %985 }
 0x936   : > { %1735 = vmatmul.msk.bf16.vlgmr.msrb.gmra.mxu0 %vm750_vm4, %v986_v26  ;;  %v596_v26 = vld [vmem:[%s595_s13] sm:$0x1]  ;;  %s689_s13 = sld [smem:[#allocation4 + %s688_s25]] }
 0x937   : > { %597 = vst [vmem:[#allocation2 + $0x30] sm:$0x1] %v596_v26 }
 0x93c   : > { %p690_p11 = scmp.gt.s32.totalorder %s689_s13, 0  ;;  %p1695_p0 = scmp.lt.s32.totalorder %s689_s13, 49 }
 0x93e   : > { %s691_s5 = scalar_select %p690_p11, %s689_s13, 0 }
 0x940   : > { %s2542_s5 = smov (!%p1695_p0, %s691_s5), 49 }
 0x9b3   : > { %v999_v28 = vpop.f32.mrf.mxu0 }
 0x9b4   : > { %v1003_v29 = vadd.f32 %v999_v28, %v982_v27  ;;  %v605_v27 = vld [vmem:[%s604_s22] sm:$0x1]  ;;  %s698_s22 = sld [smem:[#allocation4 + %s697_s20]] }
 0x9b5   : > { %v614_v28 = vld [vmem:[%s613_s11] sm:$0x1]  ;;  %606 = vst [vmem:[#allocation2 + $0x31] sm:$0x1] %v605_v27  ;;  %s706_s11 = sadd.s32 7, %s2128_s7 }
 0x9b6   : > { %1965 = vtanh.f32 %v1003_v29  ;;  %v1736_v32 = vmul.f32 -1.442695, %v1003_v29  ;;  %v623_v29 = vld [vmem:[%s622_s27] sm:$0x1]  ;;  %615 = vst [vmem:[#allocation2 + $0x32] sm:$0x1] %v614_v28 }
 0x9b7   : > { %624 = vst [vmem:[#allocation2 + $0x33] sm:$0x1] %v623_v29  ;;  %s707_s26 = sld [smem:[#allocation4 + %s706_s11]] }
 0x9b8   : > { %1967 = vpow2.f32 %v1736_v32  ;;  %v650_v32 = vld [vmem:[%s649_s4] sm:$0x1]  ;;  %s725_s27 = sld [smem:[#allocation4 + %s724_s28]]  ;;  %s694_s4 = scalar_lea.vmem [#allocation5], %s2542_s5 }
 0x9b9   : > { %651 = vst [vmem:[#allocation2 + $0x36] sm:$0x1] %v650_v32  ;;  %s718_s7 = scalar_select %p717_p3, %s716_s30, 0  ;;  %v1898_v32 = vld [vmem:[%s2343_s2 + $0x10] sm:$0xff] }
 0x9ba   : > { %p699_p13 = scmp.gt.s32.totalorder %s698_s22, 0  ;;  %p1700_p1 = scmp.lt.s32.totalorder %s698_s22, 49 }
 0x9bb   : > { %v1001_v30 = vpop.f32.mrf.mxu0  ;;  %s2552_s7 = smov (!%p1710_p6, %s718_s7), 49 }
 0x9bc   : > { %v1966_v31 = vpop.eup %1965  ;;  %v632_v30 = vld [vmem:[%s631_s17] sm:$0x1]  ;;  %s700_s17 = scalar_select %p699_p13, %s698_s22, 0 }
 0x9bd   : > { %1026 = vrot.lane.b32.xlu1 %v1966_v31, %s2062_s6  ;;  %v641_v31 = vld [vmem:[%s640_s29] sm:$0x1]  ;;  %633 = vst [vmem:[#allocation2 + $0x34] sm:$0x1] %v632_v30  ;;  %p708_p2 = scmp.gt.s32.totalorder %s707_s26, 0  ;;  %p1705_p4 = scmp.lt.s32.totalorder %s707_s26, 49 }
 0x9be   : > { %v1968_v33 = vpop.eup %1967  ;;  %642 = vst [vmem:[#allocation2 + $0x35] sm:$0x1] %v641_v31  ;;  %s2544_s17 = smov (!%p1700_p1, %s700_s17), 49  ;;  %p726_p5 = scmp.gt.s32.totalorder %s725_s27, 0  ;;  %v1899_v31 = vld [vmem:[%s2343_s2 + $0x18] sm:$0xff] }
 0x9bf   : > { %v1007_v34 = vadd.f32 1.0, %v1968_v33  ;;  %v659_v33 = vld [vmem:[%s658_s14] sm:$0x1]  ;;  %s2546_s26 = smov (!%p708_p2, %s707_s26), 0  ;;  %p1715_p7 = scmp.lt.s32.totalorder %s725_s27, 49  ;;  %1249 = vmatpush.bf16.msra.mxu0 %v1899_v31 }
 0x9c0   : > { %660 = vst [vmem:[#allocation2 + $0x37] sm:$0x1] %v659_v33  ;;  %s2548_s27 = smov (!%p726_p5, %s725_s27), 0  ;;  %s2550_s26 = smov (!%p1705_p4, %s2546_s26), 49 }
 0x9c1   : > { %1969 = vrcp.f32 %v1007_v34  ;;  %v1019_v40 = vand.u32 2147483648, %v1007_v34  ;;  %vm1013_vm2 = vweird.f32 %v1007_v34  ;;  %v1017_v41 = vand.u32 2147483647, %v1007_v34  ;;  %s2554_s27 = smov (!%p1715_p7, %s2548_s27), 49  ;;  %s685_s29 = scalar_lea.vmem [#allocation5], %s2540_s15 }
 0x9c2   : > { %s703_s14 = scalar_lea.vmem [#allocation5], %s2544_s17  ;;  %s712_s21 = scalar_lea.vmem [#allocation5], %s2550_s26 }
 0x9c3   : > { %v1020_v43 = vor.u32 1.1754944e-38, %v1019_v40  ;;  %vm1018_vm5 = vcmp.eq.f32.partialorder %v1017_v41, 8.507059e+37  ;;  %s721_s10 = scalar_lea.vmem [#allocation5], %s2552_s7  ;;  %s730_s18 = scalar_lea.vmem [#allocation5], %s2554_s27  ;;  %1250 = vmatpush.bf16.msra.mxu0 %v1898_v32 }
 0x9c7   : > { %v1970_v35 = vpop.eup %1969 }
 0x9c8   : > { %v1009_v36 = vmul.f32 %v1970_v35, %v1007_v34  ;;  %vm1014_vm1 = vweird.f32 %v1970_v35 }
 0x9c9   : > { %vm1015_vm3 = vmor %vm1013_vm2, %vm1014_vm1 }
 0x9ca   : > { %v1010_v37 = vsub.f32 1.0, %v1009_v36 }
 0x9cc   : > { %v1011_v38 = vmul.f32 %v1970_v35, %v1010_v37 }
 0x9ce   : > { %v1012_v39 = vadd.f32 %v1970_v35, %v1011_v38 }
 0x9d0   : > { %v1016_v42 = vsel %vm1015_vm3, %v1970_v35, %v1012_v39  ;;  %v1100_v35 = vld [vmem:[#allocation2 + $0x30] sm:$0xff] }
 0x9d1   : > { %v1021_v45 = vsel %vm1018_vm5, %v1020_v43, %v1016_v42 }
 0x9d2   : > { %v1024_v47 = vmul.f32 %v1021_v45, %v2232_v13 }
 0xa2f   : > { %v1027_v44 = vpop.permute.xlu1 %1026 }
 0xa30   : > { %v1029_v46 = vmul.f32 %v1027_v44, %v1021_v45 }
 0xa32   : > { %1031 = vrot.lane.b32.xlu2 %v1029_v46, %s2062_s6 }
 0xa8c   : > { %v1032_v48 = vpop.permute.xlu2 %1031 }
 0xa8d   : > { %v2255_v49 = vadd.f32 %v1032_v48, %v1024_v47 }
 0xa8f   : > { %1971 = vtanh.f32 %v2255_v49 }
 0xa95   : > { %v1972_v50 = vpop.eup %1971 }
 0xa96   : > { %1037 = vrot.lane.b32.xlu0 %v1972_v50, %s2062_s6 }
 0xb08   : > { %v1038_v51 = vpop.permute.xlu0 %1037 }
 0xb09   : > { %v1040_v52 = vmul.f32 %v1038_v51, %v1021_v45 }
 0xb0b   : > { %v1042_v53 = vpack.c.bf16 %v1040_v52, %v1040_v52 }
 0xb0d   : > { %1044 = vrot.lane.b32.xlu1 %v1042_v53, %s2063_s8 }
 0xb7f   : > { %v1045_v62 = vpop.permute.xlu1 %1044 }
 0xb80   : > { %1737 = vmatmul.msk.bf16.vlgmr.msrb.gmra.mxu1 %vm750_vm4, %v1045_v62  ;;  %v668_v62 = vld [vmem:[%s667_s9] sm:$0x1] }
 0xb81   : > { %669 = vst [vmem:[#allocation2 + $0x38] sm:$0x1] %v668_v62 }
 0xbfd   : > { %v1058_v0 = vpop.f32.mrf.mxu1 }
 0xbfe   : > { %v1062_v1 = vadd.f32 %v1058_v0, %v1041_v63  ;;  %v677_v63 = vld [vmem:[%s676_s23] sm:$0x1] }
 0xbff   : > { %v686_v0 = vld [vmem:[%s685_s29] sm:$0x1]  ;;  %678 = vst [vmem:[#allocation2 + $0x39] sm:$0x1] %v677_v63 }
 0xc00   : > { %1973 = vtanh.f32 %v1062_v1  ;;  %v1738_v4 = vmul.f32 -1.442695, %v1062_v1  ;;  %v695_v1 = vld [vmem:[%s694_s4] sm:$0x1]  ;;  %687 = vst [vmem:[#allocation2 + $0x3a] sm:$0x1] %v686_v0 }
 0xc01   : > { %696 = vst [vmem:[#allocation2 + $0x3b] sm:$0x1] %v695_v1 }
 0xc02   : > { %1975 = vpow2.f32 %v1738_v4  ;;  %v722_v4 = vld [vmem:[%s721_s10] sm:$0x1] }
 0xc03   : > { %723 = vst [vmem:[#allocation2 + $0x3e] sm:$0x1] %v722_v4 }
 0xc05   : > { %v1060_v2 = vpop.f32.mrf.mxu1 }
 0xc06   : > { %v1974_v3 = vpop.eup %1973  ;;  %v704_v2 = vld [vmem:[%s703_s14] sm:$0x1] }
 0xc07   : > { %1085 = vrot.lane.b32.xlu2 %v1974_v3, %s2062_s6  ;;  %v713_v3 = vld [vmem:[%s712_s21] sm:$0x1]  ;;  %705 = vst [vmem:[#allocation2 + $0x3c] sm:$0x1] %v704_v2 }
 0xc08   : > { %v1976_v5 = vpop.eup %1975  ;;  %714 = vst [vmem:[#allocation2 + $0x3d] sm:$0x1] %v713_v3 }
 0xc09   : > { %v1066_v6 = vadd.f32 1.0, %v1976_v5  ;;  %v731_v5 = vld [vmem:[%s730_s18] sm:$0x1] }
 0xc0a   : > { %732 = vst [vmem:[#allocation2 + $0x3f] sm:$0x1] %v731_v5 }
 0xc0b   : > { %1977 = vrcp.f32 %v1066_v6  ;;  %v1078_v12 = vand.u32 2147483648, %v1066_v6  ;;  %vm1072_vm7 = vweird.f32 %v1066_v6  ;;  %v1076_v13 = vand.u32 2147483647, %v1066_v6 }
 0xc0d   : > { %v1079_v15 = vor.u32 1.1754944e-38, %v1078_v12  ;;  %vm1077_vm9 = vcmp.eq.f32.partialorder %v1076_v13, 8.507059e+37 }
 0xc11   : > { %v1978_v7 = vpop.eup %1977 }
 0xc12   : > { %v1068_v8 = vmul.f32 %v1978_v7, %v1066_v6  ;;  %vm1073_vm6 = vweird.f32 %v1978_v7 }
 0xc13   : > { %vm1074_vm8 = vmor %vm1072_vm7, %vm1073_vm6 }
 0xc14   : > { %v1069_v9 = vsub.f32 1.0, %v1068_v8 }
 0xc16   : > { %v1070_v10 = vmul.f32 %v1978_v7, %v1069_v9 }
 0xc18   : > { %v1071_v11 = vadd.f32 %v1978_v7, %v1070_v10 }
 0xc1a   : > { %v1075_v14 = vsel %vm1074_vm8, %v1978_v7, %v1071_v11  ;;  %v1159_v7 = vld [vmem:[#allocation2 + $0x38] sm:$0xff] }
 0xc1b   : > { %v1080_v17 = vsel %vm1077_vm9, %v1079_v15, %v1075_v14 }
 0xc1c   : > { %v1083_v19 = vmul.f32 %v1080_v17, %v2255_v49 }
 0xc61   : > { %v1086_v16 = vpop.permute.xlu2 %1085 }
 0xc62   : > { %v1088_v18 = vmul.f32 %v1086_v16, %v1080_v17 }
 0xc64   : > { %1090 = vrot.lane.b32.xlu0 %v1088_v18, %s2062_s6 }
 0xcd6   : > { %v1091_v20 = vpop.permute.xlu0 %1090 }
 0xcd7   : > { %v2278_v21 = vadd.f32 %v1091_v20, %v1083_v19 }
 0xcd9   : > { %1979 = vtanh.f32 %v2278_v21 }
 0xcdf   : > { %v1980_v22 = vpop.eup %1979 }
 0xce0   : > { %1096 = vrot.lane.b32.xlu1 %v1980_v22, %s2062_s6 }
 0xd52   : > { %v1097_v23 = vpop.permute.xlu1 %1096 }
 0xd53   : > { %v1099_v24 = vmul.f32 %v1097_v23, %v1080_v17 }
 0xd55   : > { %v1101_v25 = vpack.c.bf16 %v1099_v24, %v1099_v24 }
 0xd57   : > { %1103 = vrot.lane.b32.xlu2 %v1101_v25, %s2063_s8 }
 0xdb1   : > { %v1104_v34 = vpop.permute.xlu2 %1103 }
 0xdb2   : > { %1739 = vmatmul.msk.bf16.vlgmr.msrb.gmra.mxu2 %vm750_vm4, %v1104_v34 }
 0xe35   : > { %v1117_v36 = vpop.f32.mrf.mxu2 }
 0xe36   : > { %v1121_v37 = vadd.f32 %v1117_v36, %v1100_v35 }
 0xe38   : > { %1981 = vtanh.f32 %v1121_v37  ;;  %v1740_v40 = vmul.f32 -1.442695, %v1121_v37  ;;  %v1932_v37 = vld [vmem:[#allocation5 + $0x32] ss:$0 sm:$0xff] }
 0xe3a   : > { %1983 = vpow2.f32 %v1740_v40 }
 0xe3d   : > { %v1119_v38 = vpop.f32.mrf.mxu2 }
 0xe3e   : > { %v1982_v39 = vpop.eup %1981 }
 0xe3f   : > { %1144 = vrot.lane.b32.xlu0 %v1982_v39, %s2062_s6 }
 0xe40   : > { %v1984_v41 = vpop.eup %1983 }
 0xe41   : > { %v1125_v42 = vadd.f32 1.0, %v1984_v41 }
 0xe43   : > { %1985 = vrcp.f32 %v1125_v42  ;;  %v1137_v48 = vand.u32 2147483648, %v1125_v42  ;;  %vm1131_vm11 = vweird.f32 %v1125_v42  ;;  %v1135_v49 = vand.u32 2147483647, %v1125_v42 }
 0xe45   : > { %v1138_v51 = vor.u32 1.1754944e-38, %v1137_v48  ;;  %vm1136_vm13 = vcmp.eq.f32.partialorder %v1135_v49, 8.507059e+37 }
 0xe49   : > { %v1986_v43 = vpop.eup %1985 }
 0xe4a   : > { %v1127_v44 = vmul.f32 %v1986_v43, %v1125_v42  ;;  %vm1132_vm10 = vweird.f32 %v1986_v43 }
 0xe4b   : > { %vm1133_vm12 = vmor %vm1131_vm11, %vm1132_vm10 }
 0xe4c   : > { %v1128_v45 = vsub.f32 1.0, %v1127_v44 }
 0xe4e   : > { %v1129_v46 = vmul.f32 %v1986_v43, %v1128_v45 }
 0xe50   : > { %v1130_v47 = vadd.f32 %v1986_v43, %v1129_v46 }
 0xe52   : > { %v1134_v50 = vsel %vm1133_vm12, %v1986_v43, %v1130_v47 }
 0xe53   : > { %v1139_v53 = vsel %vm1136_vm13, %v1138_v51, %v1134_v50 }
 0xe54   : > { %v1142_v55 = vmul.f32 %v1139_v53, %v2278_v21 }
 0xeb1   : > { %v1145_v52 = vpop.permute.xlu0 %1144 }
 0xeb2   : > { %v1147_v54 = vmul.f32 %v1145_v52, %v1139_v53 }
 0xeb4   : > { %1149 = vrot.lane.b32.xlu1 %v1147_v54, %s2062_s6 }
 0xf26   : > { %v1150_v56 = vpop.permute.xlu1 %1149 }
 0xf27   : > { %v2301_v57 = vadd.f32 %v1150_v56, %v1142_v55 }
 0xf29   : > { %1987 = vtanh.f32 %v2301_v57 }
 0xf2f   : > { %v1988_v58 = vpop.eup %1987 }
 0xf30   : > { %1155 = vrot.lane.b32.xlu2 %v1988_v58, %s2062_s6 }
 0xf8a   : > { %v1156_v59 = vpop.permute.xlu2 %1155 }
 0xf8b   : > { %v1158_v60 = vmul.f32 %v1156_v59, %v1139_v53 }
 0xf8d   : > { %v1160_v61 = vpack.c.bf16 %v1158_v60, %v1158_v60 }
 0xf8f   : > { %1162 = vrot.lane.b32.xlu0 %v1160_v61, %s2063_s8 }
0x1001   : > { %v1163_v6 = vpop.permute.xlu0 %1162 }
0x1002   : > { %1741 = vmatmul.msk.bf16.vlgmr.msrb.gmra.mxu3 %vm750_vm4, %v1163_v6 }
0x1085   : > { %v1176_v8 = vpop.f32.mrf.mxu3 }
0x1086   : > { %v1180_v9 = vadd.f32 %v1176_v8, %v1159_v7 }
0x1088   : > { %1989 = vtanh.f32 %v1180_v9  ;;  %v1742_v12 = vmul.f32 -1.442695, %v1180_v9 }
0x108a   : > { %1991 = vpow2.f32 %v1742_v12 }
0x108d   : > { %v1178_v10 = vpop.f32.mrf.mxu3 }
0x108e   : > { %v1990_v11 = vpop.eup %1989 }
0x108f   : > { %1203 = vrot.lane.b32.xlu1 %v1990_v11, %s2062_s6 }
0x1090   : > { %v1992_v13 = vpop.eup %1991 }
0x1091   : > { %v1184_v14 = vadd.f32 1.0, %v1992_v13 }
0x1093   : > { %1993 = vrcp.f32 %v1184_v14  ;;  %v1196_v20 = vand.u32 2147483648, %v1184_v14  ;;  %vm1190_vm15 = vweird.f32 %v1184_v14  ;;  %v1194_v21 = vand.u32 2147483647, %v1184_v14 }
0x1095   : > { %v1197_v23 = vor.u32 1.1754944e-38, %v1196_v20  ;;  %vm1195_vm1 = vcmp.eq.f32.partialorder %v1194_v21, 8.507059e+37 }
0x1099   : > { %v1994_v15 = vpop.eup %1993 }
0x109a   : > { %v1186_v16 = vmul.f32 %v1994_v15, %v1184_v14  ;;  %vm1191_vm14 = vweird.f32 %v1994_v15 }
0x109b   : > { %vm1192_vm0 = vmor %vm1190_vm15, %vm1191_vm14 }
0x109c   : > { %v1187_v17 = vsub.f32 1.0, %v1186_v16 }
0x109e   : > { %v1188_v18 = vmul.f32 %v1994_v15, %v1187_v17 }
0x10a0   : > { %v1189_v19 = vadd.f32 %v1994_v15, %v1188_v18 }
0x10a2   : > { %v1193_v22 = vsel %vm1192_vm0, %v1994_v15, %v1189_v19 }
0x10a3   : > { %v1198_v25 = vsel %vm1195_vm1, %v1197_v23, %v1193_v22 }
0x10a4   : > { %v1201_v27 = vmul.f32 %v1198_v25, %v2301_v57 }
0x1101   : > { %v1204_v24 = vpop.permute.xlu1 %1203 }
0x1102   : > { %v1206_v26 = vmul.f32 %v1204_v24, %v1198_v25 }
0x1104   : > { %1208 = vrot.lane.b32.xlu2 %v1206_v26, %s2062_s6 }
0x115e   : > { %v1209_v28 = vpop.permute.xlu2 %1208 }
0x115f   : > { %v1211_v29 = vadd.f32 %v1209_v28, %v1201_v27 }
0x1161   : > { %1995 = vtanh.f32 %v1211_v29 }
0x1167   : > { %v1996_v30 = vpop.eup %1995 }
0x1168   : > { %1214 = vrot.lane.b32.xlu0 %v1996_v30, %s2062_s6  ;;  %s1390_s6 = sshll.u32 %s2556_s19, 3 }
0x1169   : > { %s147_s13 = scalar_lea.vmem %s2344_s3, %s1390_s6 }
0x11da   : > { %v1215_v33 = vpop.permute.xlu0 %1214 }
0x11db   : > { %v1217_v34 = vmul.f32 %v1215_v33, %v1198_v25 }
0x11dd   : > { %v1223_v35 = vpack.c.bf16 %v1217_v34, %v1217_v34 }
0x11df   : > { %1226 = vrot.lane.b32.xlu1 %v1223_v35, %s2063_s8 }
0x1251   : > { %v1227_v36 = vpop.permute.xlu1 %1226 }
0x1252   : > { %1751 = vmatmul.msk.bf16.vlgmr.msra.gmra.mxu0 %vm750_vm4, %v1227_v36 }
0x12cf   : > { %v1252_v38 = vpop.f32.mrf.mxu0 }
0x12d0   : > { %v1253_v39 = vadd.f32 %v1932_v37, %v1252_v38 }
0x12d2   : > { %1256 = vmax.xlane.f32.xlu2 %v1253_v39 }
0x12d7   : > { %v1254_v40 = vpop.f32.mrf.mxu0 }
0x1345   : > { %v1257_v41 = vpop.xlane.xlu2 %1256 }
0x1346   : > { %v1258_v42 = vsub.f32 %v1253_v39, %v1257_v41 }
0x1348   : > { %v1259_v43 = vmul.f32 1.442695, %v1258_v42 }
0x134a   : > { %1997 = vpow2.f32 %v1259_v43 }
0x1350   : > { %v1998_v44 = vpop.eup %1997 }
0x1351   : > { %1261 = vadd.xlane.f32.xlu0 %v1998_v44 }
0x13c4   : > { %v1262_v45 = vpop.xlane.xlu0 %1261 }
0x13c5   : > { %1999 = vlog2.f32 %v1262_v45 }
0x13cb   : > { %v2000_v46 = vpop.eup %1999 }
0x13cc   : > { %v1264_v47 = vmul.f32 0.6931472, %v2000_v46 }
0x13ce   : > { %v1265_v48 = vsub.f32 %v1258_v42, %v1264_v47 }
0x13d0   : > { %1266 = vst [vmem:[%s147_s13] sm:$0xff] %v1265_v48 }
0x13d1 PF: > { %s22_s16 = sadd.s32 1, %s2055_s16  }
0x13d2   : > { %p19_p9 = scmp.ge.s32.totalorder %s22_s16, 4  }
0x13d4   :  { %21 = sbr.rel (!%p19_p9) target bundleno = 7 (0x7), region = 124 }
0x13d9   :  { %1286 = vsyncpa [#allocation6], 1 }
0x13da   :  { %1288 = vsyncpa [#allocation6 + $0x1], 1 }

</bundles_post_ra>
